<compile_context>
chip_gen: v7x
topology: tpu7x:2x2x1
jax: 0.10.0
libtpu: 0.0.40
codegen_flags: <defaults>
</compile_context>

<pallas_src>
import functools
import numpy as np

import jax
import jax.numpy as jnp
from jax.experimental import pallas as pl
from jax.experimental.pallas import tpu as pltpu


def _round_up(x, m):
    return ((x + m - 1) // m) * m


def _pick_div_tile(n, max_tile):
    """Largest t <= max_tile with t % 8 == 0 and n % t == 0 (n must be %8==0)."""
    t = min(max_tile, n)
    t -= t % 8
    while t >= 8:
        if n % t == 0:
            return t
        t -= 8
    return n


# ----------------------------------------------------------------------------
# Buffered(1) feature probe: single-buffer constant-index weight specs if the
# installed Pallas supports pipeline_mode=pl.Buffered(1); otherwise fall back
# to the default (double-buffered) spec.  Halves resident-weight VMEM.
# ----------------------------------------------------------------------------

_BUFFERED1_OK = None


def _buffered1_supported():
    global _BUFFERED1_OK
    if _BUFFERED1_OK is None:
        try:
            def _k(a_ref, o_ref):
                o_ref[...] = a_ref[...] * 2.0

            spec = pl.BlockSpec((8, 128), lambda i: (0, 0),
                                pipeline_mode=pl.Buffered(1))
            y = pl.pallas_call(
                _k,
                out_shape=jax.ShapeDtypeStruct((16, 128), jnp.float32),
                grid=(2,),
                in_specs=[spec],
                out_specs=pl.BlockSpec((8, 128), lambda i: (i, 0)),
            )(jnp.ones((8, 128), jnp.float32))
            jax.block_until_ready(y)
            _BUFFERED1_OK = True
        except Exception:
            _BUFFERED1_OK = False
    return _BUFFERED1_OK


def _weight_buffers():
    return 1 if _buffered1_supported() else 2


def _cs(shape):
    """Constant-index BlockSpec: full array resident in VMEM (DMA'd once),
    single-buffered when supported."""
    n = len(shape)
    idx = lambda *i, _n=n: (0,) * _n
    if _buffered1_supported():
        return pl.BlockSpec(shape, idx, pipeline_mode=pl.Buffered(1))
    return pl.BlockSpec(shape, idx)


def _vmem_limit_bytes(weight_bytes, act_block_bytes, scratch_bytes=0):
    """Scoped-VMEM limit: resident weights + double-buffered activation tiles
    + in-kernel intermediates, with headroom.  Clamped to a safe range."""
    est = weight_bytes + 2 * act_block_bytes + scratch_bytes
    est = int(est * 1.3) + (8 << 20)
    return int(max(32 << 20, min(est, 100 << 20)))


# ----------------------------------------------------------------------------
# In-kernel math helpers (traced inside the Pallas kernels)
# ----------------------------------------------------------------------------

def _layernorm(x, g, b, eps=1e-5):
    # Biased variance + eps=1e-5 matches torch.nn.LayerNorm.  All in f32.
    mean = jnp.mean(x, axis=-1, keepdims=True)
    var = jnp.mean(jnp.square(x - mean), axis=-1, keepdims=True)
    return (x - mean) * jax.lax.rsqrt(var + eps) * g + b


def _mha_into(attn_ref, q, k, v, num_heads):
    """q (Tq, D) pre-scaled; k, v (Tkv, D).  Writes (Tq, D) f32 into attn_ref.

    Each head's output is stored straight into its lane slice of the VMEM
    scratch, so at most one head's f32 output is live in vregs at a time
    (no Python-list of H outputs + jnp.concatenate relayout).  Static
    compile-time lane slices keep all accesses (8,128)-aligned; the scratch is
    lane-dense so the out-projection reads it as one full-width MXU operand.
    """
    d = q.shape[-1]
    hd = d // num_heads
    for h in range(num_heads):
        sl = slice(h * hd, (h + 1) * hd)
        qh = q[:, sl].astype(jnp.bfloat16)
        kh = k[:, sl].astype(jnp.bfloat16)
        vh = v[:, sl].astype(jnp.bfloat16)
        # scores = qh @ kh^T (contract head_dim), f32 accumulation on MXU.
        s = jax.lax.dot_general(qh, kh, (((1,), (1,)), ((), ())),
                                preferred_element_type=jnp.float32)
        s = s - jnp.max(s, axis=-1, keepdims=True)
        p = jnp.exp(s)
        p = p * pl.reciprocal(jnp.sum(p, axis=-1, keepdims=True), approx=True)
        attn_ref[:, sl] = jnp.dot(p.astype(jnp.bfloat16), vh,
                                  preferred_element_type=jnp.float32)


def _gelu(x):
    # Exact (erf) GELU in f32, matching nn.GELU default.
    return 0.5 * x * (1.0 + jax.lax.erf(x * (1.0 / np.sqrt(2.0))))


# ----------------------------------------------------------------------------
# Fused Pallas kernels
# ----------------------------------------------------------------------------

def _cross_attn_kernel(x_ref, kv_in_ref,
                       nqg, nqb, nkg, nkb, mlg, mlb,
                       wq, bq, wkv, bkv, wo, bo,
                       out_ref, attn_sc, *, num_heads, scale):
    """One (batch, q-tile): residual + MHCA(LN_q(queries), LN_kv(image_feats)).

    x_ref/out_ref view only the query rows of the persistent `combined`
    buffer (aliased in/out), so the text rows are left untouched in HBM.
    """
    q_in = x_ref[...]                           # (tq, D)  f32 residual stream
    kv_in = kv_in_ref[...]                      # (Tkv, D) f32
    d = q_in.shape[-1]

    qn = _layernorm(q_in, nqg[...], nqb[...])       # norm_q_cross
    kvn = _layernorm(kv_in, nkg[...], nkb[...])     # norm_kv_cross
    q2 = _layernorm(qn, mlg[...], mlb[...])         # MHCA internal layer_norm(q)

    # Projections: bf16 operands, f32 accumulation.  K/V share one matmul.
    # (KV projection is recomputed per q-tile; cheap vs. the HBM glue it saves.)
    q = jnp.dot(q2.astype(jnp.bfloat16), wq[...],
                preferred_element_type=jnp.float32) + bq[...]
    kv = jnp.dot(kvn.astype(jnp.bfloat16), wkv[...],
                 preferred_element_type=jnp.float32) + bkv[...]
    q = q * scale                                # pre-scale q ((tq,D), not (tq,Tkv))
    k = kv[:, :d]
    v = kv[:, d:]

    _mha_into(attn_sc, q, k, v, num_heads)       # (tq, D) lane-dense scratch

    y = jnp.dot(attn_sc[...].astype(jnp.bfloat16), wo[...],
                preferred_element_type=jnp.float32) + bo[...]
    # TODO(synk): attention_mask / dropouts omitted (mask=None, eval mode).
    out_ref[...] = q_in + y                      # fused residual add


def _self_attn_ffn_kernel(x_ref,
                          sg, sb, wqkv, bqkv, wo, bo,
                          fg, fb, w1, b1, w2, b2,
                          out_ref, attn_sc, *, num_heads, scale):
    """One batch element:
       x = x + MHSA(LN(x));  out = x + FFN(LN(x))
    fused so the residual stream is not round-tripped to HBM in between."""
    x = x_ref[...]                               # (S, D) f32 residual stream
    d = x.shape[-1]

    # ---- self-attention ----
    xn = _layernorm(x, sg[...], sb[...])         # norm_self
    qkv = jnp.dot(xn.astype(jnp.bfloat16), wqkv[...],
                  preferred_element_type=jnp.float32) + bqkv[...]   # (S, 3D)
    q = qkv[:, :d] * scale
    k = qkv[:, d:2 * d]
    v = qkv[:, 2 * d:]
    _mha_into(attn_sc, q, k, v, num_heads)       # (S, D)
    y = jnp.dot(attn_sc[...].astype(jnp.bfloat16), wo[...],
                preferred_element_type=jnp.float32) + bo[...]
    x = x + y                                    # residual after MHSA

    # ---- feed-forward ----
    xn2 = _layernorm(x, fg[...], fb[...])        # norm_ff
    h = jnp.dot(xn2.astype(jnp.bfloat16), w1[...],
                preferred_element_type=jnp.float32) + b1[...]
    h = _gelu(h)
    y2 = jnp.dot(h.astype(jnp.bfloat16), w2[...],
                 preferred_element_type=jnp.float32) + b2[...]
    # TODO(synk): dropout_self / FFN dropouts / dropout_ff omitted (eval mode).
    out_ref[...] = x + y2                        # fused residual add


def _layernorm_kernel(x_ref, g_ref, b_ref, o_ref):
    o_ref[...] = _layernorm(x_ref[...], g_ref[...], b_ref[...])


# ----------------------------------------------------------------------------
# Pallas wrappers
# ----------------------------------------------------------------------------

def pallas_cross_attn_block(p, combined, image_features, nq, num_heads,
                            tile_q=256):
    """In-place update of the first `nq` seq rows of `combined`:
       combined[:, :nq] += MHCA(LN(combined[:, :nq]), LN(image_features))."""
    b, s_total, d = combined.shape
    _, tkv, _ = image_features.shape
    assert d % num_heads == 0
    assert nq % 8 == 0, "num_queries must be a multiple of 8 for in-place path"
    scale = (d // num_heads) ** (-0.5)
    tq = _pick_div_tile(nq, tile_q)

    kern = functools.partial(_cross_attn_kernel, num_heads=num_heads, scale=scale)
    weights = (p["norm_q_g"], p["norm_q_b"], p["norm_kv_g"], p["norm_kv_b"],
               p["mhca_ln_g"], p["mhca_ln_b"],
               p["mhca_wq"], p["mhca_bq"], p["mhca_wkv"], p["mhca_bkv"],
               p["mhca_wo"], p["mhca_bo"])
    wbytes = sum(int(w.size) * w.dtype.itemsize for w in weights)
    act_bytes = (tq * d + tkv * d + tq * d) * 4
    inter = (tkv * 2 * d + 3 * tq * d + 2 * tq * tkv + tq * d) * 4
    vmem = _vmem_limit_bytes(wbytes * _weight_buffers(), act_bytes, inter)

    return pl.pallas_call(
        kern,
        out_shape=jax.ShapeDtypeStruct((b, s_total, d), jnp.float32),
        grid=(b, nq // tq),
        in_specs=[
            pl.BlockSpec((None, tq, d), lambda i, j: (i, j, 0)),   # query rows
            pl.BlockSpec((None, tkv, d), lambda i, j: (i, 0, 0)),  # image feats
            _cs((1, d)), _cs((1, d)),            # norm_q_cross
            _cs((1, d)), _cs((1, d)),            # norm_kv_cross
            _cs((1, d)), _cs((1, d)),            # MHCA internal LN
            _cs((d, d)), _cs((1, d)),            # Wq, bq
            _cs((d, 2 * d)), _cs((1, 2 * d)),    # merged W_kv, b_kv
            _cs((d, d)), _cs((1, d)),            # Wo, bo
        ],
        out_specs=pl.BlockSpec((None, tq, d), lambda i, j: (i, j, 0)),
        scratch_shapes=[pltpu.VMEM((tq, d), jnp.float32)],
        # Alias combined in->out: only query blocks are written; the text rows
        # keep their previous values (no concat/split or full-array copies).
        input_output_aliases={0: 0},
        compiler_params=pltpu.CompilerParams(
            dimension_semantics=("parallel", "parallel"),
            vmem_limit_bytes=vmem),
    )(combined, image_features, *weights)


def pallas_self_attn_ffn_block(p, x, num_heads):
    """combined = combined + MHSA(LN(combined)); then + FFN(LN(combined))."""
    b, s, d = x.shape
    assert d % num_heads == 0
    hidden = p["ff_w1"].shape[1]
    scale = (d // num_heads) ** (-0.5)

    kern = functools.partial(_self_attn_ffn_kernel, num_heads=num_heads,
                             scale=scale)
    weights = (p["norm_self_g"], p["norm_self_b"],
               p["mhsa_wqkv"], p["mhsa_bqkv"], p["mhsa_wo"], p["mhsa_bo"],
               p["norm_ff_g"], p["norm_ff_b"],
               p["ff_w1"], p["ff_b1"], p["ff_w2"], p["ff_b2"])
    wbytes = sum(int(w.size) * w.dtype.itemsize for w in weights)
    act_bytes = 2 * s * d * 4
    inter = (s * 3 * d + 2 * s * d + s * s + s * hidden + s * d) * 4
    vmem = _vmem_limit_bytes(wbytes * _weight_buffers(), act_bytes, inter)

    return pl.pallas_call(
        kern,
        out_shape=jax.ShapeDtypeStruct((b, s, d), jnp.float32),
        grid=(b,),
        in_specs=[
            pl.BlockSpec((None, s, d), lambda i: (i, 0, 0)),
            _cs((1, d)), _cs((1, d)),            # norm_self
            _cs((d, 3 * d)), _cs((1, 3 * d)),    # fused W_qkv, b_qkv
            _cs((d, d)), _cs((1, d)),            # Wo, bo
            _cs((1, d)), _cs((1, d)),            # norm_ff
            _cs((d, hidden)), _cs((1, hidden)),  # W1, b1
            _cs((hidden, d)), _cs((1, d)),       # W2, b2
        ],
        out_specs=pl.BlockSpec((None, s, d), lambda i: (i, 0, 0)),
        scratch_shapes=[pltpu.VMEM((s, d), jnp.float32)],
        compiler_params=pltpu.CompilerParams(
            dimension_semantics=("parallel",),
            vmem_limit_bytes=vmem),
        # TODO(synk): for very large (d, hidden) this keeps W1/W2 fully resident;
        # add an "arbitrary" hidden-dim grid axis + f32 accumulator if it busts
        # the v7x 64 MiB VMEM budget.
    )(x, *weights)


def pallas_layer_norm(x, g, b, tile_m=512):
    *lead, d = x.shape
    m = int(np.prod(lead))
    tm = min(tile_m, _round_up(m, 8))
    mp = _round_up(m, tm)
    xf = x.reshape(m, d)
    if mp != m:
        xf = jnp.pad(xf, ((0, mp - m), (0, 0)))
    wbytes = (int(g.size) + int(b.size)) * 4
    vmem = _vmem_limit_bytes(wbytes * _weight_buffers(), 2 * tm * d * 4, tm * d * 4)
    out = pl.pallas_call(
        _layernorm_kernel,
        out_shape=jax.ShapeDtypeStruct((mp, d), jnp.float32),
        grid=(mp // tm,),
        in_specs=[pl.BlockSpec((tm, d), lambda i: (i, 0)),
                  _cs((1, d)), _cs((1, d))],
        out_specs=pl.BlockSpec((tm, d), lambda i: (i, 0)),
        compiler_params=pltpu.CompilerParams(
            dimension_semantics=("parallel",),
            vmem_limit_bytes=vmem),
    )(xf, g, b)
    return out[:m].reshape(*lead, d)


# ----------------------------------------------------------------------------
# Module forward (glue in plain JAX, compute in the fused kernels above)
# ----------------------------------------------------------------------------

def layer_forward(p, combined, image_features, nq, num_heads):
    # combined[:, :nq] += MHCA(LN(queries), LN(image_features))   [one kernel]
    combined = pallas_cross_attn_block(p, combined, image_features, nq, num_heads)
    # combined += MHSA(LN(combined)); combined += FFN(LN(combined)) [one kernel]
    combined = pallas_self_attn_ffn_block(p, combined, num_heads)
    return combined


def cross_modal_transformer(params, image_features, queries, text_embeddings,
                            num_heads):
    nq = queries.shape[1]
    # Persistent residual stream: concat once, split once (no per-layer glue).
    combined = jnp.concatenate([queries, text_embeddings], axis=1)
    for p in params["layers"]:
        combined = layer_forward(p, combined, image_features, nq, num_heads)
    out_queries = pallas_layer_norm(combined[:, :nq], params["final_ln_g"],
                                    params["final_ln_b"])
    out_text = combined[:, nq:]
    return out_queries, out_text


# ----------------------------------------------------------------------------
# Deterministic parameter init (trunc-normal std=0.02; weights in bf16 for MXU,
# biases / LN params in f32)
# ----------------------------------------------------------------------------

def _trunc_normal(key, shape, std=0.02):
    return std * jax.random.truncated_normal(key, -2.0, 2.0, shape, jnp.float32)


def init_layer_params(key, dim, hidden):
    ks = jax.random.split(key, 8)
    ones = jnp.ones((1, dim), jnp.float32)
    zeros = jnp.zeros((1, dim), jnp.float32)

    def w(k, shape):
        return _trunc_normal(k, shape).astype(jnp.bfloat16)

    wk = _trunc_normal(ks[1], (dim, dim))
    wv = _trunc_normal(ks[2], (dim, dim))
    return dict(
        norm_q_g=ones, norm_q_b=zeros,
        norm_kv_g=ones, norm_kv_b=zeros,
        mhca_ln_g=ones, mhca_ln_b=zeros,
        mhca_wq=w(ks[0], (dim, dim)), mhca_bq=zeros,
        # K and V projections share the same input -> merged (D, 2D) weight.
        mhca_wkv=jnp.concatenate([wk, wv], axis=1).astype(jnp.bfloat16),
        mhca_bkv=jnp.zeros((1, 2 * dim), jnp.float32),
        mhca_wo=w(ks[3], (dim, dim)), mhca_bo=zeros,
        norm_self_g=ones, norm_self_b=zeros,
        mhsa_wqkv=w(ks[4], (dim, 3 * dim)),
        mhsa_bqkv=jnp.zeros((1, 3 * dim), jnp.float32),
        mhsa_wo=w(ks[5], (dim, dim)), mhsa_bo=zeros,
        norm_ff_g=ones, norm_ff_b=zeros,
        # NOTE: FeedForward(dim, ffn_expansion_factor) in the reference uses the
        # expansion factor *directly* as the hidden width (not dim * factor).
        ff_w1=w(ks[6], (dim, hidden)),
        ff_b1=jnp.zeros((1, hidden), jnp.float32),
        ff_w2=w(ks[7], (hidden, dim)),
        ff_b2=zeros,
    )


def init_params(key, dim, num_layers, ffn_expansion_factor=4):
    keys = jax.random.split(key, num_layers)
    return dict(
        layers=[init_layer_params(k, dim, ffn_expansion_factor) for k in keys],
        final_ln_g=jnp.ones((1, dim), jnp.float32),
        final_ln_b=jnp.zeros((1, dim), jnp.float32),
    )


# ----------------------------------------------------------------------------

if __name__ == "__main__":
    # Small but lane-friendly demo shapes: D multiple of 128, head_dim=32.
    B, DIM, HEADS, LAYERS = 2, 128, 4, 2
    NUM_PATCHES, NUM_QUERIES, TEXT_LEN = 16, 8, 8
    FFN_HIDDEN = 128   # FeedForward(dim, factor): hidden width == factor (per spec)

    root = jax.random.PRNGKey(0)
    k_img, k_qry, k_txt, k_par = jax.random.split(root, 4)

    image_features = jax.random.normal(k_img, (B, NUM_PATCHES, DIM), jnp.float32)
    queries = jax.random.normal(k_qry, (B, NUM_QUERIES, DIM), jnp.float32)
    text_embeddings = jax.random.normal(k_txt, (B, TEXT_LEN, DIM), jnp.float32)

    params = init_params(k_par, DIM, LAYERS, ffn_expansion_factor=FFN_HIDDEN)

    _buffered1_supported()   # resolve the Buffered(1) probe before jit tracing

    fwd = jax.jit(functools.partial(cross_modal_transformer, num_heads=HEADS))
    out_queries, out_text = fwd(params, image_features, queries, text_embeddings)

    jax.block_until_ready(out_queries)
    jax.block_until_ready(out_text)

    assert out_queries.shape == (B, NUM_QUERIES, DIM)
    assert out_text.shape == (B, TEXT_LEN, DIM)
    assert bool(jnp.all(jnp.isfinite(out_queries)))
    assert bool(jnp.all(jnp.isfinite(out_text)))

    print("KERNEL_OK")
</pallas_src>

<mosaic_0001>
module attributes {stable_mosaic.version = 11 : i64} {
  func.func @_k(%arg0: i32, %arg1: memref<8x128xf32, #tpu.memory_space<vmem>>, %arg2: memref<8x128xf32, #tpu.memory_space<vmem>>) attributes {dimension_semantics = [#tpu.dimension_semantics<arbitrary>], iteration_bounds = array<i64: 2>, scalar_prefetch = 0 : i64, scratch_operands = 0 : i64, tpu.core_type = #tpu.core_type<tc>, window_params = [{pipeline_mode = #tpu.pipeline_mode<synchronous>, transform_indices = @transform_0, window_bounds = array<i64: 8, 128>}, {transform_indices = @transform_1, window_bounds = array<i64: 8, 128>}]} {
    %c0 = arith.constant 0 : index
    %c0_0 = arith.constant 0 : index
    %0 = vector.load %arg1[%c0, %c0_0] : memref<8x128xf32, #tpu.memory_space<vmem>>, vector<8x128xf32>
    %cst = arith.constant 2.000000e+00 : f32
    %1 = vector.broadcast %cst : f32 to vector<8x128xf32>
    %2 = arith.mulf %0, %1 : vector<8x128xf32>
    %c0_1 = arith.constant 0 : index
    %c0_2 = arith.constant 0 : index
    %3 = vector.load %arg2[%c0_1, %c0_2] : memref<8x128xf32, #tpu.memory_space<vmem>>, vector<8x128xf32>
    tpu.vector_store %arg2[%c0_1, %c0_2], %2 {strides = array<i32>} : memref<8x128xf32, #tpu.memory_space<vmem>>, vector<8x128xf32>,
    return
  }
  func.func @transform_0(%arg0: i32) -> (i32, i32) {
    %c0_i32 = arith.constant 0 : i32
    %c0_i32_0 = arith.constant 0 : i32
    %c0_i32_1 = arith.constant 0 : i32
    return %c0_i32, %c0_i32_0 : i32, i32
  }
  func.func @transform_1(%arg0: i32) -> (i32, i32) {
    %c0_i32 = arith.constant 0 : i32
    %c0_i32_0 = arith.constant 0 : i32
    return %arg0, %c0_i32 : i32, i32
  }
}

module attributes {stable_mosaic.version = 11 : i64} {
  func.func @_cross_attn_kernel(%arg0: i32, %arg1: i32, %arg2: memref<1x8x128xf32, #tpu.memory_space<vmem>>, %arg3: memref<1x16x128xf32, #tpu.memory_space<vmem>>, %arg4: memref<1x128xf32, #tpu.memory_space<vmem>>, %arg5: memref<1x128xf32, #tpu.memory_space<vmem>>, %arg6: memref<1x128xf32, #tpu.memory_space<vmem>>, %arg7: memref<1x128xf32, #tpu.memory_space<vmem>>, %arg8: memref<1x128xf32, #tpu.memory_space<vmem>>, %arg9: memref<1x128xf32, #tpu.memory_space<vmem>>, %arg10: memref<128x128xbf16, #tpu.memory_space<vmem>>, %arg11: memref<1x128xf32, #tpu.memory_space<vmem>>, %arg12: memref<128x256xbf16, #tpu.memory_space<vmem>>, %arg13: memref<1x256xf32, #tpu.memory_space<vmem>>, %arg14: memref<128x128xbf16, #tpu.memory_space<vmem>>, %arg15: memref<1x128xf32, #tpu.memory_space<vmem>>, %arg16: memref<1x8x128xf32, #tpu.memory_space<vmem>>, %arg17: memref<8x128xf32, #tpu.memory_space<vmem>>) attributes {dimension_semantics = [#tpu.dimension_semantics<parallel>, #tpu.dimension_semantics<parallel>], iteration_bounds = array<i64: 2, 1>, scalar_prefetch = 0 : i64, scratch_operands = 1 : i64, tpu.core_type = #tpu.core_type<tc>, window_params = [{transform_indices = @transform_0, window_bounds = array<i64: 1, 8, 128>}, {transform_indices = @transform_1, window_bounds = array<i64: 1, 16, 128>}, {pipeline_mode = #tpu.pipeline_mode<synchronous>, transform_indices = @transform_2, window_bounds = array<i64: 1, 128>}, {pipeline_mode = #tpu.pipeline_mode<synchronous>, transform_indices = @transform_3, window_bounds = array<i64: 1, 128>}, {pipeline_mode = #tpu.pipeline_mode<synchronous>, transform_indices = @transform_4, window_bounds = array<i64: 1, 128>}, {pipeline_mode = #tpu.pipeline_mode<synchronous>, transform_indices = @transform_5, window_bounds = array<i64: 1, 128>}, {pipeline_mode = #tpu.pipeline_mode<synchronous>, transform_indices = @transform_6, window_bounds = array<i64: 1, 128>}, {pipeline_mode = #tpu.pipeline_mode<synchronous>, transform_indices = @transform_7, window_bounds = array<i64: 1, 128>}, {pipeline_mode = #tpu.pipeline_mode<synchronous>, transform_indices = @transform_8, window_bounds = array<i64: 128, 128>}, {pipeline_mode = #tpu.pipeline_mode<synchronous>, transform_indices = @transform_9, window_bounds = array<i64: 1, 128>}, {pipeline_mode = #tpu.pipeline_mode<synchronous>, transform_indices = @transform_10, window_bounds = array<i64: 128, 256>}, {pipeline_mode = #tpu.pipeline_mode<synchronous>, transform_indices = @transform_11, window_bounds = array<i64: 1, 256>}, {pipeline_mode = #tpu.pipeline_mode<synchronous>, transform_indices = @transform_12, window_bounds = array<i64: 128, 128>}, {pipeline_mode = #tpu.pipeline_mode<synchronous>, transform_indices = @transform_13, window_bounds = array<i64: 1, 128>}, {transform_indices = @transform_14, window_bounds = array<i64: 1, 8, 128>}]} {
    %c0 = arith.constant 0 : index
    %c0_0 = arith.constant 0 : index
    %c0_1 = arith.constant 0 : index
    %0 = vector.load %arg2[%c0, %c0_0, %c0_1] : memref<1x8x128xf32, #tpu.memory_space<vmem>>, vector<1x8x128xf32>
    %1 = vector.shape_cast %0 : vector<1x8x128xf32> to vector<8x128xf32>
    %c0_2 = arith.constant 0 : index
    %c0_3 = arith.constant 0 : index
    %c0_4 = arith.constant 0 : index
    %2 = vector.load %arg3[%c0_2, %c0_3, %c0_4] : memref<1x16x128xf32, #tpu.memory_space<vmem>>, vector<1x16x128xf32>
    %3 = vector.shape_cast %2 : vector<1x16x128xf32> to vector<16x128xf32>
    %c0_5 = arith.constant 0 : index
    %c0_6 = arith.constant 0 : index
    %4 = vector.load %arg4[%c0_5, %c0_6] : memref<1x128xf32, #tpu.memory_space<vmem>>, vector<1x128xf32>
    %c0_7 = arith.constant 0 : index
    %c0_8 = arith.constant 0 : index
    %5 = vector.load %arg5[%c0_7, %c0_8] : memref<1x128xf32, #tpu.memory_space<vmem>>, vector<1x128xf32>
    %cst = arith.constant dense<0.000000e+00> : vector<8xf32>
    %6 = vector.multi_reduction <add>, %1, %cst [1] : vector<8x128xf32> to vector<8xf32>
    %7 = vector.shape_cast %6 : vector<8xf32> to vector<8x1xf32>
    %cst_9 = arith.constant 1.280000e+02 : f32
    %8 = vector.broadcast %cst_9 : f32 to vector<8x1xf32>
    %9 = arith.divf %7, %8 : vector<8x1xf32>
    %10 = vector.broadcast %9 : vector<8x1xf32> to vector<8x128xf32>
    %11 = arith.subf %1, %10 : vector<8x128xf32>
    %12 = arith.mulf %11, %11 : vector<8x128xf32>
    %cst_10 = arith.constant dense<0.000000e+00> : vector<8xf32>
    %13 = vector.multi_reduction <add>, %12, %cst_10 [1] : vector<8x128xf32> to vector<8xf32>
    %14 = vector.shape_cast %13 : vector<8xf32> to vector<8x1xf32>
    %cst_11 = arith.constant 1.280000e+02 : f32
    %15 = vector.broadcast %cst_11 : f32 to vector<8x1xf32>
    %16 = arith.divf %14, %15 : vector<8x1xf32>
    %17 = vector.broadcast %9 : vector<8x1xf32> to vector<8x128xf32>
    %18 = arith.subf %1, %17 : vector<8x128xf32>
    %cst_12 = arith.constant 9.99999974E-6 : f32
    %19 = vector.broadcast %cst_12 : f32 to vector<8x1xf32>
    %20 = arith.addf %16, %19 : vector<8x1xf32>
    %21 = math.rsqrt %20 : vector<8x1xf32>
    %22 = vector.broadcast %21 : vector<8x1xf32> to vector<8x128xf32>
    %23 = arith.mulf %18, %22 : vector<8x128xf32>
    %24 = vector.broadcast %4 : vector<1x128xf32> to vector<8x128xf32>
    %25 = arith.mulf %23, %24 : vector<8x128xf32>
    %26 = vector.broadcast %5 : vector<1x128xf32> to vector<8x128xf32>
    %27 = arith.addf %25, %26 : vector<8x128xf32>
    %c0_13 = arith.constant 0 : index
    %c0_14 = arith.constant 0 : index
    %28 = vector.load %arg6[%c0_13, %c0_14] : memref<1x128xf32, #tpu.memory_space<vmem>>, vector<1x128xf32>
    %c0_15 = arith.constant 0 : index
    %c0_16 = arith.constant 0 : index
    %29 = vector.load %arg7[%c0_15, %c0_16] : memref<1x128xf32, #tpu.memory_space<vmem>>, vector<1x128xf32>
    %cst_17 = arith.constant dense<0.000000e+00> : vector<16xf32>
    %30 = vector.multi_reduction <add>, %3, %cst_17 [1] : vector<16x128xf32> to vector<16xf32>
    %31 = vector.shape_cast %30 : vector<16xf32> to vector<16x1xf32>
    %cst_18 = arith.constant 1.280000e+02 : f32
    %32 = vector.broadcast %cst_18 : f32 to vector<16x1xf32>
    %33 = arith.divf %31, %32 : vector<16x1xf32>
    %34 = vector.broadcast %33 : vector<16x1xf32> to vector<16x128xf32>
    %35 = arith.subf %3, %34 : vector<16x128xf32>
    %36 = arith.mulf %35, %35 : vector<16x128xf32>
    %cst_19 = arith.constant dense<0.000000e+00> : vector<16xf32>
    %37 = vector.multi_reduction <add>, %36, %cst_19 [1] : vector<16x128xf32> to vector<16xf32>
    %38 = vector.shape_cast %37 : vector<16xf32> to vector<16x1xf32>
    %cst_20 = arith.constant 1.280000e+02 : f32
    %39 = vector.broadcast %cst_20 : f32 to vector<16x1xf32>
    %40 = arith.divf %38, %39 : vector<16x1xf32>
    %41 = vector.broadcast %33 : vector<16x1xf32> to vector<16x128xf32>
    %42 = arith.subf %3, %41 : vector<16x128xf32>
    %cst_21 = arith.constant 9.99999974E-6 : f32
    %43 = vector.broadcast %cst_21 : f32 to vector<16x1xf32>
    %44 = arith.addf %40, %43 : vector<16x1xf32>
    %45 = math.rsqrt %44 : vector<16x1xf32>
    %46 = vector.broadcast %45 : vector<16x1xf32> to vector<16x128xf32>
    %47 = arith.mulf %42, %46 : vector<16x128xf32>
    %48 = vector.broadcast %28 : vector<1x128xf32> to vector<16x128xf32>
    %49 = arith.mulf %47, %48 : vector<16x128xf32>
    %50 = vector.broadcast %29 : vector<1x128xf32> to vector<16x128xf32>
    %51 = arith.addf %49, %50 : vector<16x128xf32>
    %c0_22 = arith.constant 0 : index
    %c0_23 = arith.constant 0 : index
    %52 = vector.load %arg8[%c0_22, %c0_23] : memref<1x128xf32, #tpu.memory_space<vmem>>, vector<1x128xf32>
    %c0_24 = arith.constant 0 : index
    %c0_25 = arith.constant 0 : index
    %53 = vector.load %arg9[%c0_24, %c0_25] : memref<1x128xf32, #tpu.memory_space<vmem>>, vector<1x128xf32>
    %cst_26 = arith.constant dense<0.000000e+00> : vector<8xf32>
    %54 = vector.multi_reduction <add>, %27, %cst_26 [1] : vector<8x128xf32> to vector<8xf32>
    %55 = vector.shape_cast %54 : vector<8xf32> to vector<8x1xf32>
    %cst_27 = arith.constant 1.280000e+02 : f32
    %56 = vector.broadcast %cst_27 : f32 to vector<8x1xf32>
    %57 = arith.divf %55, %56 : vector<8x1xf32>
    %58 = vector.broadcast %57 : vector<8x1xf32> to vector<8x128xf32>
    %59 = arith.subf %27, %58 : vector<8x128xf32>
    %60 = arith.mulf %59, %59 : vector<8x128xf32>
    %cst_28 = arith.constant dense<0.000000e+00> : vector<8xf32>
    %61 = vector.multi_reduction <add>, %60, %cst_28 [1] : vector<8x128xf32> to vector<8xf32>
    %62 = vector.shape_cast %61 : vector<8xf32> to vector<8x1xf32>
    %cst_29 = arith.constant 1.280000e+02 : f32
    %63 = vector.broadcast %cst_29 : f32 to vector<8x1xf32>
    %64 = arith.divf %62, %63 : vector<8x1xf32>
    %65 = vector.broadcast %57 : vector<8x1xf32> to vector<8x128xf32>
    %66 = arith.subf %27, %65 : vector<8x128xf32>
    %cst_30 = arith.constant 9.99999974E-6 : f32
    %67 = vector.broadcast %cst_30 : f32 to vector<8x1xf32>
    %68 = arith.addf %64, %67 : vector<8x1xf32>
    %69 = math.rsqrt %68 : vector<8x1xf32>
    %70 = vector.broadcast %69 : vector<8x1xf32> to vector<8x128xf32>
    %71 = arith.mulf %66, %70 : vector<8x128xf32>
    %72 = vector.broadcast %52 : vector<1x128xf32> to vector<8x128xf32>
    %73 = arith.mulf %71, %72 : vector<8x128xf32>
    %74 = vector.broadcast %53 : vector<1x128xf32> to vector<8x128xf32>
    %75 = arith.addf %73, %74 : vector<8x128xf32>
    %76 = arith.truncf %75 : vector<8x128xf32> to vector<8x128xbf16>
    %c0_31 = arith.constant 0 : index
    %c0_32 = arith.constant 0 : index
    %77 = vector.load %arg10[%c0_31, %c0_32] : memref<128x128xbf16, #tpu.memory_space<vmem>>, vector<128x128xbf16>
    %cst_33 = arith.constant dense<0.000000e+00> : vector<8x128xf32>
    %78 = tpu.matmul %76, %77, %cst_33 {dimension_numbers = #tpu.dot_dimension_numbers<[1], [0], [0], [1], [0, 0, 1, 1], [], []>} : vector<8x128xbf16>, vector<128x128xbf16>, vector<8x128xf32> -> vector<8x128xf32>
    %c0_34 = arith.constant 0 : index
    %c0_35 = arith.constant 0 : index
    %79 = vector.load %arg11[%c0_34, %c0_35] : memref<1x128xf32, #tpu.memory_space<vmem>>, vector<1x128xf32>
    %80 = vector.broadcast %79 : vector<1x128xf32> to vector<8x128xf32>
    %81 = arith.addf %78, %80 : vector<8x128xf32>
    %82 = arith.truncf %51 : vector<16x128xf32> to vector<16x128xbf16>
    %c0_36 = arith.constant 0 : index
    %c0_37 = arith.constant 0 : index
    %83 = vector.load %arg12[%c0_36, %c0_37] : memref<128x256xbf16, #tpu.memory_space<vmem>>, vector<128x256xbf16>
    %cst_38 = arith.constant dense<0.000000e+00> : vector<16x256xf32>
    %84 = tpu.matmul %82, %83, %cst_38 {dimension_numbers = #tpu.dot_dimension_numbers<[1], [0], [0], [1], [0, 0, 1, 1], [], []>} : vector<16x128xbf16>, vector<128x256xbf16>, vector<16x256xf32> -> vector<16x256xf32>
    %c0_39 = arith.constant 0 : index
    %c0_40 = arith.constant 0 : index
    %85 = vector.load %arg13[%c0_39, %c0_40] : memref<1x256xf32, #tpu.memory_space<vmem>>, vector<1x256xf32>
    %86 = vector.broadcast %85 : vector<1x256xf32> to vector<16x256xf32>
    %87 = arith.addf %84, %86 : vector<16x256xf32>
    %cst_41 = arith.constant 0.176776692 : f32
    %88 = vector.broadcast %cst_41 : f32 to vector<8x128xf32>
    %89 = arith.mulf %81, %88 : vector<8x128xf32>
    %90 = vector.extract_strided_slice %87 {offsets = [0, 0], sizes = [16, 128], strides = [1, 1]} : vector<16x256xf32> to vector<16x128xf32>
    %91 = vector.extract_strided_slice %87 {offsets = [0, 128], sizes = [16, 128], strides = [1, 1]} : vector<16x256xf32> to vector<16x128xf32>
    %92 = vector.extract_strided_slice %89 {offsets = [0, 0], sizes = [8, 32], strides = [1, 1]} : vector<8x128xf32> to vector<8x32xf32>
    %93 = arith.truncf %92 : vector<8x32xf32> to vector<8x32xbf16>
    %94 = vector.extract_strided_slice %90 {offsets = [0, 0], sizes = [16, 32], strides = [1, 1]} : vector<16x128xf32> to vector<16x32xf32>
    %95 = arith.truncf %94 : vector<16x32xf32> to vector<16x32xbf16>
    %96 = vector.extract_strided_slice %91 {offsets = [0, 0], sizes = [16, 32], strides = [1, 1]} : vector<16x128xf32> to vector<16x32xf32>
    %97 = arith.truncf %96 : vector<16x32xf32> to vector<16x32xbf16>
    %cst_42 = arith.constant dense<0.000000e+00> : vector<8x16xf32>
    %98 = tpu.matmul %93, %95, %cst_42 {dimension_numbers = #tpu.dot_dimension_numbers<[1], [1], [0], [0], [0, 0, 1, 0], [], []>} : vector<8x32xbf16>, vector<16x32xbf16>, vector<8x16xf32> -> vector<8x16xf32>
    %cst_43 = arith.constant dense<0xFF800000> : vector<8xf32>
    %99 = vector.multi_reduction <maximumf>, %98, %cst_43 [1] : vector<8x16xf32> to vector<8xf32>
    %100 = vector.shape_cast %99 : vector<8xf32> to vector<8x1xf32>
    %101 = vector.broadcast %100 : vector<8x1xf32> to vector<8x16xf32>
    %102 = arith.subf %98, %101 : vector<8x16xf32>
    %103 = math.exp %102 : vector<8x16xf32>
    %cst_44 = arith.constant dense<0.000000e+00> : vector<8xf32>
    %104 = vector.multi_reduction <add>, %103, %cst_44 [1] : vector<8x16xf32> to vector<8xf32>
    %105 = vector.shape_cast %104 : vector<8xf32> to vector<8x1xf32>
    %106 = tpu.reciprocal %105 {approx = true} : vector<8x1xf32> -> vector<8x1xf32>
    %107 = vector.broadcast %106 : vector<8x1xf32> to vector<8x16xf32>
    %108 = arith.mulf %103, %107 : vector<8x16xf32>
    %109 = arith.truncf %108 : vector<8x16xf32> to vector<8x16xbf16>
    %cst_45 = arith.constant dense<0.000000e+00> : vector<8x32xf32>
    %110 = tpu.matmul %109, %97, %cst_45 {dimension_numbers = #tpu.dot_dimension_numbers<[1], [0], [0], [1], [0, 0, 1, 1], [], []>} : vector<8x16xbf16>, vector<16x32xbf16>, vector<8x32xf32> -> vector<8x32xf32>
    %c0_46 = arith.constant 0 : index
    %c0_47 = arith.constant 0 : index
    %111 = vector.load %arg17[%c0_46, %c0_47] : memref<8x128xf32, #tpu.memory_space<vmem>>, vector<8x32xf32>
    tpu.vector_store %arg17[%c0_46, %c0_47], %110 {strides = array<i32>} : memref<8x128xf32, #tpu.memory_space<vmem>>, vector<8x32xf32>,
    %112 = vector.extract_strided_slice %89 {offsets = [0, 32], sizes = [8, 32], strides = [1, 1]} : vector<8x128xf32> to vector<8x32xf32>
    %113 = arith.truncf %112 : vector<8x32xf32> to vector<8x32xbf16>
    %114 = vector.extract_strided_slice %90 {offsets = [0, 32], sizes = [16, 32], strides = [1, 1]} : vector<16x128xf32> to vector<16x32xf32>
    %115 = arith.truncf %114 : vector<16x32xf32> to vector<16x32xbf16>
    %116 = vector.extract_strided_slice %91 {offsets = [0, 32], sizes = [16, 32], strides = [1, 1]} : vector<16x128xf32> to vector<16x32xf32>
    %117 = arith.truncf %116 : vector<16x32xf32> to vector<16x32xbf16>
    %cst_48 = arith.constant dense<0.000000e+00> : vector<8x16xf32>
    %118 = tpu.matmul %113, %115, %cst_48 {dimension_numbers = #tpu.dot_dimension_numbers<[1], [1], [0], [0], [0, 0, 1, 0], [], []>} : vector<8x32xbf16>, vector<16x32xbf16>, vector<8x16xf32> -> vector<8x16xf32>
    %cst_49 = arith.constant dense<0xFF800000> : vector<8xf32>
    %119 = vector.multi_reduction <maximumf>, %118, %cst_49 [1] : vector<8x16xf32> to vector<8xf32>
    %120 = vector.shape_cast %119 : vector<8xf32> to vector<8x1xf32>
    %121 = vector.broadcast %120 : vector<8x1xf32> to vector<8x16xf32>
    %122 = arith.subf %118, %121 : vector<8x16xf32>
    %123 = math.exp %122 : vector<8x16xf32>
    %cst_50 = arith.constant dense<0.000000e+00> : vector<8xf32>
    %124 = vector.multi_reduction <add>, %123, %cst_50 [1] : vector<8x16xf32> to vector<8xf32>
    %125 = vector.shape_cast %124 : vector<8xf32> to vector<8x1xf32>
    %126 = tpu.reciprocal %125 {approx = true} : vector<8x1xf32> -> vector<8x1xf32>
    %127 = vector.broadcast %126 : vector<8x1xf32> to vector<8x16xf32>
    %128 = arith.mulf %123, %127 : vector<8x16xf32>
    %129 = arith.truncf %128 : vector<8x16xf32> to vector<8x16xbf16>
    %cst_51 = arith.constant dense<0.000000e+00> : vector<8x32xf32>
    %130 = tpu.matmul %129, %117, %cst_51 {dimension_numbers = #tpu.dot_dimension_numbers<[1], [0], [0], [1], [0, 0, 1, 1], [], []>} : vector<8x16xbf16>, vector<16x32xbf16>, vector<8x32xf32> -> vector<8x32xf32>
    %c0_52 = arith.constant 0 : index
    %c32 = arith.constant 32 : index
    %131 = vector.load %arg17[%c0_52, %c32] : memref<8x128xf32, #tpu.memory_space<vmem>>, vector<8x32xf32>
    tpu.vector_store %arg17[%c0_52, %c32], %130 {strides = array<i32>} : memref<8x128xf32, #tpu.memory_space<vmem>>, vector<8x32xf32>,
    %132 = vector.extract_strided_slice %89 {offsets = [0, 64], sizes = [8, 32], strides = [1, 1]} : vector<8x128xf32> to vector<8x32xf32>
    %133 = arith.truncf %132 : vector<8x32xf32> to vector<8x32xbf16>
    %134 = vector.extract_strided_slice %90 {offsets = [0, 64], sizes = [16, 32], strides = [1, 1]} : vector<16x128xf32> to vector<16x32xf32>
    %135 = arith.truncf %134 : vector<16x32xf32> to vector<16x32xbf16>
    %136 = vector.extract_strided_slice %91 {offsets = [0, 64], sizes = [16, 32], strides = [1, 1]} : vector<16x128xf32> to vector<16x32xf32>
    %137 = arith.truncf %136 : vector<16x32xf32> to vector<16x32xbf16>
    %cst_53 = arith.constant dense<0.000000e+00> : vector<8x16xf32>
    %138 = tpu.matmul %133, %135, %cst_53 {dimension_numbers = #tpu.dot_dimension_numbers<[1], [1], [0], [0], [0, 0, 1, 0], [], []>} : vector<8x32xbf16>, vector<16x32xbf16>, vector<8x16xf32> -> vector<8x16xf32>
    %cst_54 = arith.constant dense<0xFF800000> : vector<8xf32>
    %139 = vector.multi_reduction <maximumf>, %138, %cst_54 [1] : vector<8x16xf32> to vector<8xf32>
    %140 = vector.shape_cast %139 : vector<8xf32> to vector<8x1xf32>
    %141 = vector.broadcast %140 : vector<8x1xf32> to vector<8x16xf32>
    %142 = arith.subf %138, %141 : vector<8x16xf32>
    %143 = math.exp %142 : vector<8x16xf32>
    %cst_55 = arith.constant dense<0.000000e+00> : vector<8xf32>
    %144 = vector.multi_reduction <add>, %143, %cst_55 [1] : vector<8x16xf32> to vector<8xf32>
    %145 = vector.shape_cast %144 : vector<8xf32> to vector<8x1xf32>
    %146 = tpu.reciprocal %145 {approx = true} : vector<8x1xf32> -> vector<8x1xf32>
    %147 = vector.broadcast %146 : vector<8x1xf32> to vector<8x16xf32>
    %148 = arith.mulf %143, %147 : vector<8x16xf32>
    %149 = arith.truncf %148 : vector<8x16xf32> to vector<8x16xbf16>
    %cst_56 = arith.constant dense<0.000000e+00> : vector<8x32xf32>
    %150 = tpu.matmul %149, %137, %cst_56 {dimension_numbers = #tpu.dot_dimension_numbers<[1], [0], [0], [1], [0, 0, 1, 1], [], []>} : vector<8x16xbf16>, vector<16x32xbf16>, vector<8x32xf32> -> vector<8x32xf32>
    %c0_57 = arith.constant 0 : index
    %c64 = arith.constant 64 : index
    %151 = vector.load %arg17[%c0_57, %c64] : memref<8x128xf32, #tpu.memory_space<vmem>>, vector<8x32xf32>
    tpu.vector_store %arg17[%c0_57, %c64], %150 {strides = array<i32>} : memref<8x128xf32, #tpu.memory_space<vmem>>, vector<8x32xf32>,
    %152 = vector.extract_strided_slice %89 {offsets = [0, 96], sizes = [8, 32], strides = [1, 1]} : vector<8x128xf32> to vector<8x32xf32>
    %153 = arith.truncf %152 : vector<8x32xf32> to vector<8x32xbf16>
    %154 = vector.extract_strided_slice %90 {offsets = [0, 96], sizes = [16, 32], strides = [1, 1]} : vector<16x128xf32> to vector<16x32xf32>
    %155 = arith.truncf %154 : vector<16x32xf32> to vector<16x32xbf16>
    %156 = vector.extract_strided_slice %91 {offsets = [0, 96], sizes = [16, 32], strides = [1, 1]} : vector<16x128xf32> to vector<16x32xf32>
    %157 = arith.truncf %156 : vector<16x32xf32> to vector<16x32xbf16>
    %cst_58 = arith.constant dense<0.000000e+00> : vector<8x16xf32>
    %158 = tpu.matmul %153, %155, %cst_58 {dimension_numbers = #tpu.dot_dimension_numbers<[1], [1], [0], [0], [0, 0, 1, 0], [], []>} : vector<8x32xbf16>, vector<16x32xbf16>, vector<8x16xf32> -> vector<8x16xf32>
    %cst_59 = arith.constant dense<0xFF800000> : vector<8xf32>
    %159 = vector.multi_reduction <maximumf>, %158, %cst_59 [1] : vector<8x16xf32> to vector<8xf32>
    %160 = vector.shape_cast %159 : vector<8xf32> to vector<8x1xf32>
    %161 = vector.broadcast %160 : vector<8x1xf32> to vector<8x16xf32>
    %162 = arith.subf %158, %161 : vector<8x16xf32>
    %163 = math.exp %162 : vector<8x16xf32>
    %cst_60 = arith.constant dense<0.000000e+00> : vector<8xf32>
    %164 = vector.multi_reduction <add>, %163, %cst_60 [1] : vector<8x16xf32> to vector<8xf32>
    %165 = vector.shape_cast %164 : vector<8xf32> to vector<8x1xf32>
    %166 = tpu.reciprocal %165 {approx = true} : vector<8x1xf32> -> vector<8x1xf32>
    %167 = vector.broadcast %166 : vector<8x1xf32> to vector<8x16xf32>
    %168 = arith.mulf %163, %167 : vector<8x16xf32>
    %169 = arith.truncf %168 : vector<8x16xf32> to vector<8x16xbf16>
    %cst_61 = arith.constant dense<0.000000e+00> : vector<8x32xf32>
    %170 = tpu.matmul %169, %157, %cst_61 {dimension_numbers = #tpu.dot_dimension_numbers<[1], [0], [0], [1], [0, 0, 1, 1], [], []>} : vector<8x16xbf16>, vector<16x32xbf16>, vector<8x32xf32> -> vector<8x32xf32>
    %c0_62 = arith.constant 0 : index
    %c96 = arith.constant 96 : index
    %171 = vector.load %arg17[%c0_62, %c96] : memref<8x128xf32, #tpu.memory_space<vmem>>, vector<8x32xf32>
    tpu.vector_store %arg17[%c0_62, %c96], %170 {strides = array<i32>} : memref<8x128xf32, #tpu.memory_space<vmem>>, vector<8x32xf32>,
    %c0_63 = arith.constant 0 : index
    %c0_64 = arith.constant 0 : index
    %172 = vector.load %arg17[%c0_63, %c0_64] : memref<8x128xf32, #tpu.memory_space<vmem>>, vector<8x128xf32>
    %173 = arith.truncf %172 : vector<8x128xf32> to vector<8x128xbf16>
    %c0_65 = arith.constant 0 : index
    %c0_66 = arith.constant 0 : index
    %174 = vector.load %arg14[%c0_65, %c0_66] : memref<128x128xbf16, #tpu.memory_space<vmem>>, vector<128x128xbf16>
    %cst_67 = arith.constant dense<0.000000e+00> : vector<8x128xf32>
    %175 = tpu.matmul %173, %174, %cst_67 {dimension_numbers = #tpu.dot_dimension_numbers<[1], [0], [0], [1], [0, 0, 1, 1], [], []>} : vector<8x128xbf16>, vector<128x128xbf16>, vector<8x128xf32> -> vector<8x128xf32>
    %c0_68 = arith.constant 0 : index
    %c0_69 = arith.constant 0 : index
    %176 = vector.load %arg15[%c0_68, %c0_69] : memref<1x128xf32, #tpu.memory_space<vmem>>, vector<1x128xf32>
    %177 = vector.broadcast %176 : vector<1x128xf32> to vector<8x128xf32>
    %178 = arith.addf %175, %177 : vector<8x128xf32>
    %179 = arith.addf %1, %178 : vector<8x128xf32>
    %c0_70 = arith.constant 0 : index
    %c0_71 = arith.constant 0 : index
    %c0_72 = arith.constant 0 : index
    %180 = vector.load %arg16[%c0_70, %c0_71, %c0_72] : memref<1x8x128xf32, #tpu.memory_space<vmem>>, vector<1x8x128xf32>
    %181 = vector.shape_cast %180 : vector<1x8x128xf32> to vector<8x128xf32>
    %182 = vector.shape_cast %179 : vector<8x128xf32> to vector<1x8x128xf32>
    tpu.vector_store %arg16[%c0_70, %c0_71, %c0_72], %182 {strides = array<i32>} : memref<1x8x128xf32, #tpu.memory_space<vmem>>, vector<1x8x128xf32>,
    return
  }
  func.func @transform_0(%arg0: i32, %arg1: i32) -> (i32, i32, i32) {
    %c0_i32 = arith.constant 0 : i32
    %c0_i32_0 = arith.constant 0 : i32
    return %arg0, %arg1, %c0_i32 : i32, i32, i32
  }
  func.func @transform_1(%arg0: i32, %arg1: i32) -> (i32, i32, i32) {
    %c0_i32 = arith.constant 0 : i32
    %c0_i32_0 = arith.constant 0 : i32
    %c0_i32_1 = arith.constant 0 : i32
    return %arg0, %c0_i32, %c0_i32_0 : i32, i32, i32
  }
  func.func @transform_2(%arg0: i32, %arg1: i32) -> (i32, i32) {
    %c0_i32 = arith.constant 0 : i32
    %c0_i32_0 = arith.constant 0 : i32
    %c0_i32_1 = arith.constant 0 : i32
    return %c0_i32, %c0_i32_0 : i32, i32
  }
  func.func @transform_3(%arg0: i32, %arg1: i32) -> (i32, i32) {
    %c0_i32 = arith.constant 0 : i32
    %c0_i32_0 = arith.constant 0 : i32
    %c0_i32_1 = arith.constant 0 : i32
    return %c0_i32, %c0_i32_0 : i32, i32
  }
  func.func @transform_4(%arg0: i32, %arg1: i32) -> (i32, i32) {
    %c0_i32 = arith.constant 0 : i32
    %c0_i32_0 = arith.constant 0 : i32
    %c0_i32_1 = arith.constant 0 : i32
    return %c0_i32, %c0_i32_0 : i32, i32
  }
  func.func @transform_5(%arg0: i32, %arg1: i32) -> (i32, i32) {
    %c0_i32 = arith.constant 0 : i32
    %c0_i32_0 = arith.constant 0 : i32
    %c0_i32_1 = arith.constant 0 : i32
    return %c0_i32, %c0_i32_0 : i32, i32
  }
  func.func @transform_6(%arg0: i32, %arg1: i32) -> (i32, i32) {
    %c0_i32 = arith.constant 0 : i32
    %c0_i32_0 = arith.constant 0 : i32
    %c0_i32_1 = arith.constant 0 : i32
    return %c0_i32, %c0_i32_0 : i32, i32
  }
  func.func @transform_7(%arg0: i32, %arg1: i32) -> (i32, i32) {
    %c0_i32 = arith.constant 0 : i32
    %c0_i32_0 = arith.constant 0 : i32
    %c0_i32_1 = arith.constant 0 : i32
    return %c0_i32, %c0_i32_0 : i32, i32
  }
  func.func @transform_8(%arg0: i32, %arg1: i32) -> (i32, i32) {
    %c0_i32 = arith.constant 0 : i32
    %c0_i32_0 = arith.constant 0 : i32
    %c0_i32_1 = arith.constant 0 : i32
    return %c0_i32, %c0_i32_0 : i32, i32
  }
  func.func @transform_9(%arg0: i32, %arg1: i32) -> (i32, i32) {
    %c0_i32 = arith.constant 0 : i32
    %c0_i32_0 = arith.constant 0 : i32
    %c0_i32_1 = arith.constant 0 : i32
    return %c0_i32, %c0_i32_0 : i32, i32
  }
  func.func @transform_10(%arg0: i32, %arg1: i32) -> (i32, i32) {
    %c0_i32 = arith.constant 0 : i32
    %c0_i32_0 = arith.constant 0 : i32
    %c0_i32_1 = arith.constant 0 : i32
    return %c0_i32, %c0_i32_0 : i32, i32
  }
  func.func @transform_11(%arg0: i32, %arg1: i32) -> (i32, i32) {
    %c0_i32 = arith.constant 0 : i32
    %c0_i32_0 = arith.constant 0 : i32
    %c0_i32_1 = arith.constant 0 : i32
    return %c0_i32, %c0_i32_0 : i32, i32
  }
  func.func @transform_12(%arg0: i32, %arg1: i32) -> (i32, i32) {
    %c0_i32 = arith.constant 0 : i32
    %c0_i32_0 = arith.constant 0 : i32
    %c0_i32_1 = arith.constant 0 : i32
    return %c0_i32, %c0_i32_0 : i32, i32
  }
  func.func @transform_13(%arg0: i32, %arg1: i32) -> (i32, i32) {
    %c0_i32 = arith.constant 0 : i32
    %c0_i32_0 = arith.constant 0 : i32
    %c0_i32_1 = arith.constant 0 : i32
    return %c0_i32, %c0_i32_0 : i32, i32
  }
  func.func @transform_14(%arg0: i32, %arg1: i32) -> (i32, i32, i32) {
    %c0_i32 = arith.constant 0 : i32
    %c0_i32_0 = arith.constant 0 : i32
    return %arg0, %arg1, %c0_i32 : i32, i32, i32
  }
}

module attributes {stable_mosaic.version = 11 : i64} {
  func.func @_self_attn_ffn_kernel(%arg0: i32, %arg1: memref<1x16x128xf32, #tpu.memory_space<vmem>>, %arg2: memref<1x128xf32, #tpu.memory_space<vmem>>, %arg3: memref<1x128xf32, #tpu.memory_space<vmem>>, %arg4: memref<128x384xbf16, #tpu.memory_space<vmem>>, %arg5: memref<1x384xf32, #tpu.memory_space<vmem>>, %arg6: memref<128x128xbf16, #tpu.memory_space<vmem>>, %arg7: memref<1x128xf32, #tpu.memory_space<vmem>>, %arg8: memref<1x128xf32, #tpu.memory_space<vmem>>, %arg9: memref<1x128xf32, #tpu.memory_space<vmem>>, %arg10: memref<128x128xbf16, #tpu.memory_space<vmem>>, %arg11: memref<1x128xf32, #tpu.memory_space<vmem>>, %arg12: memref<128x128xbf16, #tpu.memory_space<vmem>>, %arg13: memref<1x128xf32, #tpu.memory_space<vmem>>, %arg14: memref<1x16x128xf32, #tpu.memory_space<vmem>>, %arg15: memref<16x128xf32, #tpu.memory_space<vmem>>) attributes {dimension_semantics = [#tpu.dimension_semantics<parallel>], iteration_bounds = array<i64: 2>, scalar_prefetch = 0 : i64, scratch_operands = 1 : i64, tpu.core_type = #tpu.core_type<tc>, window_params = [{transform_indices = @transform_0, window_bounds = array<i64: 1, 16, 128>}, {pipeline_mode = #tpu.pipeline_mode<synchronous>, transform_indices = @transform_1, window_bounds = array<i64: 1, 128>}, {pipeline_mode = #tpu.pipeline_mode<synchronous>, transform_indices = @transform_2, window_bounds = array<i64: 1, 128>}, {pipeline_mode = #tpu.pipeline_mode<synchronous>, transform_indices = @transform_3, window_bounds = array<i64: 128, 384>}, {pipeline_mode = #tpu.pipeline_mode<synchronous>, transform_indices = @transform_4, window_bounds = array<i64: 1, 384>}, {pipeline_mode = #tpu.pipeline_mode<synchronous>, transform_indices = @transform_5, window_bounds = array<i64: 128, 128>}, {pipeline_mode = #tpu.pipeline_mode<synchronous>, transform_indices = @transform_6, window_bounds = array<i64: 1, 128>}, {pipeline_mode = #tpu.pipeline_mode<synchronous>, transform_indices = @transform_7, window_bounds = array<i64: 1, 128>}, {pipeline_mode = #tpu.pipeline_mode<synchronous>, transform_indices = @transform_8, window_bounds = array<i64: 1, 128>}, {pipeline_mode = #tpu.pipeline_mode<synchronous>, transform_indices = @transform_9, window_bounds = array<i64: 128, 128>}, {pipeline_mode = #tpu.pipeline_mode<synchronous>, transform_indices = @transform_10, window_bounds = array<i64: 1, 128>}, {pipeline_mode = #tpu.pipeline_mode<synchronous>, transform_indices = @transform_11, window_bounds = array<i64: 128, 128>}, {pipeline_mode = #tpu.pipeline_mode<synchronous>, transform_indices = @transform_12, window_bounds = array<i64: 1, 128>}, {transform_indices = @transform_13, window_bounds = array<i64: 1, 16, 128>}]} {
    %c0 = arith.constant 0 : index
    %c0_0 = arith.constant 0 : index
    %c0_1 = arith.constant 0 : index
    %0 = vector.load %arg1[%c0, %c0_0, %c0_1] : memref<1x16x128xf32, #tpu.memory_space<vmem>>, vector<1x16x128xf32>
    %1 = vector.shape_cast %0 : vector<1x16x128xf32> to vector<16x128xf32>
    %c0_2 = arith.constant 0 : index
    %c0_3 = arith.constant 0 : index
    %2 = vector.load %arg2[%c0_2, %c0_3] : memref<1x128xf32, #tpu.memory_space<vmem>>, vector<1x128xf32>
    %c0_4 = arith.constant 0 : index
    %c0_5 = arith.constant 0 : index
    %3 = vector.load %arg3[%c0_4, %c0_5] : memref<1x128xf32, #tpu.memory_space<vmem>>, vector<1x128xf32>
    %cst = arith.constant dense<0.000000e+00> : vector<16xf32>
    %4 = vector.multi_reduction <add>, %1, %cst [1] : vector<16x128xf32> to vector<16xf32>
    %5 = vector.shape_cast %4 : vector<16xf32> to vector<16x1xf32>
    %cst_6 = arith.constant 1.280000e+02 : f32
    %6 = vector.broadcast %cst_6 : f32 to vector<16x1xf32>
    %7 = arith.divf %5, %6 : vector<16x1xf32>
    %8 = vector.broadcast %7 : vector<16x1xf32> to vector<16x128xf32>
    %9 = arith.subf %1, %8 : vector<16x128xf32>
    %10 = arith.mulf %9, %9 : vector<16x128xf32>
    %cst_7 = arith.constant dense<0.000000e+00> : vector<16xf32>
    %11 = vector.multi_reduction <add>, %10, %cst_7 [1] : vector<16x128xf32> to vector<16xf32>
    %12 = vector.shape_cast %11 : vector<16xf32> to vector<16x1xf32>
    %cst_8 = arith.constant 1.280000e+02 : f32
    %13 = vector.broadcast %cst_8 : f32 to vector<16x1xf32>
    %14 = arith.divf %12, %13 : vector<16x1xf32>
    %15 = vector.broadcast %7 : vector<16x1xf32> to vector<16x128xf32>
    %16 = arith.subf %1, %15 : vector<16x128xf32>
    %cst_9 = arith.constant 9.99999974E-6 : f32
    %17 = vector.broadcast %cst_9 : f32 to vector<16x1xf32>
    %18 = arith.addf %14, %17 : vector<16x1xf32>
    %19 = math.rsqrt %18 : vector<16x1xf32>
    %20 = vector.broadcast %19 : vector<16x1xf32> to vector<16x128xf32>
    %21 = arith.mulf %16, %20 : vector<16x128xf32>
    %22 = vector.broadcast %2 : vector<1x128xf32> to vector<16x128xf32>
    %23 = arith.mulf %21, %22 : vector<16x128xf32>
    %24 = vector.broadcast %3 : vector<1x128xf32> to vector<16x128xf32>
    %25 = arith.addf %23, %24 : vector<16x128xf32>
    %26 = arith.truncf %25 : vector<16x128xf32> to vector<16x128xbf16>
    %c0_10 = arith.constant 0 : index
    %c0_11 = arith.constant 0 : index
    %27 = vector.load %arg4[%c0_10, %c0_11] : memref<128x384xbf16, #tpu.memory_space<vmem>>, vector<128x384xbf16>
    %cst_12 = arith.constant dense<0.000000e+00> : vector<16x384xf32>
    %28 = tpu.matmul %26, %27, %cst_12 {dimension_numbers = #tpu.dot_dimension_numbers<[1], [0], [0], [1], [0, 0, 1, 1], [], []>} : vector<16x128xbf16>, vector<128x384xbf16>, vector<16x384xf32> -> vector<16x384xf32>
    %c0_13 = arith.constant 0 : index
    %c0_14 = arith.constant 0 : index
    %29 = vector.load %arg5[%c0_13, %c0_14] : memref<1x384xf32, #tpu.memory_space<vmem>>, vector<1x384xf32>
    %30 = vector.broadcast %29 : vector<1x384xf32> to vector<16x384xf32>
    %31 = arith.addf %28, %30 : vector<16x384xf32>
    %32 = vector.extract_strided_slice %31 {offsets = [0, 0], sizes = [16, 128], strides = [1, 1]} : vector<16x384xf32> to vector<16x128xf32>
    %cst_15 = arith.constant 0.176776692 : f32
    %33 = vector.broadcast %cst_15 : f32 to vector<16x128xf32>
    %34 = arith.mulf %32, %33 : vector<16x128xf32>
    %35 = vector.extract_strided_slice %31 {offsets = [0, 128], sizes = [16, 128], strides = [1, 1]} : vector<16x384xf32> to vector<16x128xf32>
    %36 = vector.extract_strided_slice %31 {offsets = [0, 256], sizes = [16, 128], strides = [1, 1]} : vector<16x384xf32> to vector<16x128xf32>
    %37 = vector.extract_strided_slice %34 {offsets = [0, 0], sizes = [16, 32], strides = [1, 1]} : vector<16x128xf32> to vector<16x32xf32>
    %38 = arith.truncf %37 : vector<16x32xf32> to vector<16x32xbf16>
    %39 = vector.extract_strided_slice %35 {offsets = [0, 0], sizes = [16, 32], strides = [1, 1]} : vector<16x128xf32> to vector<16x32xf32>
    %40 = arith.truncf %39 : vector<16x32xf32> to vector<16x32xbf16>
    %41 = vector.extract_strided_slice %36 {offsets = [0, 0], sizes = [16, 32], strides = [1, 1]} : vector<16x128xf32> to vector<16x32xf32>
    %42 = arith.truncf %41 : vector<16x32xf32> to vector<16x32xbf16>
    %cst_16 = arith.constant dense<0.000000e+00> : vector<16x16xf32>
    %43 = tpu.matmul %38, %40, %cst_16 {dimension_numbers = #tpu.dot_dimension_numbers<[1], [1], [0], [0], [0, 0, 1, 0], [], []>} : vector<16x32xbf16>, vector<16x32xbf16>, vector<16x16xf32> -> vector<16x16xf32>
    %cst_17 = arith.constant dense<0xFF800000> : vector<16xf32>
    %44 = vector.multi_reduction <maximumf>, %43, %cst_17 [1] : vector<16x16xf32> to vector<16xf32>
    %45 = vector.shape_cast %44 : vector<16xf32> to vector<16x1xf32>
    %46 = vector.broadcast %45 : vector<16x1xf32> to vector<16x16xf32>
    %47 = arith.subf %43, %46 : vector<16x16xf32>
    %48 = math.exp %47 : vector<16x16xf32>
    %cst_18 = arith.constant dense<0.000000e+00> : vector<16xf32>
    %49 = vector.multi_reduction <add>, %48, %cst_18 [1] : vector<16x16xf32> to vector<16xf32>
    %50 = vector.shape_cast %49 : vector<16xf32> to vector<16x1xf32>
    %51 = tpu.reciprocal %50 {approx = true} : vector<16x1xf32> -> vector<16x1xf32>
    %52 = vector.broadcast %51 : vector<16x1xf32> to vector<16x16xf32>
    %53 = arith.mulf %48, %52 : vector<16x16xf32>
    %54 = arith.truncf %53 : vector<16x16xf32> to vector<16x16xbf16>
    %cst_19 = arith.constant dense<0.000000e+00> : vector<16x32xf32>
    %55 = tpu.matmul %54, %42, %cst_19 {dimension_numbers = #tpu.dot_dimension_numbers<[1], [0], [0], [1], [0, 0, 1, 1], [], []>} : vector<16x16xbf16>, vector<16x32xbf16>, vector<16x32xf32> -> vector<16x32xf32>
    %c0_20 = arith.constant 0 : index
    %c0_21 = arith.constant 0 : index
    %56 = vector.load %arg15[%c0_20, %c0_21] : memref<16x128xf32, #tpu.memory_space<vmem>>, vector<16x32xf32>
    tpu.vector_store %arg15[%c0_20, %c0_21], %55 {strides = array<i32>} : memref<16x128xf32, #tpu.memory_space<vmem>>, vector<16x32xf32>,
    %57 = vector.extract_strided_slice %34 {offsets = [0, 32], sizes = [16, 32], strides = [1, 1]} : vector<16x128xf32> to vector<16x32xf32>
    %58 = arith.truncf %57 : vector<16x32xf32> to vector<16x32xbf16>
    %59 = vector.extract_strided_slice %35 {offsets = [0, 32], sizes = [16, 32], strides = [1, 1]} : vector<16x128xf32> to vector<16x32xf32>
    %60 = arith.truncf %59 : vector<16x32xf32> to vector<16x32xbf16>
    %61 = vector.extract_strided_slice %36 {offsets = [0, 32], sizes = [16, 32], strides = [1, 1]} : vector<16x128xf32> to vector<16x32xf32>
    %62 = arith.truncf %61 : vector<16x32xf32> to vector<16x32xbf16>
    %cst_22 = arith.constant dense<0.000000e+00> : vector<16x16xf32>
    %63 = tpu.matmul %58, %60, %cst_22 {dimension_numbers = #tpu.dot_dimension_numbers<[1], [1], [0], [0], [0, 0, 1, 0], [], []>} : vector<16x32xbf16>, vector<16x32xbf16>, vector<16x16xf32> -> vector<16x16xf32>
    %cst_23 = arith.constant dense<0xFF800000> : vector<16xf32>
    %64 = vector.multi_reduction <maximumf>, %63, %cst_23 [1] : vector<16x16xf32> to vector<16xf32>
    %65 = vector.shape_cast %64 : vector<16xf32> to vector<16x1xf32>
    %66 = vector.broadcast %65 : vector<16x1xf32> to vector<16x16xf32>
    %67 = arith.subf %63, %66 : vector<16x16xf32>
    %68 = math.exp %67 : vector<16x16xf32>
    %cst_24 = arith.constant dense<0.000000e+00> : vector<16xf32>
    %69 = vector.multi_reduction <add>, %68, %cst_24 [1] : vector<16x16xf32> to vector<16xf32>
    %70 = vector.shape_cast %69 : vector<16xf32> to vector<16x1xf32>
    %71 = tpu.reciprocal %70 {approx = true} : vector<16x1xf32> -> vector<16x1xf32>
    %72 = vector.broadcast %71 : vector<16x1xf32> to vector<16x16xf32>
    %73 = arith.mulf %68, %72 : vector<16x16xf32>
    %74 = arith.truncf %73 : vector<16x16xf32> to vector<16x16xbf16>
    %cst_25 = arith.constant dense<0.000000e+00> : vector<16x32xf32>
    %75 = tpu.matmul %74, %62, %cst_25 {dimension_numbers = #tpu.dot_dimension_numbers<[1], [0], [0], [1], [0, 0, 1, 1], [], []>} : vector<16x16xbf16>, vector<16x32xbf16>, vector<16x32xf32> -> vector<16x32xf32>
    %c0_26 = arith.constant 0 : index
    %c32 = arith.constant 32 : index
    %76 = vector.load %arg15[%c0_26, %c32] : memref<16x128xf32, #tpu.memory_space<vmem>>, vector<16x32xf32>
    tpu.vector_store %arg15[%c0_26, %c32], %75 {strides = array<i32>} : memref<16x128xf32, #tpu.memory_space<vmem>>, vector<16x32xf32>,
    %77 = vector.extract_strided_slice %34 {offsets = [0, 64], sizes = [16, 32], strides = [1, 1]} : vector<16x128xf32> to vector<16x32xf32>
    %78 = arith.truncf %77 : vector<16x32xf32> to vector<16x32xbf16>
    %79 = vector.extract_strided_slice %35 {offsets = [0, 64], sizes = [16, 32], strides = [1, 1]} : vector<16x128xf32> to vector<16x32xf32>
    %80 = arith.truncf %79 : vector<16x32xf32> to vector<16x32xbf16>
    %81 = vector.extract_strided_slice %36 {offsets = [0, 64], sizes = [16, 32], strides = [1, 1]} : vector<16x128xf32> to vector<16x32xf32>
    %82 = arith.truncf %81 : vector<16x32xf32> to vector<16x32xbf16>
    %cst_27 = arith.constant dense<0.000000e+00> : vector<16x16xf32>
    %83 = tpu.matmul %78, %80, %cst_27 {dimension_numbers = #tpu.dot_dimension_numbers<[1], [1], [0], [0], [0, 0, 1, 0], [], []>} : vector<16x32xbf16>, vector<16x32xbf16>, vector<16x16xf32> -> vector<16x16xf32>
    %cst_28 = arith.constant dense<0xFF800000> : vector<16xf32>
    %84 = vector.multi_reduction <maximumf>, %83, %cst_28 [1] : vector<16x16xf32> to vector<16xf32>
    %85 = vector.shape_cast %84 : vector<16xf32> to vector<16x1xf32>
    %86 = vector.broadcast %85 : vector<16x1xf32> to vector<16x16xf32>
    %87 = arith.subf %83, %86 : vector<16x16xf32>
    %88 = math.exp %87 : vector<16x16xf32>
    %cst_29 = arith.constant dense<0.000000e+00> : vector<16xf32>
    %89 = vector.multi_reduction <add>, %88, %cst_29 [1] : vector<16x16xf32> to vector<16xf32>
    %90 = vector.shape_cast %89 : vector<16xf32> to vector<16x1xf32>
    %91 = tpu.reciprocal %90 {approx = true} : vector<16x1xf32> -> vector<16x1xf32>
    %92 = vector.broadcast %91 : vector<16x1xf32> to vector<16x16xf32>
    %93 = arith.mulf %88, %92 : vector<16x16xf32>
    %94 = arith.truncf %93 : vector<16x16xf32> to vector<16x16xbf16>
    %cst_30 = arith.constant dense<0.000000e+00> : vector<16x32xf32>
    %95 = tpu.matmul %94, %82, %cst_30 {dimension_numbers = #tpu.dot_dimension_numbers<[1], [0], [0], [1], [0, 0, 1, 1], [], []>} : vector<16x16xbf16>, vector<16x32xbf16>, vector<16x32xf32> -> vector<16x32xf32>
    %c0_31 = arith.constant 0 : index
    %c64 = arith.constant 64 : index
    %96 = vector.load %arg15[%c0_31, %c64] : memref<16x128xf32, #tpu.memory_space<vmem>>, vector<16x32xf32>
    tpu.vector_store %arg15[%c0_31, %c64], %95 {strides = array<i32>} : memref<16x128xf32, #tpu.memory_space<vmem>>, vector<16x32xf32>,
    %97 = vector.extract_strided_slice %34 {offsets = [0, 96], sizes = [16, 32], strides = [1, 1]} : vector<16x128xf32> to vector<16x32xf32>
    %98 = arith.truncf %97 : vector<16x32xf32> to vector<16x32xbf16>
    %99 = vector.extract_strided_slice %35 {offsets = [0, 96], sizes = [16, 32], strides = [1, 1]} : vector<16x128xf32> to vector<16x32xf32>
    %100 = arith.truncf %99 : vector<16x32xf32> to vector<16x32xbf16>
    %101 = vector.extract_strided_slice %36 {offsets = [0, 96], sizes = [16, 32], strides = [1, 1]} : vector<16x128xf32> to vector<16x32xf32>
    %102 = arith.truncf %101 : vector<16x32xf32> to vector<16x32xbf16>
    %cst_32 = arith.constant dense<0.000000e+00> : vector<16x16xf32>
    %103 = tpu.matmul %98, %100, %cst_32 {dimension_numbers = #tpu.dot_dimension_numbers<[1], [1], [0], [0], [0, 0, 1, 0], [], []>} : vector<16x32xbf16>, vector<16x32xbf16>, vector<16x16xf32> -> vector<16x16xf32>
    %cst_33 = arith.constant dense<0xFF800000> : vector<16xf32>
    %104 = vector.multi_reduction <maximumf>, %103, %cst_33 [1] : vector<16x16xf32> to vector<16xf32>
    %105 = vector.shape_cast %104 : vector<16xf32> to vector<16x1xf32>
    %106 = vector.broadcast %105 : vector<16x1xf32> to vector<16x16xf32>
    %107 = arith.subf %103, %106 : vector<16x16xf32>
    %108 = math.exp %107 : vector<16x16xf32>
    %cst_34 = arith.constant dense<0.000000e+00> : vector<16xf32>
    %109 = vector.multi_reduction <add>, %108, %cst_34 [1] : vector<16x16xf32> to vector<16xf32>
    %110 = vector.shape_cast %109 : vector<16xf32> to vector<16x1xf32>
    %111 = tpu.reciprocal %110 {approx = true} : vector<16x1xf32> -> vector<16x1xf32>
    %112 = vector.broadcast %111 : vector<16x1xf32> to vector<16x16xf32>
    %113 = arith.mulf %108, %112 : vector<16x16xf32>
    %114 = arith.truncf %113 : vector<16x16xf32> to vector<16x16xbf16>
    %cst_35 = arith.constant dense<0.000000e+00> : vector<16x32xf32>
    %115 = tpu.matmul %114, %102, %cst_35 {dimension_numbers = #tpu.dot_dimension_numbers<[1], [0], [0], [1], [0, 0, 1, 1], [], []>} : vector<16x16xbf16>, vector<16x32xbf16>, vector<16x32xf32> -> vector<16x32xf32>
    %c0_36 = arith.constant 0 : index
    %c96 = arith.constant 96 : index
    %116 = vector.load %arg15[%c0_36, %c96] : memref<16x128xf32, #tpu.memory_space<vmem>>, vector<16x32xf32>
    tpu.vector_store %arg15[%c0_36, %c96], %115 {strides = array<i32>} : memref<16x128xf32, #tpu.memory_space<vmem>>, vector<16x32xf32>,
    %c0_37 = arith.constant 0 : index
    %c0_38 = arith.constant 0 : index
    %117 = vector.load %arg15[%c0_37, %c0_38] : memref<16x128xf32, #tpu.memory_space<vmem>>, vector<16x128xf32>
    %118 = arith.truncf %117 : vector<16x128xf32> to vector<16x128xbf16>
    %c0_39 = arith.constant 0 : index
    %c0_40 = arith.constant 0 : index
    %119 = vector.load %arg6[%c0_39, %c0_40] : memref<128x128xbf16, #tpu.memory_space<vmem>>, vector<128x128xbf16>
    %cst_41 = arith.constant dense<0.000000e+00> : vector<16x128xf32>
    %120 = tpu.matmul %118, %119, %cst_41 {dimension_numbers = #tpu.dot_dimension_numbers<[1], [0], [0], [1], [0, 0, 1, 1], [], []>} : vector<16x128xbf16>, vector<128x128xbf16>, vector<16x128xf32> -> vector<16x128xf32>
    %c0_42 = arith.constant 0 : index
    %c0_43 = arith.constant 0 : index
    %121 = vector.load %arg7[%c0_42, %c0_43] : memref<1x128xf32, #tpu.memory_space<vmem>>, vector<1x128xf32>
    %122 = vector.broadcast %121 : vector<1x128xf32> to vector<16x128xf32>
    %123 = arith.addf %120, %122 : vector<16x128xf32>
    %124 = arith.addf %1, %123 : vector<16x128xf32>
    %c0_44 = arith.constant 0 : index
    %c0_45 = arith.constant 0 : index
    %125 = vector.load %arg8[%c0_44, %c0_45] : memref<1x128xf32, #tpu.memory_space<vmem>>, vector<1x128xf32>
    %c0_46 = arith.constant 0 : index
    %c0_47 = arith.constant 0 : index
    %126 = vector.load %arg9[%c0_46, %c0_47] : memref<1x128xf32, #tpu.memory_space<vmem>>, vector<1x128xf32>
    %cst_48 = arith.constant dense<0.000000e+00> : vector<16xf32>
    %127 = vector.multi_reduction <add>, %124, %cst_48 [1] : vector<16x128xf32> to vector<16xf32>
    %128 = vector.shape_cast %127 : vector<16xf32> to vector<16x1xf32>
    %cst_49 = arith.constant 1.280000e+02 : f32
    %129 = vector.broadcast %cst_49 : f32 to vector<16x1xf32>
    %130 = arith.divf %128, %129 : vector<16x1xf32>
    %131 = vector.broadcast %130 : vector<16x1xf32> to vector<16x128xf32>
    %132 = arith.subf %124, %131 : vector<16x128xf32>
    %133 = arith.mulf %132, %132 : vector<16x128xf32>
    %cst_50 = arith.constant dense<0.000000e+00> : vector<16xf32>
    %134 = vector.multi_reduction <add>, %133, %cst_50 [1] : vector<16x128xf32> to vector<16xf32>
    %135 = vector.shape_cast %134 : vector<16xf32> to vector<16x1xf32>
    %cst_51 = arith.constant 1.280000e+02 : f32
    %136 = vector.broadcast %cst_51 : f32 to vector<16x1xf32>
    %137 = arith.divf %135, %136 : vector<16x1xf32>
    %138 = vector.broadcast %130 : vector<16x1xf32> to vector<16x128xf32>
    %139 = arith.subf %124, %138 : vector<16x128xf32>
    %cst_52 = arith.constant 9.99999974E-6 : f32
    %140 = vector.broadcast %cst_52 : f32 to vector<16x1xf32>
    %141 = arith.addf %137, %140 : vector<16x1xf32>
    %142 = math.rsqrt %141 : vector<16x1xf32>
    %143 = vector.broadcast %142 : vector<16x1xf32> to vector<16x128xf32>
    %144 = arith.mulf %139, %143 : vector<16x128xf32>
    %145 = vector.broadcast %125 : vector<1x128xf32> to vector<16x128xf32>
    %146 = arith.mulf %144, %145 : vector<16x128xf32>
    %147 = vector.broadcast %126 : vector<1x128xf32> to vector<16x128xf32>
    %148 = arith.addf %146, %147 : vector<16x128xf32>
    %149 = arith.truncf %148 : vector<16x128xf32> to vector<16x128xbf16>
    %c0_53 = arith.constant 0 : index
    %c0_54 = arith.constant 0 : index
    %150 = vector.load %arg10[%c0_53, %c0_54] : memref<128x128xbf16, #tpu.memory_space<vmem>>, vector<128x128xbf16>
    %cst_55 = arith.constant dense<0.000000e+00> : vector<16x128xf32>
    %151 = tpu.matmul %149, %150, %cst_55 {dimension_numbers = #tpu.dot_dimension_numbers<[1], [0], [0], [1], [0, 0, 1, 1], [], []>} : vector<16x128xbf16>, vector<128x128xbf16>, vector<16x128xf32> -> vector<16x128xf32>
    %c0_56 = arith.constant 0 : index
    %c0_57 = arith.constant 0 : index
    %152 = vector.load %arg11[%c0_56, %c0_57] : memref<1x128xf32, #tpu.memory_space<vmem>>, vector<1x128xf32>
    %153 = vector.broadcast %152 : vector<1x128xf32> to vector<16x128xf32>
    %154 = arith.addf %151, %153 : vector<16x128xf32>
    %cst_58 = arith.constant 5.000000e-01 : f32
    %155 = vector.broadcast %cst_58 : f32 to vector<16x128xf32>
    %156 = arith.mulf %155, %154 : vector<16x128xf32>
    %cst_59 = arith.constant 0.707106769 : f32
    %157 = vector.broadcast %cst_59 : f32 to vector<16x128xf32>
    %158 = arith.mulf %154, %157 : vector<16x128xf32>
    %159 = math.erf %158 : vector<16x128xf32>
    %cst_60 = arith.constant 1.000000e+00 : f32
    %160 = vector.broadcast %cst_60 : f32 to vector<16x128xf32>
    %161 = arith.addf %160, %159 : vector<16x128xf32>
    %162 = arith.mulf %156, %161 : vector<16x128xf32>
    %163 = arith.truncf %162 : vector<16x128xf32> to vector<16x128xbf16>
    %c0_61 = arith.constant 0 : index
    %c0_62 = arith.constant 0 : index
    %164 = vector.load %arg12[%c0_61, %c0_62] : memref<128x128xbf16, #tpu.memory_space<vmem>>, vector<128x128xbf16>
    %cst_63 = arith.constant dense<0.000000e+00> : vector<16x128xf32>
    %165 = tpu.matmul %163, %164, %cst_63 {dimension_numbers = #tpu.dot_dimension_numbers<[1], [0], [0], [1], [0, 0, 1, 1], [], []>} : vector<16x128xbf16>, vector<128x128xbf16>, vector<16x128xf32> -> vector<16x128xf32>
    %c0_64 = arith.constant 0 : index
    %c0_65 = arith.constant 0 : index
    %166 = vector.load %arg13[%c0_64, %c0_65] : memref<1x128xf32, #tpu.memory_space<vmem>>, vector<1x128xf32>
    %167 = vector.broadcast %166 : vector<1x128xf32> to vector<16x128xf32>
    %168 = arith.addf %165, %167 : vector<16x128xf32>
    %169 = arith.addf %124, %168 : vector<16x128xf32>
    %c0_66 = arith.constant 0 : index
    %c0_67 = arith.constant 0 : index
    %c0_68 = arith.constant 0 : index
    %170 = vector.load %arg14[%c0_66, %c0_67, %c0_68] : memref<1x16x128xf32, #tpu.memory_space<vmem>>, vector<1x16x128xf32>
    %171 = vector.shape_cast %170 : vector<1x16x128xf32> to vector<16x128xf32>
    %172 = vector.shape_cast %169 : vector<16x128xf32> to vector<1x16x128xf32>
    tpu.vector_store %arg14[%c0_66, %c0_67, %c0_68], %172 {strides = array<i32>} : memref<1x16x128xf32, #tpu.memory_space<vmem>>, vector<1x16x128xf32>,
    return
  }
  func.func @transform_0(%arg0: i32) -> (i32, i32, i32) {
    %c0_i32 = arith.constant 0 : i32
    %c0_i32_0 = arith.constant 0 : i32
    %c0_i32_1 = arith.constant 0 : i32
    return %arg0, %c0_i32, %c0_i32_0 : i32, i32, i32
  }
  func.func @transform_1(%arg0: i32) -> (i32, i32) {
    %c0_i32 = arith.constant 0 : i32
    %c0_i32_0 = arith.constant 0 : i32
    %c0_i32_1 = arith.constant 0 : i32
    return %c0_i32, %c0_i32_0 : i32, i32
  }
  func.func @transform_2(%arg0: i32) -> (i32, i32) {
    %c0_i32 = arith.constant 0 : i32
    %c0_i32_0 = arith.constant 0 : i32
    %c0_i32_1 = arith.constant 0 : i32
    return %c0_i32, %c0_i32_0 : i32, i32
  }
  func.func @transform_3(%arg0: i32) -> (i32, i32) {
    %c0_i32 = arith.constant 0 : i32
    %c0_i32_0 = arith.constant 0 : i32
    %c0_i32_1 = arith.constant 0 : i32
    return %c0_i32, %c0_i32_0 : i32, i32
  }
  func.func @transform_4(%arg0: i32) -> (i32, i32) {
    %c0_i32 = arith.constant 0 : i32
    %c0_i32_0 = arith.constant 0 : i32
    %c0_i32_1 = arith.constant 0 : i32
    return %c0_i32, %c0_i32_0 : i32, i32
  }
  func.func @transform_5(%arg0: i32) -> (i32, i32) {
    %c0_i32 = arith.constant 0 : i32
    %c0_i32_0 = arith.constant 0 : i32
    %c0_i32_1 = arith.constant 0 : i32
    return %c0_i32, %c0_i32_0 : i32, i32
  }
  func.func @transform_6(%arg0: i32) -> (i32, i32) {
    %c0_i32 = arith.constant 0 : i32
    %c0_i32_0 = arith.constant 0 : i32
    %c0_i32_1 = arith.constant 0 : i32
    return %c0_i32, %c0_i32_0 : i32, i32
  }
  func.func @transform_7(%arg0: i32) -> (i32, i32) {
    %c0_i32 = arith.constant 0 : i32
    %c0_i32_0 = arith.constant 0 : i32
    %c0_i32_1 = arith.constant 0 : i32
    return %c0_i32, %c0_i32_0 : i32, i32
  }
  func.func @transform_8(%arg0: i32) -> (i32, i32) {
    %c0_i32 = arith.constant 0 : i32
    %c0_i32_0 = arith.constant 0 : i32
    %c0_i32_1 = arith.constant 0 : i32
    return %c0_i32, %c0_i32_0 : i32, i32
  }
  func.func @transform_9(%arg0: i32) -> (i32, i32) {
    %c0_i32 = arith.constant 0 : i32
    %c0_i32_0 = arith.constant 0 : i32
    %c0_i32_1 = arith.constant 0 : i32
    return %c0_i32, %c0_i32_0 : i32, i32
  }
  func.func @transform_10(%arg0: i32) -> (i32, i32) {
    %c0_i32 = arith.constant 0 : i32
    %c0_i32_0 = arith.constant 0 : i32
    %c0_i32_1 = arith.constant 0 : i32
    return %c0_i32, %c0_i32_0 : i32, i32
  }
  func.func @transform_11(%arg0: i32) -> (i32, i32) {
    %c0_i32 = arith.constant 0 : i32
    %c0_i32_0 = arith.constant 0 : i32
    %c0_i32_1 = arith.constant 0 : i32
    return %c0_i32, %c0_i32_0 : i32, i32
  }
  func.func @transform_12(%arg0: i32) -> (i32, i32) {
    %c0_i32 = arith.constant 0 : i32
    %c0_i32_0 = arith.constant 0 : i32
    %c0_i32_1 = arith.constant 0 : i32
    return %c0_i32, %c0_i32_0 : i32, i32
  }
  func.func @transform_13(%arg0: i32) -> (i32, i32, i32) {
    %c0_i32 = arith.constant 0 : i32
    %c0_i32_0 = arith.constant 0 : i32
    %c0_i32_1 = arith.constant 0 : i32
    return %arg0, %c0_i32, %c0_i32_0 : i32, i32, i32
  }
}

module attributes {stable_mosaic.version = 11 : i64} {
  func.func @_cross_attn_kernel(%arg0: i32, %arg1: i32, %arg2: memref<1x8x128xf32, #tpu.memory_space<vmem>>, %arg3: memref<1x16x128xf32, #tpu.memory_space<vmem>>, %arg4: memref<1x128xf32, #tpu.memory_space<vmem>>, %arg5: memref<1x128xf32, #tpu.memory_space<vmem>>, %arg6: memref<1x128xf32, #tpu.memory_space<vmem>>, %arg7: memref<1x128xf32, #tpu.memory_space<vmem>>, %arg8: memref<1x128xf32, #tpu.memory_space<vmem>>, %arg9: memref<1x128xf32, #tpu.memory_space<vmem>>, %arg10: memref<128x128xbf16, #tpu.memory_space<vmem>>, %arg11: memref<1x128xf32, #tpu.memory_space<vmem>>, %arg12: memref<128x256xbf16, #tpu.memory_space<vmem>>, %arg13: memref<1x256xf32, #tpu.memory_space<vmem>>, %arg14: memref<128x128xbf16, #tpu.memory_space<vmem>>, %arg15: memref<1x128xf32, #tpu.memory_space<vmem>>, %arg16: memref<1x8x128xf32, #tpu.memory_space<vmem>>, %arg17: memref<8x128xf32, #tpu.memory_space<vmem>>) attributes {dimension_semantics = [#tpu.dimension_semantics<parallel>, #tpu.dimension_semantics<parallel>], iteration_bounds = array<i64: 2, 1>, scalar_prefetch = 0 : i64, scratch_operands = 1 : i64, tpu.core_type = #tpu.core_type<tc>, window_params = [{transform_indices = @transform_0, window_bounds = array<i64: 1, 8, 128>}, {transform_indices = @transform_1, window_bounds = array<i64: 1, 16, 128>}, {pipeline_mode = #tpu.pipeline_mode<synchronous>, transform_indices = @transform_2, window_bounds = array<i64: 1, 128>}, {pipeline_mode = #tpu.pipeline_mode<synchronous>, transform_indices = @transform_3, window_bounds = array<i64: 1, 128>}, {pipeline_mode = #tpu.pipeline_mode<synchronous>, transform_indices = @transform_4, window_bounds = array<i64: 1, 128>}, {pipeline_mode = #tpu.pipeline_mode<synchronous>, transform_indices = @transform_5, window_bounds = array<i64: 1, 128>}, {pipeline_mode = #tpu.pipeline_mode<synchronous>, transform_indices = @transform_6, window_bounds = array<i64: 1, 128>}, {pipeline_mode = #tpu.pipeline_mode<synchronous>, transform_indices = @transform_7, window_bounds = array<i64: 1, 128>}, {pipeline_mode = #tpu.pipeline_mode<synchronous>, transform_indices = @transform_8, window_bounds = array<i64: 128, 128>}, {pipeline_mode = #tpu.pipeline_mode<synchronous>, transform_indices = @transform_9, window_bounds = array<i64: 1, 128>}, {pipeline_mode = #tpu.pipeline_mode<synchronous>, transform_indices = @transform_10, window_bounds = array<i64: 128, 256>}, {pipeline_mode = #tpu.pipeline_mode<synchronous>, transform_indices = @transform_11, window_bounds = array<i64: 1, 256>}, {pipeline_mode = #tpu.pipeline_mode<synchronous>, transform_indices = @transform_12, window_bounds = array<i64: 128, 128>}, {pipeline_mode = #tpu.pipeline_mode<synchronous>, transform_indices = @transform_13, window_bounds = array<i64: 1, 128>}, {transform_indices = @transform_14, window_bounds = array<i64: 1, 8, 128>}]} {
    %c0 = arith.constant 0 : index
    %c0_0 = arith.constant 0 : index
    %c0_1 = arith.constant 0 : index
    %0 = vector.load %arg2[%c0, %c0_0, %c0_1] : memref<1x8x128xf32, #tpu.memory_space<vmem>>, vector<1x8x128xf32>
    %1 = vector.shape_cast %0 : vector<1x8x128xf32> to vector<8x128xf32>
    %c0_2 = arith.constant 0 : index
    %c0_3 = arith.constant 0 : index
    %c0_4 = arith.constant 0 : index
    %2 = vector.load %arg3[%c0_2, %c0_3, %c0_4] : memref<1x16x128xf32, #tpu.memory_space<vmem>>, vector<1x16x128xf32>
    %3 = vector.shape_cast %2 : vector<1x16x128xf32> to vector<16x128xf32>
    %c0_5 = arith.constant 0 : index
    %c0_6 = arith.constant 0 : index
    %4 = vector.load %arg4[%c0_5, %c0_6] : memref<1x128xf32, #tpu.memory_space<vmem>>, vector<1x128xf32>
    %c0_7 = arith.constant 0 : index
    %c0_8 = arith.constant 0 : index
    %5 = vector.load %arg5[%c0_7, %c0_8] : memref<1x128xf32, #tpu.memory_space<vmem>>, vector<1x128xf32>
    %cst = arith.constant dense<0.000000e+00> : vector<8xf32>
    %6 = vector.multi_reduction <add>, %1, %cst [1] : vector<8x128xf32> to vector<8xf32>
    %7 = vector.shape_cast %6 : vector<8xf32> to vector<8x1xf32>
    %cst_9 = arith.constant 1.280000e+02 : f32
    %8 = vector.broadcast %cst_9 : f32 to vector<8x1xf32>
    %9 = arith.divf %7, %8 : vector<8x1xf32>
    %10 = vector.broadcast %9 : vector<8x1xf32> to vector<8x128xf32>
    %11 = arith.subf %1, %10 : vector<8x128xf32>
    %12 = arith.mulf %11, %11 : vector<8x128xf32>
    %cst_10 = arith.constant dense<0.000000e+00> : vector<8xf32>
    %13 = vector.multi_reduction <add>, %12, %cst_10 [1] : vector<8x128xf32> to vector<8xf32>
    %14 = vector.shape_cast %13 : vector<8xf32> to vector<8x1xf32>
    %cst_11 = arith.constant 1.280000e+02 : f32
    %15 = vector.broadcast %cst_11 : f32 to vector<8x1xf32>
    %16 = arith.divf %14, %15 : vector<8x1xf32>
    %17 = vector.broadcast %9 : vector<8x1xf32> to vector<8x128xf32>
    %18 = arith.subf %1, %17 : vector<8x128xf32>
    %cst_12 = arith.constant 9.99999974E-6 : f32
    %19 = vector.broadcast %cst_12 : f32 to vector<8x1xf32>
    %20 = arith.addf %16, %19 : vector<8x1xf32>
    %21 = math.rsqrt %20 : vector<8x1xf32>
    %22 = vector.broadcast %21 : vector<8x1xf32> to vector<8x128xf32>
    %23 = arith.mulf %18, %22 : vector<8x128xf32>
    %24 = vector.broadcast %4 : vector<1x128xf32> to vector<8x128xf32>
    %25 = arith.mulf %23, %24 : vector<8x128xf32>
    %26 = vector.broadcast %5 : vector<1x128xf32> to vector<8x128xf32>
    %27 = arith.addf %25, %26 : vector<8x128xf32>
    %c0_13 = arith.constant 0 : index
    %c0_14 = arith.constant 0 : index
    %28 = vector.load %arg6[%c0_13, %c0_14] : memref<1x128xf32, #tpu.memory_space<vmem>>, vector<1x128xf32>
    %c0_15 = arith.constant 0 : index
    %c0_16 = arith.constant 0 : index
    %29 = vector.load %arg7[%c0_15, %c0_16] : memref<1x128xf32, #tpu.memory_space<vmem>>, vector<1x128xf32>
    %cst_17 = arith.constant dense<0.000000e+00> : vector<16xf32>
    %30 = vector.multi_reduction <add>, %3, %cst_17 [1] : vector<16x128xf32> to vector<16xf32>
    %31 = vector.shape_cast %30 : vector<16xf32> to vector<16x1xf32>
    %cst_18 = arith.constant 1.280000e+02 : f32
    %32 = vector.broadcast %cst_18 : f32 to vector<16x1xf32>
    %33 = arith.divf %31, %32 : vector<16x1xf32>
    %34 = vector.broadcast %33 : vector<16x1xf32> to vector<16x128xf32>
    %35 = arith.subf %3, %34 : vector<16x128xf32>
    %36 = arith.mulf %35, %35 : vector<16x128xf32>
    %cst_19 = arith.constant dense<0.000000e+00> : vector<16xf32>
    %37 = vector.multi_reduction <add>, %36, %cst_19 [1] : vector<16x128xf32> to vector<16xf32>
    %38 = vector.shape_cast %37 : vector<16xf32> to vector<16x1xf32>
    %cst_20 = arith.constant 1.280000e+02 : f32
    %39 = vector.broadcast %cst_20 : f32 to vector<16x1xf32>
    %40 = arith.divf %38, %39 : vector<16x1xf32>
    %41 = vector.broadcast %33 : vector<16x1xf32> to vector<16x128xf32>
    %42 = arith.subf %3, %41 : vector<16x128xf32>
    %cst_21 = arith.constant 9.99999974E-6 : f32
    %43 = vector.broadcast %cst_21 : f32 to vector<16x1xf32>
    %44 = arith.addf %40, %43 : vector<16x1xf32>
    %45 = math.rsqrt %44 : vector<16x1xf32>
    %46 = vector.broadcast %45 : vector<16x1xf32> to vector<16x128xf32>
    %47 = arith.mulf %42, %46 : vector<16x128xf32>
    %48 = vector.broadcast %28 : vector<1x128xf32> to vector<16x128xf32>
    %49 = arith.mulf %47, %48 : vector<16x128xf32>
    %50 = vector.broadcast %29 : vector<1x128xf32> to vector<16x128xf32>
    %51 = arith.addf %49, %50 : vector<16x128xf32>
    %c0_22 = arith.constant 0 : index
    %c0_23 = arith.constant 0 : index
    %52 = vector.load %arg8[%c0_22, %c0_23] : memref<1x128xf32, #tpu.memory_space<vmem>>, vector<1x128xf32>
    %c0_24 = arith.constant 0 : index
    %c0_25 = arith.constant 0 : index
    %53 = vector.load %arg9[%c0_24, %c0_25] : memref<1x128xf32, #tpu.memory_space<vmem>>, vector<1x128xf32>
    %cst_26 = arith.constant dense<0.000000e+00> : vector<8xf32>
    %54 = vector.multi_reduction <add>, %27, %cst_26 [1] : vector<8x128xf32> to vector<8xf32>
    %55 = vector.shape_cast %54 : vector<8xf32> to vector<8x1xf32>
    %cst_27 = arith.constant 1.280000e+02 : f32
    %56 = vector.broadcast %cst_27 : f32 to vector<8x1xf32>
    %57 = arith.divf %55, %56 : vector<8x1xf32>
    %58 = vector.broadcast %57 : vector<8x1xf32> to vector<8x128xf32>
    %59 = arith.subf %27, %58 : vector<8x128xf32>
    %60 = arith.mulf %59, %59 : vector<8x128xf32>
    %cst_28 = arith.constant dense<0.000000e+00> : vector<8xf32>
    %61 = vector.multi_reduction <add>, %60, %cst_28 [1] : vector<8x128xf32> to vector<8xf32>
    %62 = vector.shape_cast %61 : vector<8xf32> to vector<8x1xf32>
    %cst_29 = arith.constant 1.280000e+02 : f32
    %63 = vector.broadcast %cst_29 : f32 to vector<8x1xf32>
    %64 = arith.divf %62, %63 : vector<8x1xf32>
    %65 = vector.broadcast %57 : vector<8x1xf32> to vector<8x128xf32>
    %66 = arith.subf %27, %65 : vector<8x128xf32>
    %cst_30 = arith.constant 9.99999974E-6 : f32
    %67 = vector.broadcast %cst_30 : f32 to vector<8x1xf32>
    %68 = arith.addf %64, %67 : vector<8x1xf32>
    %69 = math.rsqrt %68 : vector<8x1xf32>
    %70 = vector.broadcast %69 : vector<8x1xf32> to vector<8x128xf32>
    %71 = arith.mulf %66, %70 : vector<8x128xf32>
    %72 = vector.broadcast %52 : vector<1x128xf32> to vector<8x128xf32>
    %73 = arith.mulf %71, %72 : vector<8x128xf32>
    %74 = vector.broadcast %53 : vector<1x128xf32> to vector<8x128xf32>
    %75 = arith.addf %73, %74 : vector<8x128xf32>
    %76 = arith.truncf %75 : vector<8x128xf32> to vector<8x128xbf16>
    %c0_31 = arith.constant 0 : index
    %c0_32 = arith.constant 0 : index
    %77 = vector.load %arg10[%c0_31, %c0_32] : memref<128x128xbf16, #tpu.memory_space<vmem>>, vector<128x128xbf16>
    %cst_33 = arith.constant dense<0.000000e+00> : vector<8x128xf32>
    %78 = tpu.matmul %76, %77, %cst_33 {dimension_numbers = #tpu.dot_dimension_numbers<[1], [0], [0], [1], [0, 0, 1, 1], [], []>} : vector<8x128xbf16>, vector<128x128xbf16>, vector<8x128xf32> -> vector<8x128xf32>
    %c0_34 = arith.constant 0 : index
    %c0_35 = arith.constant 0 : index
    %79 = vector.load %arg11[%c0_34, %c0_35] : memref<1x128xf32, #tpu.memory_space<vmem>>, vector<1x128xf32>
    %80 = vector.broadcast %79 : vector<1x128xf32> to vector<8x128xf32>
    %81 = arith.addf %78, %80 : vector<8x128xf32>
    %82 = arith.truncf %51 : vector<16x128xf32> to vector<16x128xbf16>
    %c0_36 = arith.constant 0 : index
    %c0_37 = arith.constant 0 : index
    %83 = vector.load %arg12[%c0_36, %c0_37] : memref<128x256xbf16, #tpu.memory_space<vmem>>, vector<128x256xbf16>
    %cst_38 = arith.constant dense<0.000000e+00> : vector<16x256xf32>
    %84 = tpu.matmul %82, %83, %cst_38 {dimension_numbers = #tpu.dot_dimension_numbers<[1], [0], [0], [1], [0, 0, 1, 1], [], []>} : vector<16x128xbf16>, vector<128x256xbf16>, vector<16x256xf32> -> vector<16x256xf32>
    %c0_39 = arith.constant 0 : index
    %c0_40 = arith.constant 0 : index
    %85 = vector.load %arg13[%c0_39, %c0_40] : memref<1x256xf32, #tpu.memory_space<vmem>>, vector<1x256xf32>
    %86 = vector.broadcast %85 : vector<1x256xf32> to vector<16x256xf32>
    %87 = arith.addf %84, %86 : vector<16x256xf32>
    %cst_41 = arith.constant 0.176776692 : f32
    %88 = vector.broadcast %cst_41 : f32 to vector<8x128xf32>
    %89 = arith.mulf %81, %88 : vector<8x128xf32>
    %90 = vector.extract_strided_slice %87 {offsets = [0, 0], sizes = [16, 128], strides = [1, 1]} : vector<16x256xf32> to vector<16x128xf32>
    %91 = vector.extract_strided_slice %87 {offsets = [0, 128], sizes = [16, 128], strides = [1, 1]} : vector<16x256xf32> to vector<16x128xf32>
    %92 = vector.extract_strided_slice %89 {offsets = [0, 0], sizes = [8, 32], strides = [1, 1]} : vector<8x128xf32> to vector<8x32xf32>
    %93 = arith.truncf %92 : vector<8x32xf32> to vector<8x32xbf16>
    %94 = vector.extract_strided_slice %90 {offsets = [0, 0], sizes = [16, 32], strides = [1, 1]} : vector<16x128xf32> to vector<16x32xf32>
    %95 = arith.truncf %94 : vector<16x32xf32> to vector<16x32xbf16>
    %96 = vector.extract_strided_slice %91 {offsets = [0, 0], sizes = [16, 32], strides = [1, 1]} : vector<16x128xf32> to vector<16x32xf32>
    %97 = arith.truncf %96 : vector<16x32xf32> to vector<16x32xbf16>
    %cst_42 = arith.constant dense<0.000000e+00> : vector<8x16xf32>
    %98 = tpu.matmul %93, %95, %cst_42 {dimension_numbers = #tpu.dot_dimension_numbers<[1], [1], [0], [0], [0, 0, 1, 0], [], []>} : vector<8x32xbf16>, vector<16x32xbf16>, vector<8x16xf32> -> vector<8x16xf32>
    %cst_43 = arith.constant dense<0xFF800000> : vector<8xf32>
    %99 = vector.multi_reduction <maximumf>, %98, %cst_43 [1] : vector<8x16xf32> to vector<8xf32>
    %100 = vector.shape_cast %99 : vector<8xf32> to vector<8x1xf32>
    %101 = vector.broadcast %100 : vector<8x1xf32> to vector<8x16xf32>
    %102 = arith.subf %98, %101 : vector<8x16xf32>
    %103 = math.exp %102 : vector<8x16xf32>
    %cst_44 = arith.constant dense<0.000000e+00> : vector<8xf32>
    %104 = vector.multi_reduction <add>, %103, %cst_44 [1] : vector<8x16xf32> to vector<8xf32>
    %105 = vector.shape_cast %104 : vector<8xf32> to vector<8x1xf32>
    %106 = tpu.reciprocal %105 {approx = true} : vector<8x1xf32> -> vector<8x1xf32>
    %107 = vector.broadcast %106 : vector<8x1xf32> to vector<8x16xf32>
    %108 = arith.mulf %103, %107 : vector<8x16xf32>
    %109 = arith.truncf %108 : vector<8x16xf32> to vector<8x16xbf16>
    %cst_45 = arith.constant dense<0.000000e+00> : vector<8x32xf32>
    %110 = tpu.matmul %109, %97, %cst_45 {dimension_numbers = #tpu.dot_dimension_numbers<[1], [0], [0], [1], [0, 0, 1, 1], [], []>} : vector<8x16xbf16>, vector<16x32xbf16>, vector<8x32xf32> -> vector<8x32xf32>
    %c0_46 = arith.constant 0 : index
    %c0_47 = arith.constant 0 : index
    %111 = vector.load %arg17[%c0_46, %c0_47] : memref<8x128xf32, #tpu.memory_space<vmem>>, vector<8x32xf32>
    tpu.vector_store %arg17[%c0_46, %c0_47], %110 {strides = array<i32>} : memref<8x128xf32, #tpu.memory_space<vmem>>, vector<8x32xf32>,
    %112 = vector.extract_strided_slice %89 {offsets = [0, 32], sizes = [8, 32], strides = [1, 1]} : vector<8x128xf32> to vector<8x32xf32>
    %113 = arith.truncf %112 : vector<8x32xf32> to vector<8x32xbf16>
    %114 = vector.extract_strided_slice %90 {offsets = [0, 32], sizes = [16, 32], strides = [1, 1]} : vector<16x128xf32> to vector<16x32xf32>
    %115 = arith.truncf %114 : vector<16x32xf32> to vector<16x32xbf16>
    %116 = vector.extract_strided_slice %91 {offsets = [0, 32], sizes = [16, 32], strides = [1, 1]} : vector<16x128xf32> to vector<16x32xf32>
    %117 = arith.truncf %116 : vector<16x32xf32> to vector<16x32xbf16>
    %cst_48 = arith.constant dense<0.000000e+00> : vector<8x16xf32>
    %118 = tpu.matmul %113, %115, %cst_48 {dimension_numbers = #tpu.dot_dimension_numbers<[1], [1], [0], [0], [0, 0, 1, 0], [], []>} : vector<8x32xbf16>, vector<16x32xbf16>, vector<8x16xf32> -> vector<8x16xf32>
    %cst_49 = arith.constant dense<0xFF800000> : vector<8xf32>
    %119 = vector.multi_reduction <maximumf>, %118, %cst_49 [1] : vector<8x16xf32> to vector<8xf32>
    %120 = vector.shape_cast %119 : vector<8xf32> to vector<8x1xf32>
    %121 = vector.broadcast %120 : vector<8x1xf32> to vector<8x16xf32>
    %122 = arith.subf %118, %121 : vector<8x16xf32>
    %123 = math.exp %122 : vector<8x16xf32>
    %cst_50 = arith.constant dense<0.000000e+00> : vector<8xf32>
    %124 = vector.multi_reduction <add>, %123, %cst_50 [1] : vector<8x16xf32> to vector<8xf32>
    %125 = vector.shape_cast %124 : vector<8xf32> to vector<8x1xf32>
    %126 = tpu.reciprocal %125 {approx = true} : vector<8x1xf32> -> vector<8x1xf32>
    %127 = vector.broadcast %126 : vector<8x1xf32> to vector<8x16xf32>
    %128 = arith.mulf %123, %127 : vector<8x16xf32>
    %129 = arith.truncf %128 : vector<8x16xf32> to vector<8x16xbf16>
    %cst_51 = arith.constant dense<0.000000e+00> : vector<8x32xf32>
    %130 = tpu.matmul %129, %117, %cst_51 {dimension_numbers = #tpu.dot_dimension_numbers<[1], [0], [0], [1], [0, 0, 1, 1], [], []>} : vector<8x16xbf16>, vector<16x32xbf16>, vector<8x32xf32> -> vector<8x32xf32>
    %c0_52 = arith.constant 0 : index
    %c32 = arith.constant 32 : index
    %131 = vector.load %arg17[%c0_52, %c32] : memref<8x128xf32, #tpu.memory_space<vmem>>, vector<8x32xf32>
    tpu.vector_store %arg17[%c0_52, %c32], %130 {strides = array<i32>} : memref<8x128xf32, #tpu.memory_space<vmem>>, vector<8x32xf32>,
    %132 = vector.extract_strided_slice %89 {offsets = [0, 64], sizes = [8, 32], strides = [1, 1]} : vector<8x128xf32> to vector<8x32xf32>
    %133 = arith.truncf %132 : vector<8x32xf32> to vector<8x32xbf16>
    %134 = vector.extract_strided_slice %90 {offsets = [0, 64], sizes = [16, 32], strides = [1, 1]} : vector<16x128xf32> to vector<16x32xf32>
    %135 = arith.truncf %134 : vector<16x32xf32> to vector<16x32xbf16>
    %136 = vector.extract_strided_slice %91 {offsets = [0, 64], sizes = [16, 32], strides = [1, 1]} : vector<16x128xf32> to vector<16x32xf32>
    %137 = arith.truncf %136 : vector<16x32xf32> to vector<16x32xbf16>
    %cst_53 = arith.constant dense<0.000000e+00> : vector<8x16xf32>
    %138 = tpu.matmul %133, %135, %cst_53 {dimension_numbers = #tpu.dot_dimension_numbers<[1], [1], [0], [0], [0, 0, 1, 0], [], []>} : vector<8x32xbf16>, vector<16x32xbf16>, vector<8x16xf32> -> vector<8x16xf32>
    %cst_54 = arith.constant dense<0xFF800000> : vector<8xf32>
    %139 = vector.multi_reduction <maximumf>, %138, %cst_54 [1] : vector<8x16xf32> to vector<8xf32>
    %140 = vector.shape_cast %139 : vector<8xf32> to vector<8x1xf32>
    %141 = vector.broadcast %140 : vector<8x1xf32> to vector<8x16xf32>
    %142 = arith.subf %138, %141 : vector<8x16xf32>
    %143 = math.exp %142 : vector<8x16xf32>
    %cst_55 = arith.constant dense<0.000000e+00> : vector<8xf32>
    %144 = vector.multi_reduction <add>, %143, %cst_55 [1] : vector<8x16xf32> to vector<8xf32>
    %145 = vector.shape_cast %144 : vector<8xf32> to vector<8x1xf32>
    %146 = tpu.reciprocal %145 {approx = true} : vector<8x1xf32> -> vector<8x1xf32>
    %147 = vector.broadcast %146 : vector<8x1xf32> to vector<8x16xf32>
    %148 = arith.mulf %143, %147 : vector<8x16xf32>
    %149 = arith.truncf %148 : vector<8x16xf32> to vector<8x16xbf16>
    %cst_56 = arith.constant dense<0.000000e+00> : vector<8x32xf32>
    %150 = tpu.matmul %149, %137, %cst_56 {dimension_numbers = #tpu.dot_dimension_numbers<[1], [0], [0], [1], [0, 0, 1, 1], [], []>} : vector<8x16xbf16>, vector<16x32xbf16>, vector<8x32xf32> -> vector<8x32xf32>
    %c0_57 = arith.constant 0 : index
    %c64 = arith.constant 64 : index
    %151 = vector.load %arg17[%c0_57, %c64] : memref<8x128xf32, #tpu.memory_space<vmem>>, vector<8x32xf32>
    tpu.vector_store %arg17[%c0_57, %c64], %150 {strides = array<i32>} : memref<8x128xf32, #tpu.memory_space<vmem>>, vector<8x32xf32>,
    %152 = vector.extract_strided_slice %89 {offsets = [0, 96], sizes = [8, 32], strides = [1, 1]} : vector<8x128xf32> to vector<8x32xf32>
    %153 = arith.truncf %152 : vector<8x32xf32> to vector<8x32xbf16>
    %154 = vector.extract_strided_slice %90 {offsets = [0, 96], sizes = [16, 32], strides = [1, 1]} : vector<16x128xf32> to vector<16x32xf32>
    %155 = arith.truncf %154 : vector<16x32xf32> to vector<16x32xbf16>
    %156 = vector.extract_strided_slice %91 {offsets = [0, 96], sizes = [16, 32], strides = [1, 1]} : vector<16x128xf32> to vector<16x32xf32>
    %157 = arith.truncf %156 : vector<16x32xf32> to vector<16x32xbf16>
    %cst_58 = arith.constant dense<0.000000e+00> : vector<8x16xf32>
    %158 = tpu.matmul %153, %155, %cst_58 {dimension_numbers = #tpu.dot_dimension_numbers<[1], [1], [0], [0], [0, 0, 1, 0], [], []>} : vector<8x32xbf16>, vector<16x32xbf16>, vector<8x16xf32> -> vector<8x16xf32>
    %cst_59 = arith.constant dense<0xFF800000> : vector<8xf32>
    %159 = vector.multi_reduction <maximumf>, %158, %cst_59 [1] : vector<8x16xf32> to vector<8xf32>
    %160 = vector.shape_cast %159 : vector<8xf32> to vector<8x1xf32>
    %161 = vector.broadcast %160 : vector<8x1xf32> to vector<8x16xf32>
    %162 = arith.subf %158, %161 : vector<8x16xf32>
    %163 = math.exp %162 : vector<8x16xf32>
    %cst_60 = arith.constant dense<0.000000e+00> : vector<8xf32>
    %164 = vector.multi_reduction <add>, %163, %cst_60 [1] : vector<8x16xf32> to vector<8xf32>
    %165 = vector.shape_cast %164 : vector<8xf32> to vector<8x1xf32>
    %166 = tpu.reciprocal %165 {approx = true} : vector<8x1xf32> -> vector<8x1xf32>
    %167 = vector.broadcast %166 : vector<8x1xf32> to vector<8x16xf32>
    %168 = arith.mulf %163, %167 : vector<8x16xf32>
    %169 = arith.truncf %168 : vector<8x16xf32> to vector<8x16xbf16>
    %cst_61 = arith.constant dense<0.000000e+00> : vector<8x32xf32>
    %170 = tpu.matmul %169, %157, %cst_61 {dimension_numbers = #tpu.dot_dimension_numbers<[1], [0], [0], [1], [0, 0, 1, 1], [], []>} : vector<8x16xbf16>, vector<16x32xbf16>, vector<8x32xf32> -> vector<8x32xf32>
    %c0_62 = arith.constant 0 : index
    %c96 = arith.constant 96 : index
    %171 = vector.load %arg17[%c0_62, %c96] : memref<8x128xf32, #tpu.memory_space<vmem>>, vector<8x32xf32>
    tpu.vector_store %arg17[%c0_62, %c96], %170 {strides = array<i32>} : memref<8x128xf32, #tpu.memory_space<vmem>>, vector<8x32xf32>,
    %c0_63 = arith.constant 0 : index
    %c0_64 = arith.constant 0 : index
    %172 = vector.load %arg17[%c0_63, %c0_64] : memref<8x128xf32, #tpu.memory_space<vmem>>, vector<8x128xf32>
    %173 = arith.truncf %172 : vector<8x128xf32> to vector<8x128xbf16>
    %c0_65 = arith.constant 0 : index
    %c0_66 = arith.constant 0 : index
    %174 = vector.load %arg14[%c0_65, %c0_66] : memref<128x128xbf16, #tpu.memory_space<vmem>>, vector<128x128xbf16>
    %cst_67 = arith.constant dense<0.000000e+00> : vector<8x128xf32>
    %175 = tpu.matmul %173, %174, %cst_67 {dimension_numbers = #tpu.dot_dimension_numbers<[1], [0], [0], [1], [0, 0, 1, 1], [], []>} : vector<8x128xbf16>, vector<128x128xbf16>, vector<8x128xf32> -> vector<8x128xf32>
    %c0_68 = arith.constant 0 : index
    %c0_69 = arith.constant 0 : index
    %176 = vector.load %arg15[%c0_68, %c0_69] : memref<1x128xf32, #tpu.memory_space<vmem>>, vector<1x128xf32>
    %177 = vector.broadcast %176 : vector<1x128xf32> to vector<8x128xf32>
    %178 = arith.addf %175, %177 : vector<8x128xf32>
    %179 = arith.addf %1, %178 : vector<8x128xf32>
    %c0_70 = arith.constant 0 : index
    %c0_71 = arith.constant 0 : index
    %c0_72 = arith.constant 0 : index
    %180 = vector.load %arg16[%c0_70, %c0_71, %c0_72] : memref<1x8x128xf32, #tpu.memory_space<vmem>>, vector<1x8x128xf32>
    %181 = vector.shape_cast %180 : vector<1x8x128xf32> to vector<8x128xf32>
    %182 = vector.shape_cast %179 : vector<8x128xf32> to vector<1x8x128xf32>
    tpu.vector_store %arg16[%c0_70, %c0_71, %c0_72], %182 {strides = array<i32>} : memref<1x8x128xf32, #tpu.memory_space<vmem>>, vector<1x8x128xf32>,
    return
  }
  func.func @transform_0(%arg0: i32, %arg1: i32) -> (i32, i32, i32) {
    %c0_i32 = arith.constant 0 : i32
    %c0_i32_0 = arith.constant 0 : i32
    return %arg0, %arg1, %c0_i32 : i32, i32, i32
  }
  func.func @transform_1(%arg0: i32, %arg1: i32) -> (i32, i32, i32) {
    %c0_i32 = arith.constant 0 : i32
    %c0_i32_0 = arith.constant 0 : i32
    %c0_i32_1 = arith.constant 0 : i32
    return %arg0, %c0_i32, %c0_i32_0 : i32, i32, i32
  }
  func.func @transform_2(%arg0: i32, %arg1: i32) -> (i32, i32) {
    %c0_i32 = arith.constant 0 : i32
    %c0_i32_0 = arith.constant 0 : i32
    %c0_i32_1 = arith.constant 0 : i32
    return %c0_i32, %c0_i32_0 : i32, i32
  }
  func.func @transform_3(%arg0: i32, %arg1: i32) -> (i32, i32) {
    %c0_i32 = arith.constant 0 : i32
    %c0_i32_0 = arith.constant 0 : i32
    %c0_i32_1 = arith.constant 0 : i32
    return %c0_i32, %c0_i32_0 : i32, i32
  }
  func.func @transform_4(%arg0: i32, %arg1: i32) -> (i32, i32) {
    %c0_i32 = arith.constant 0 : i32
    %c0_i32_0 = arith.constant 0 : i32
    %c0_i32_1 = arith.constant 0 : i32
    return %c0_i32, %c0_i32_0 : i32, i32
  }
  func.func @transform_5(%arg0: i32, %arg1: i32) -> (i32, i32) {
    %c0_i32 = arith.constant 0 : i32
    %c0_i32_0 = arith.constant 0 : i32
    %c0_i32_1 = arith.constant 0 : i32
    return %c0_i32, %c0_i32_0 : i32, i32
  }
  func.func @transform_6(%arg0: i32, %arg1: i32) -> (i32, i32) {
    %c0_i32 = arith.constant 0 : i32
    %c0_i32_0 = arith.constant 0 : i32
    %c0_i32_1 = arith.constant 0 : i32
    return %c0_i32, %c0_i32_0 : i32, i32
  }
  func.func @transform_7(%arg0: i32, %arg1: i32) -> (i32, i32) {
    %c0_i32 = arith.constant 0 : i32
    %c0_i32_0 = arith.constant 0 : i32
    %c0_i32_1 = arith.constant 0 : i32
    return %c0_i32, %c0_i32_0 : i32, i32
  }
  func.func @transform_8(%arg0: i32, %arg1: i32) -> (i32, i32) {
    %c0_i32 = arith.constant 0 : i32
    %c0_i32_0 = arith.constant 0 : i32
    %c0_i32_1 = arith.constant 0 : i32
    return %c0_i32, %c0_i32_0 : i32, i32
  }
  func.func @transform_9(%arg0: i32, %arg1: i32) -> (i32, i32) {
    %c0_i32 = arith.constant 0 : i32
    %c0_i32_0 = arith.constant 0 : i32
    %c0_i32_1 = arith.constant 0 : i32
    return %c0_i32, %c0_i32_0 : i32, i32
  }
  func.func @transform_10(%arg0: i32, %arg1: i32) -> (i32, i32) {
    %c0_i32 = arith.constant 0 : i32
    %c0_i32_0 = arith.constant 0 : i32
    %c0_i32_1 = arith.constant 0 : i32
    return %c0_i32, %c0_i32_0 : i32, i32
  }
  func.func @transform_11(%arg0: i32, %arg1: i32) -> (i32, i32) {
    %c0_i32 = arith.constant 0 : i32
    %c0_i32_0 = arith.constant 0 : i32
    %c0_i32_1 = arith.constant 0 : i32
    return %c0_i32, %c0_i32_0 : i32, i32
  }
  func.func @transform_12(%arg0: i32, %arg1: i32) -> (i32, i32) {
    %c0_i32 = arith.constant 0 : i32
    %c0_i32_0 = arith.constant 0 : i32
    %c0_i32_1 = arith.constant 0 : i32
    return %c0_i32, %c0_i32_0 : i32, i32
  }
  func.func @transform_13(%arg0: i32, %arg1: i32) -> (i32, i32) {
    %c0_i32 = arith.constant 0 : i32
    %c0_i32_0 = arith.constant 0 : i32
    %c0_i32_1 = arith.constant 0 : i32
    return %c0_i32, %c0_i32_0 : i32, i32
  }
  func.func @transform_14(%arg0: i32, %arg1: i32) -> (i32, i32, i32) {
    %c0_i32 = arith.constant 0 : i32
    %c0_i32_0 = arith.constant 0 : i32
    return %arg0, %arg1, %c0_i32 : i32, i32, i32
  }
}

module attributes {stable_mosaic.version = 11 : i64} {
  func.func @_self_attn_ffn_kernel(%arg0: i32, %arg1: memref<1x16x128xf32, #tpu.memory_space<vmem>>, %arg2: memref<1x128xf32, #tpu.memory_space<vmem>>, %arg3: memref<1x128xf32, #tpu.memory_space<vmem>>, %arg4: memref<128x384xbf16, #tpu.memory_space<vmem>>, %arg5: memref<1x384xf32, #tpu.memory_space<vmem>>, %arg6: memref<128x128xbf16, #tpu.memory_space<vmem>>, %arg7: memref<1x128xf32, #tpu.memory_space<vmem>>, %arg8: memref<1x128xf32, #tpu.memory_space<vmem>>, %arg9: memref<1x128xf32, #tpu.memory_space<vmem>>, %arg10: memref<128x128xbf16, #tpu.memory_space<vmem>>, %arg11: memref<1x128xf32, #tpu.memory_space<vmem>>, %arg12: memref<128x128xbf16, #tpu.memory_space<vmem>>, %arg13: memref<1x128xf32, #tpu.memory_space<vmem>>, %arg14: memref<1x16x128xf32, #tpu.memory_space<vmem>>, %arg15: memref<16x128xf32, #tpu.memory_space<vmem>>) attributes {dimension_semantics = [#tpu.dimension_semantics<parallel>], iteration_bounds = array<i64: 2>, scalar_prefetch = 0 : i64, scratch_operands = 1 : i64, tpu.core_type = #tpu.core_type<tc>, window_params = [{transform_indices = @transform_0, window_bounds = array<i64: 1, 16, 128>}, {pipeline_mode = #tpu.pipeline_mode<synchronous>, transform_indices = @transform_1, window_bounds = array<i64: 1, 128>}, {pipeline_mode = #tpu.pipeline_mode<synchronous>, transform_indices = @transform_2, window_bounds = array<i64: 1, 128>}, {pipeline_mode = #tpu.pipeline_mode<synchronous>, transform_indices = @transform_3, window_bounds = array<i64: 128, 384>}, {pipeline_mode = #tpu.pipeline_mode<synchronous>, transform_indices = @transform_4, window_bounds = array<i64: 1, 384>}, {pipeline_mode = #tpu.pipeline_mode<synchronous>, transform_indices = @transform_5, window_bounds = array<i64: 128, 128>}, {pipeline_mode = #tpu.pipeline_mode<synchronous>, transform_indices = @transform_6, window_bounds = array<i64: 1, 128>}, {pipeline_mode = #tpu.pipeline_mode<synchronous>, transform_indices = @transform_7, window_bounds = array<i64: 1, 128>}, {pipeline_mode = #tpu.pipeline_mode<synchronous>, transform_indices = @transform_8, window_bounds = array<i64: 1, 128>}, {pipeline_mode = #tpu.pipeline_mode<synchronous>, transform_indices = @transform_9, window_bounds = array<i64: 128, 128>}, {pipeline_mode = #tpu.pipeline_mode<synchronous>, transform_indices = @transform_10, window_bounds = array<i64: 1, 128>}, {pipeline_mode = #tpu.pipeline_mode<synchronous>, transform_indices = @transform_11, window_bounds = array<i64: 128, 128>}, {pipeline_mode = #tpu.pipeline_mode<synchronous>, transform_indices = @transform_12, window_bounds = array<i64: 1, 128>}, {transform_indices = @transform_13, window_bounds = array<i64: 1, 16, 128>}]} {
    %c0 = arith.constant 0 : index
    %c0_0 = arith.constant 0 : index
    %c0_1 = arith.constant 0 : index
    %0 = vector.load %arg1[%c0, %c0_0, %c0_1] : memref<1x16x128xf32, #tpu.memory_space<vmem>>, vector<1x16x128xf32>
    %1 = vector.shape_cast %0 : vector<1x16x128xf32> to vector<16x128xf32>
    %c0_2 = arith.constant 0 : index
    %c0_3 = arith.constant 0 : index
    %2 = vector.load %arg2[%c0_2, %c0_3] : memref<1x128xf32, #tpu.memory_space<vmem>>, vector<1x128xf32>
    %c0_4 = arith.constant 0 : index
    %c0_5 = arith.constant 0 : index
    %3 = vector.load %arg3[%c0_4, %c0_5] : memref<1x128xf32, #tpu.memory_space<vmem>>, vector<1x128xf32>
    %cst = arith.constant dense<0.000000e+00> : vector<16xf32>
    %4 = vector.multi_reduction <add>, %1, %cst [1] : vector<16x128xf32> to vector<16xf32>
    %5 = vector.shape_cast %4 : vector<16xf32> to vector<16x1xf32>
    %cst_6 = arith.constant 1.280000e+02 : f32
    %6 = vector.broadcast %cst_6 : f32 to vector<16x1xf32>
    %7 = arith.divf %5, %6 : vector<16x1xf32>
    %8 = vector.broadcast %7 : vector<16x1xf32> to vector<16x128xf32>
    %9 = arith.subf %1, %8 : vector<16x128xf32>
    %10 = arith.mulf %9, %9 : vector<16x128xf32>
    %cst_7 = arith.constant dense<0.000000e+00> : vector<16xf32>
    %11 = vector.multi_reduction <add>, %10, %cst_7 [1] : vector<16x128xf32> to vector<16xf32>
    %12 = vector.shape_cast %11 : vector<16xf32> to vector<16x1xf32>
    %cst_8 = arith.constant 1.280000e+02 : f32
    %13 = vector.broadcast %cst_8 : f32 to vector<16x1xf32>
    %14 = arith.divf %12, %13 : vector<16x1xf32>
    %15 = vector.broadcast %7 : vector<16x1xf32> to vector<16x128xf32>
    %16 = arith.subf %1, %15 : vector<16x128xf32>
    %cst_9 = arith.constant 9.99999974E-6 : f32
    %17 = vector.broadcast %cst_9 : f32 to vector<16x1xf32>
    %18 = arith.addf %14, %17 : vector<16x1xf32>
    %19 = math.rsqrt %18 : vector<16x1xf32>
    %20 = vector.broadcast %19 : vector<16x1xf32> to vector<16x128xf32>
    %21 = arith.mulf %16, %20 : vector<16x128xf32>
    %22 = vector.broadcast %2 : vector<1x128xf32> to vector<16x128xf32>
    %23 = arith.mulf %21, %22 : vector<16x128xf32>
    %24 = vector.broadcast %3 : vector<1x128xf32> to vector<16x128xf32>
    %25 = arith.addf %23, %24 : vector<16x128xf32>
    %26 = arith.truncf %25 : vector<16x128xf32> to vector<16x128xbf16>
    %c0_10 = arith.constant 0 : index
    %c0_11 = arith.constant 0 : index
    %27 = vector.load %arg4[%c0_10, %c0_11] : memref<128x384xbf16, #tpu.memory_space<vmem>>, vector<128x384xbf16>
    %cst_12 = arith.constant dense<0.000000e+00> : vector<16x384xf32>
    %28 = tpu.matmul %26, %27, %cst_12 {dimension_numbers = #tpu.dot_dimension_numbers<[1], [0], [0], [1], [0, 0, 1, 1], [], []>} : vector<16x128xbf16>, vector<128x384xbf16>, vector<16x384xf32> -> vector<16x384xf32>
    %c0_13 = arith.constant 0 : index
    %c0_14 = arith.constant 0 : index
    %29 = vector.load %arg5[%c0_13, %c0_14] : memref<1x384xf32, #tpu.memory_space<vmem>>, vector<1x384xf32>
    %30 = vector.broadcast %29 : vector<1x384xf32> to vector<16x384xf32>
    %31 = arith.addf %28, %30 : vector<16x384xf32>
    %32 = vector.extract_strided_slice %31 {offsets = [0, 0], sizes = [16, 128], strides = [1, 1]} : vector<16x384xf32> to vector<16x128xf32>
    %cst_15 = arith.constant 0.176776692 : f32
    %33 = vector.broadcast %cst_15 : f32 to vector<16x128xf32>
    %34 = arith.mulf %32, %33 : vector<16x128xf32>
    %35 = vector.extract_strided_slice %31 {offsets = [0, 128], sizes = [16, 128], strides = [1, 1]} : vector<16x384xf32> to vector<16x128xf32>
    %36 = vector.extract_strided_slice %31 {offsets = [0, 256], sizes = [16, 128], strides = [1, 1]} : vector<16x384xf32> to vector<16x128xf32>
    %37 = vector.extract_strided_slice %34 {offsets = [0, 0], sizes = [16, 32], strides = [1, 1]} : vector<16x128xf32> to vector<16x32xf32>
    %38 = arith.truncf %37 : vector<16x32xf32> to vector<16x32xbf16>
    %39 = vector.extract_strided_slice %35 {offsets = [0, 0], sizes = [16, 32], strides = [1, 1]} : vector<16x128xf32> to vector<16x32xf32>
    %40 = arith.truncf %39 : vector<16x32xf32> to vector<16x32xbf16>
    %41 = vector.extract_strided_slice %36 {offsets = [0, 0], sizes = [16, 32], strides = [1, 1]} : vector<16x128xf32> to vector<16x32xf32>
    %42 = arith.truncf %41 : vector<16x32xf32> to vector<16x32xbf16>
    %cst_16 = arith.constant dense<0.000000e+00> : vector<16x16xf32>
    %43 = tpu.matmul %38, %40, %cst_16 {dimension_numbers = #tpu.dot_dimension_numbers<[1], [1], [0], [0], [0, 0, 1, 0], [], []>} : vector<16x32xbf16>, vector<16x32xbf16>, vector<16x16xf32> -> vector<16x16xf32>
    %cst_17 = arith.constant dense<0xFF800000> : vector<16xf32>
    %44 = vector.multi_reduction <maximumf>, %43, %cst_17 [1] : vector<16x16xf32> to vector<16xf32>
    %45 = vector.shape_cast %44 : vector<16xf32> to vector<16x1xf32>
    %46 = vector.broadcast %45 : vector<16x1xf32> to vector<16x16xf32>
    %47 = arith.subf %43, %46 : vector<16x16xf32>
    %48 = math.exp %47 : vector<16x16xf32>
    %cst_18 = arith.constant dense<0.000000e+00> : vector<16xf32>
    %49 = vector.multi_reduction <add>, %48, %cst_18 [1] : vector<16x16xf32> to vector<16xf32>
    %50 = vector.shape_cast %49 : vector<16xf32> to vector<16x1xf32>
    %51 = tpu.reciprocal %50 {approx = true} : vector<16x1xf32> -> vector<16x1xf32>
    %52 = vector.broadcast %51 : vector<16x1xf32> to vector<16x16xf32>
    %53 = arith.mulf %48, %52 : vector<16x16xf32>
    %54 = arith.truncf %53 : vector<16x16xf32> to vector<16x16xbf16>
    %cst_19 = arith.constant dense<0.000000e+00> : vector<16x32xf32>
    %55 = tpu.matmul %54, %42, %cst_19 {dimension_numbers = #tpu.dot_dimension_numbers<[1], [0], [0], [1], [0, 0, 1, 1], [], []>} : vector<16x16xbf16>, vector<16x32xbf16>, vector<16x32xf32> -> vector<16x32xf32>
    %c0_20 = arith.constant 0 : index
    %c0_21 = arith.constant 0 : index
    %56 = vector.load %arg15[%c0_20, %c0_21] : memref<16x128xf32, #tpu.memory_space<vmem>>, vector<16x32xf32>
    tpu.vector_store %arg15[%c0_20, %c0_21], %55 {strides = array<i32>} : memref<16x128xf32, #tpu.memory_space<vmem>>, vector<16x32xf32>,
    %57 = vector.extract_strided_slice %34 {offsets = [0, 32], sizes = [16, 32], strides = [1, 1]} : vector<16x128xf32> to vector<16x32xf32>
    %58 = arith.truncf %57 : vector<16x32xf32> to vector<16x32xbf16>
    %59 = vector.extract_strided_slice %35 {offsets = [0, 32], sizes = [16, 32], strides = [1, 1]} : vector<16x128xf32> to vector<16x32xf32>
    %60 = arith.truncf %59 : vector<16x32xf32> to vector<16x32xbf16>
    %61 = vector.extract_strided_slice %36 {offsets = [0, 32], sizes = [16, 32], strides = [1, 1]} : vector<16x128xf32> to vector<16x32xf32>
    %62 = arith.truncf %61 : vector<16x32xf32> to vector<16x32xbf16>
    %cst_22 = arith.constant dense<0.000000e+00> : vector<16x16xf32>
    %63 = tpu.matmul %58, %60, %cst_22 {dimension_numbers = #tpu.dot_dimension_numbers<[1], [1], [0], [0], [0, 0, 1, 0], [], []>} : vector<16x32xbf16>, vector<16x32xbf16>, vector<16x16xf32> -> vector<16x16xf32>
    %cst_23 = arith.constant dense<0xFF800000> : vector<16xf32>
    %64 = vector.multi_reduction <maximumf>, %63, %cst_23 [1] : vector<16x16xf32> to vector<16xf32>
    %65 = vector.shape_cast %64 : vector<16xf32> to vector<16x1xf32>
    %66 = vector.broadcast %65 : vector<16x1xf32> to vector<16x16xf32>
    %67 = arith.subf %63, %66 : vector<16x16xf32>
    %68 = math.exp %67 : vector<16x16xf32>
    %cst_24 = arith.constant dense<0.000000e+00> : vector<16xf32>
    %69 = vector.multi_reduction <add>, %68, %cst_24 [1] : vector<16x16xf32> to vector<16xf32>
    %70 = vector.shape_cast %69 : vector<16xf32> to vector<16x1xf32>
    %71 = tpu.reciprocal %70 {approx = true} : vector<16x1xf32> -> vector<16x1xf32>
    %72 = vector.broadcast %71 : vector<16x1xf32> to vector<16x16xf32>
    %73 = arith.mulf %68, %72 : vector<16x16xf32>
    %74 = arith.truncf %73 : vector<16x16xf32> to vector<16x16xbf16>
    %cst_25 = arith.constant dense<0.000000e+00> : vector<16x32xf32>
    %75 = tpu.matmul %74, %62, %cst_25 {dimension_numbers = #tpu.dot_dimension_numbers<[1], [0], [0], [1], [0, 0, 1, 1], [], []>} : vector<16x16xbf16>, vector<16x32xbf16>, vector<16x32xf32> -> vector<16x32xf32>
    %c0_26 = arith.constant 0 : index
    %c32 = arith.constant 32 : index
    %76 = vector.load %arg15[%c0_26, %c32] : memref<16x128xf32, #tpu.memory_space<vmem>>, vector<16x32xf32>
    tpu.vector_store %arg15[%c0_26, %c32], %75 {strides = array<i32>} : memref<16x128xf32, #tpu.memory_space<vmem>>, vector<16x32xf32>,
    %77 = vector.extract_strided_slice %34 {offsets = [0, 64], sizes = [16, 32], strides = [1, 1]} : vector<16x128xf32> to vector<16x32xf32>
    %78 = arith.truncf %77 : vector<16x32xf32> to vector<16x32xbf16>
    %79 = vector.extract_strided_slice %35 {offsets = [0, 64], sizes = [16, 32], strides = [1, 1]} : vector<16x128xf32> to vector<16x32xf32>
    %80 = arith.truncf %79 : vector<16x32xf32> to vector<16x32xbf16>
    %81 = vector.extract_strided_slice %36 {offsets = [0, 64], sizes = [16, 32], strides = [1, 1]} : vector<16x128xf32> to vector<16x32xf32>
    %82 = arith.truncf %81 : vector<16x32xf32> to vector<16x32xbf16>
    %cst_27 = arith.constant dense<0.000000e+00> : vector<16x16xf32>
    %83 = tpu.matmul %78, %80, %cst_27 {dimension_numbers = #tpu.dot_dimension_numbers<[1], [1], [0], [0], [0, 0, 1, 0], [], []>} : vector<16x32xbf16>, vector<16x32xbf16>, vector<16x16xf32> -> vector<16x16xf32>
    %cst_28 = arith.constant dense<0xFF800000> : vector<16xf32>
    %84 = vector.multi_reduction <maximumf>, %83, %cst_28 [1] : vector<16x16xf32> to vector<16xf32>
    %85 = vector.shape_cast %84 : vector<16xf32> to vector<16x1xf32>
    %86 = vector.broadcast %85 : vector<16x1xf32> to vector<16x16xf32>
    %87 = arith.subf %83, %86 : vector<16x16xf32>
    %88 = math.exp %87 : vector<16x16xf32>
    %cst_29 = arith.constant dense<0.000000e+00> : vector<16xf32>
    %89 = vector.multi_reduction <add>, %88, %cst_29 [1] : vector<16x16xf32> to vector<16xf32>
    %90 = vector.shape_cast %89 : vector<16xf32> to vector<16x1xf32>
    %91 = tpu.reciprocal %90 {approx = true} : vector<16x1xf32> -> vector<16x1xf32>
    %92 = vector.broadcast %91 : vector<16x1xf32> to vector<16x16xf32>
    %93 = arith.mulf %88, %92 : vector<16x16xf32>
    %94 = arith.truncf %93 : vector<16x16xf32> to vector<16x16xbf16>
    %cst_30 = arith.constant dense<0.000000e+00> : vector<16x32xf32>
    %95 = tpu.matmul %94, %82, %cst_30 {dimension_numbers = #tpu.dot_dimension_numbers<[1], [0], [0], [1], [0, 0, 1, 1], [], []>} : vector<16x16xbf16>, vector<16x32xbf16>, vector<16x32xf32> -> vector<16x32xf32>
    %c0_31 = arith.constant 0 : index
    %c64 = arith.constant 64 : index
    %96 = vector.load %arg15[%c0_31, %c64] : memref<16x128xf32, #tpu.memory_space<vmem>>, vector<16x32xf32>
    tpu.vector_store %arg15[%c0_31, %c64], %95 {strides = array<i32>} : memref<16x128xf32, #tpu.memory_space<vmem>>, vector<16x32xf32>,
    %97 = vector.extract_strided_slice %34 {offsets = [0, 96], sizes = [16, 32], strides = [1, 1]} : vector<16x128xf32> to vector<16x32xf32>
    %98 = arith.truncf %97 : vector<16x32xf32> to vector<16x32xbf16>
    %99 = vector.extract_strided_slice %35 {offsets = [0, 96], sizes = [16, 32], strides = [1, 1]} : vector<16x128xf32> to vector<16x32xf32>
    %100 = arith.truncf %99 : vector<16x32xf32> to vector<16x32xbf16>
    %101 = vector.extract_strided_slice %36 {offsets = [0, 96], sizes = [16, 32], strides = [1, 1]} : vector<16x128xf32> to vector<16x32xf32>
    %102 = arith.truncf %101 : vector<16x32xf32> to vector<16x32xbf16>
    %cst_32 = arith.constant dense<0.000000e+00> : vector<16x16xf32>
    %103 = tpu.matmul %98, %100, %cst_32 {dimension_numbers = #tpu.dot_dimension_numbers<[1], [1], [0], [0], [0, 0, 1, 0], [], []>} : vector<16x32xbf16>, vector<16x32xbf16>, vector<16x16xf32> -> vector<16x16xf32>
    %cst_33 = arith.constant dense<0xFF800000> : vector<16xf32>
    %104 = vector.multi_reduction <maximumf>, %103, %cst_33 [1] : vector<16x16xf32> to vector<16xf32>
    %105 = vector.shape_cast %104 : vector<16xf32> to vector<16x1xf32>
    %106 = vector.broadcast %105 : vector<16x1xf32> to vector<16x16xf32>
    %107 = arith.subf %103, %106 : vector<16x16xf32>
    %108 = math.exp %107 : vector<16x16xf32>
    %cst_34 = arith.constant dense<0.000000e+00> : vector<16xf32>
    %109 = vector.multi_reduction <add>, %108, %cst_34 [1] : vector<16x16xf32> to vector<16xf32>
    %110 = vector.shape_cast %109 : vector<16xf32> to vector<16x1xf32>
    %111 = tpu.reciprocal %110 {approx = true} : vector<16x1xf32> -> vector<16x1xf32>
    %112 = vector.broadcast %111 : vector<16x1xf32> to vector<16x16xf32>
    %113 = arith.mulf %108, %112 : vector<16x16xf32>
    %114 = arith.truncf %113 : vector<16x16xf32> to vector<16x16xbf16>
    %cst_35 = arith.constant dense<0.000000e+00> : vector<16x32xf32>
    %115 = tpu.matmul %114, %102, %cst_35 {dimension_numbers = #tpu.dot_dimension_numbers<[1], [0], [0], [1], [0, 0, 1, 1], [], []>} : vector<16x16xbf16>, vector<16x32xbf16>, vector<16x32xf32> -> vector<16x32xf32>
    %c0_36 = arith.constant 0 : index
    %c96 = arith.constant 96 : index
    %116 = vector.load %arg15[%c0_36, %c96] : memref<16x128xf32, #tpu.memory_space<vmem>>, vector<16x32xf32>
    tpu.vector_store %arg15[%c0_36, %c96], %115 {strides = array<i32>} : memref<16x128xf32, #tpu.memory_space<vmem>>, vector<16x32xf32>,
    %c0_37 = arith.constant 0 : index
    %c0_38 = arith.constant 0 : index
    %117 = vector.load %arg15[%c0_37, %c0_38] : memref<16x128xf32, #tpu.memory_space<vmem>>, vector<16x128xf32>
    %118 = arith.truncf %117 : vector<16x128xf32> to vector<16x128xbf16>
    %c0_39 = arith.constant 0 : index
    %c0_40 = arith.constant 0 : index
    %119 = vector.load %arg6[%c0_39, %c0_40] : memref<128x128xbf16, #tpu.memory_space<vmem>>, vector<128x128xbf16>
    %cst_41 = arith.constant dense<0.000000e+00> : vector<16x128xf32>
    %120 = tpu.matmul %118, %119, %cst_41 {dimension_numbers = #tpu.dot_dimension_numbers<[1], [0], [0], [1], [0, 0, 1, 1], [], []>} : vector<16x128xbf16>, vector<128x128xbf16>, vector<16x128xf32> -> vector<16x128xf32>
    %c0_42 = arith.constant 0 : index
    %c0_43 = arith.constant 0 : index
    %121 = vector.load %arg7[%c0_42, %c0_43] : memref<1x128xf32, #tpu.memory_space<vmem>>, vector<1x128xf32>
    %122 = vector.broadcast %121 : vector<1x128xf32> to vector<16x128xf32>
    %123 = arith.addf %120, %122 : vector<16x128xf32>
    %124 = arith.addf %1, %123 : vector<16x128xf32>
    %c0_44 = arith.constant 0 : index
    %c0_45 = arith.constant 0 : index
    %125 = vector.load %arg8[%c0_44, %c0_45] : memref<1x128xf32, #tpu.memory_space<vmem>>, vector<1x128xf32>
    %c0_46 = arith.constant 0 : index
    %c0_47 = arith.constant 0 : index
    %126 = vector.load %arg9[%c0_46, %c0_47] : memref<1x128xf32, #tpu.memory_space<vmem>>, vector<1x128xf32>
    %cst_48 = arith.constant dense<0.000000e+00> : vector<16xf32>
    %127 = vector.multi_reduction <add>, %124, %cst_48 [1] : vector<16x128xf32> to vector<16xf32>
    %128 = vector.shape_cast %127 : vector<16xf32> to vector<16x1xf32>
    %cst_49 = arith.constant 1.280000e+02 : f32
    %129 = vector.broadcast %cst_49 : f32 to vector<16x1xf32>
    %130 = arith.divf %128, %129 : vector<16x1xf32>
    %131 = vector.broadcast %130 : vector<16x1xf32> to vector<16x128xf32>
    %132 = arith.subf %124, %131 : vector<16x128xf32>
    %133 = arith.mulf %132, %132 : vector<16x128xf32>
    %cst_50 = arith.constant dense<0.000000e+00> : vector<16xf32>
    %134 = vector.multi_reduction <add>, %133, %cst_50 [1] : vector<16x128xf32> to vector<16xf32>
    %135 = vector.shape_cast %134 : vector<16xf32> to vector<16x1xf32>
    %cst_51 = arith.constant 1.280000e+02 : f32
    %136 = vector.broadcast %cst_51 : f32 to vector<16x1xf32>
    %137 = arith.divf %135, %136 : vector<16x1xf32>
    %138 = vector.broadcast %130 : vector<16x1xf32> to vector<16x128xf32>
    %139 = arith.subf %124, %138 : vector<16x128xf32>
    %cst_52 = arith.constant 9.99999974E-6 : f32
    %140 = vector.broadcast %cst_52 : f32 to vector<16x1xf32>
    %141 = arith.addf %137, %140 : vector<16x1xf32>
    %142 = math.rsqrt %141 : vector<16x1xf32>
    %143 = vector.broadcast %142 : vector<16x1xf32> to vector<16x128xf32>
    %144 = arith.mulf %139, %143 : vector<16x128xf32>
    %145 = vector.broadcast %125 : vector<1x128xf32> to vector<16x128xf32>
    %146 = arith.mulf %144, %145 : vector<16x128xf32>
    %147 = vector.broadcast %126 : vector<1x128xf32> to vector<16x128xf32>
    %148 = arith.addf %146, %147 : vector<16x128xf32>
    %149 = arith.truncf %148 : vector<16x128xf32> to vector<16x128xbf16>
    %c0_53 = arith.constant 0 : index
    %c0_54 = arith.constant 0 : index
    %150 = vector.load %arg10[%c0_53, %c0_54] : memref<128x128xbf16, #tpu.memory_space<vmem>>, vector<128x128xbf16>
    %cst_55 = arith.constant dense<0.000000e+00> : vector<16x128xf32>
    %151 = tpu.matmul %149, %150, %cst_55 {dimension_numbers = #tpu.dot_dimension_numbers<[1], [0], [0], [1], [0, 0, 1, 1], [], []>} : vector<16x128xbf16>, vector<128x128xbf16>, vector<16x128xf32> -> vector<16x128xf32>
    %c0_56 = arith.constant 0 : index
    %c0_57 = arith.constant 0 : index
    %152 = vector.load %arg11[%c0_56, %c0_57] : memref<1x128xf32, #tpu.memory_space<vmem>>, vector<1x128xf32>
    %153 = vector.broadcast %152 : vector<1x128xf32> to vector<16x128xf32>
    %154 = arith.addf %151, %153 : vector<16x128xf32>
    %cst_58 = arith.constant 5.000000e-01 : f32
    %155 = vector.broadcast %cst_58 : f32 to vector<16x128xf32>
    %156 = arith.mulf %155, %154 : vector<16x128xf32>
    %cst_59 = arith.constant 0.707106769 : f32
    %157 = vector.broadcast %cst_59 : f32 to vector<16x128xf32>
    %158 = arith.mulf %154, %157 : vector<16x128xf32>
    %159 = math.erf %158 : vector<16x128xf32>
    %cst_60 = arith.constant 1.000000e+00 : f32
    %160 = vector.broadcast %cst_60 : f32 to vector<16x128xf32>
    %161 = arith.addf %160, %159 : vector<16x128xf32>
    %162 = arith.mulf %156, %161 : vector<16x128xf32>
    %163 = arith.truncf %162 : vector<16x128xf32> to vector<16x128xbf16>
    %c0_61 = arith.constant 0 : index
    %c0_62 = arith.constant 0 : index
    %164 = vector.load %arg12[%c0_61, %c0_62] : memref<128x128xbf16, #tpu.memory_space<vmem>>, vector<128x128xbf16>
    %cst_63 = arith.constant dense<0.000000e+00> : vector<16x128xf32>
    %165 = tpu.matmul %163, %164, %cst_63 {dimension_numbers = #tpu.dot_dimension_numbers<[1], [0], [0], [1], [0, 0, 1, 1], [], []>} : vector<16x128xbf16>, vector<128x128xbf16>, vector<16x128xf32> -> vector<16x128xf32>
    %c0_64 = arith.constant 0 : index
    %c0_65 = arith.constant 0 : index
    %166 = vector.load %arg13[%c0_64, %c0_65] : memref<1x128xf32, #tpu.memory_space<vmem>>, vector<1x128xf32>
    %167 = vector.broadcast %166 : vector<1x128xf32> to vector<16x128xf32>
    %168 = arith.addf %165, %167 : vector<16x128xf32>
    %169 = arith.addf %124, %168 : vector<16x128xf32>
    %c0_66 = arith.constant 0 : index
    %c0_67 = arith.constant 0 : index
    %c0_68 = arith.constant 0 : index
    %170 = vector.load %arg14[%c0_66, %c0_67, %c0_68] : memref<1x16x128xf32, #tpu.memory_space<vmem>>, vector<1x16x128xf32>
    %171 = vector.shape_cast %170 : vector<1x16x128xf32> to vector<16x128xf32>
    %172 = vector.shape_cast %169 : vector<16x128xf32> to vector<1x16x128xf32>
    tpu.vector_store %arg14[%c0_66, %c0_67, %c0_68], %172 {strides = array<i32>} : memref<1x16x128xf32, #tpu.memory_space<vmem>>, vector<1x16x128xf32>,
    return
  }
  func.func @transform_0(%arg0: i32) -> (i32, i32, i32) {
    %c0_i32 = arith.constant 0 : i32
    %c0_i32_0 = arith.constant 0 : i32
    %c0_i32_1 = arith.constant 0 : i32
    return %arg0, %c0_i32, %c0_i32_0 : i32, i32, i32
  }
  func.func @transform_1(%arg0: i32) -> (i32, i32) {
    %c0_i32 = arith.constant 0 : i32
    %c0_i32_0 = arith.constant 0 : i32
    %c0_i32_1 = arith.constant 0 : i32
    return %c0_i32, %c0_i32_0 : i32, i32
  }
  func.func @transform_2(%arg0: i32) -> (i32, i32) {
    %c0_i32 = arith.constant 0 : i32
    %c0_i32_0 = arith.constant 0 : i32
    %c0_i32_1 = arith.constant 0 : i32
    return %c0_i32, %c0_i32_0 : i32, i32
  }
  func.func @transform_3(%arg0: i32) -> (i32, i32) {
    %c0_i32 = arith.constant 0 : i32
    %c0_i32_0 = arith.constant 0 : i32
    %c0_i32_1 = arith.constant 0 : i32
    return %c0_i32, %c0_i32_0 : i32, i32
  }
  func.func @transform_4(%arg0: i32) -> (i32, i32) {
    %c0_i32 = arith.constant 0 : i32
    %c0_i32_0 = arith.constant 0 : i32
    %c0_i32_1 = arith.constant 0 : i32
    return %c0_i32, %c0_i32_0 : i32, i32
  }
  func.func @transform_5(%arg0: i32) -> (i32, i32) {
    %c0_i32 = arith.constant 0 : i32
    %c0_i32_0 = arith.constant 0 : i32
    %c0_i32_1 = arith.constant 0 : i32
    return %c0_i32, %c0_i32_0 : i32, i32
  }
  func.func @transform_6(%arg0: i32) -> (i32, i32) {
    %c0_i32 = arith.constant 0 : i32
    %c0_i32_0 = arith.constant 0 : i32
    %c0_i32_1 = arith.constant 0 : i32
    return %c0_i32, %c0_i32_0 : i32, i32
  }
  func.func @transform_7(%arg0: i32) -> (i32, i32) {
    %c0_i32 = arith.constant 0 : i32
    %c0_i32_0 = arith.constant 0 : i32
    %c0_i32_1 = arith.constant 0 : i32
    return %c0_i32, %c0_i32_0 : i32, i32
  }
  func.func @transform_8(%arg0: i32) -> (i32, i32) {
    %c0_i32 = arith.constant 0 : i32
    %c0_i32_0 = arith.constant 0 : i32
    %c0_i32_1 = arith.constant 0 : i32
    return %c0_i32, %c0_i32_0 : i32, i32
  }
  func.func @transform_9(%arg0: i32) -> (i32, i32) {
    %c0_i32 = arith.constant 0 : i32
    %c0_i32_0 = arith.constant 0 : i32
    %c0_i32_1 = arith.constant 0 : i32
    return %c0_i32, %c0_i32_0 : i32, i32
  }
  func.func @transform_10(%arg0: i32) -> (i32, i32) {
    %c0_i32 = arith.constant 0 : i32
    %c0_i32_0 = arith.constant 0 : i32
    %c0_i32_1 = arith.constant 0 : i32
    return %c0_i32, %c0_i32_0 : i32, i32
  }
  func.func @transform_11(%arg0: i32) -> (i32, i32) {
    %c0_i32 = arith.constant 0 : i32
    %c0_i32_0 = arith.constant 0 : i32
    %c0_i32_1 = arith.constant 0 : i32
    return %c0_i32, %c0_i32_0 : i32, i32
  }
  func.func @transform_12(%arg0: i32) -> (i32, i32) {
    %c0_i32 = arith.constant 0 : i32
    %c0_i32_0 = arith.constant 0 : i32
    %c0_i32_1 = arith.constant 0 : i32
    return %c0_i32, %c0_i32_0 : i32, i32
  }
  func.func @transform_13(%arg0: i32) -> (i32, i32, i32) {
    %c0_i32 = arith.constant 0 : i32
    %c0_i32_0 = arith.constant 0 : i32
    %c0_i32_1 = arith.constant 0 : i32
    return %arg0, %c0_i32, %c0_i32_0 : i32, i32, i32
  }
}

module attributes {stable_mosaic.version = 11 : i64} {
  func.func @_layernorm_kernel(%arg0: i32, %arg1: memref<16x128xf32, #tpu.memory_space<vmem>>, %arg2: memref<1x128xf32, #tpu.memory_space<vmem>>, %arg3: memref<1x128xf32, #tpu.memory_space<vmem>>, %arg4: memref<16x128xf32, #tpu.memory_space<vmem>>) attributes {dimension_semantics = [#tpu.dimension_semantics<parallel>], iteration_bounds = array<i64: 1>, scalar_prefetch = 0 : i64, scratch_operands = 0 : i64, tpu.core_type = #tpu.core_type<tc>, window_params = [{transform_indices = @transform_0, window_bounds = array<i64: 16, 128>}, {pipeline_mode = #tpu.pipeline_mode<synchronous>, transform_indices = @transform_1, window_bounds = array<i64: 1, 128>}, {pipeline_mode = #tpu.pipeline_mode<synchronous>, transform_indices = @transform_2, window_bounds = array<i64: 1, 128>}, {transform_indices = @transform_3, window_bounds = array<i64: 16, 128>}]} {
    %c0 = arith.constant 0 : index
    %c0_0 = arith.constant 0 : index
    %0 = vector.load %arg1[%c0, %c0_0] : memref<16x128xf32, #tpu.memory_space<vmem>>, vector<16x128xf32>
    %c0_1 = arith.constant 0 : index
    %c0_2 = arith.constant 0 : index
    %1 = vector.load %arg2[%c0_1, %c0_2] : memref<1x128xf32, #tpu.memory_space<vmem>>, vector<1x128xf32>
    %c0_3 = arith.constant 0 : index
    %c0_4 = arith.constant 0 : index
    %2 = vector.load %arg3[%c0_3, %c0_4] : memref<1x128xf32, #tpu.memory_space<vmem>>, vector<1x128xf32>
    %cst = arith.constant dense<0.000000e+00> : vector<16xf32>
    %3 = vector.multi_reduction <add>, %0, %cst [1] : vector<16x128xf32> to vector<16xf32>
    %4 = vector.shape_cast %3 : vector<16xf32> to vector<16x1xf32>
    %cst_5 = arith.constant 1.280000e+02 : f32
    %5 = vector.broadcast %cst_5 : f32 to vector<16x1xf32>
    %6 = arith.divf %4, %5 : vector<16x1xf32>
    %7 = vector.broadcast %6 : vector<16x1xf32> to vector<16x128xf32>
    %8 = arith.subf %0, %7 : vector<16x128xf32>
    %9 = arith.mulf %8, %8 : vector<16x128xf32>
    %cst_6 = arith.constant dense<0.000000e+00> : vector<16xf32>
    %10 = vector.multi_reduction <add>, %9, %cst_6 [1] : vector<16x128xf32> to vector<16xf32>
    %11 = vector.shape_cast %10 : vector<16xf32> to vector<16x1xf32>
    %cst_7 = arith.constant 1.280000e+02 : f32
    %12 = vector.broadcast %cst_7 : f32 to vector<16x1xf32>
    %13 = arith.divf %11, %12 : vector<16x1xf32>
    %14 = vector.broadcast %6 : vector<16x1xf32> to vector<16x128xf32>
    %15 = arith.subf %0, %14 : vector<16x128xf32>
    %cst_8 = arith.constant 9.99999974E-6 : f32
    %16 = vector.broadcast %cst_8 : f32 to vector<16x1xf32>
    %17 = arith.addf %13, %16 : vector<16x1xf32>
    %18 = math.rsqrt %17 : vector<16x1xf32>
    %19 = vector.broadcast %18 : vector<16x1xf32> to vector<16x128xf32>
    %20 = arith.mulf %15, %19 : vector<16x128xf32>
    %21 = vector.broadcast %1 : vector<1x128xf32> to vector<16x128xf32>
    %22 = arith.mulf %20, %21 : vector<16x128xf32>
    %23 = vector.broadcast %2 : vector<1x128xf32> to vector<16x128xf32>
    %24 = arith.addf %22, %23 : vector<16x128xf32>
    %c0_9 = arith.constant 0 : index
    %c0_10 = arith.constant 0 : index
    %25 = vector.load %arg4[%c0_9, %c0_10] : memref<16x128xf32, #tpu.memory_space<vmem>>, vector<16x128xf32>
    tpu.vector_store %arg4[%c0_9, %c0_10], %24 {strides = array<i32>} : memref<16x128xf32, #tpu.memory_space<vmem>>, vector<16x128xf32>,
    return
  }
  func.func @transform_0(%arg0: i32) -> (i32, i32) {
    %c0_i32 = arith.constant 0 : i32
    %c0_i32_0 = arith.constant 0 : i32
    return %arg0, %c0_i32 : i32, i32
  }
  func.func @transform_1(%arg0: i32) -> (i32, i32) {
    %c0_i32 = arith.constant 0 : i32
    %c0_i32_0 = arith.constant 0 : i32
    %c0_i32_1 = arith.constant 0 : i32
    return %c0_i32, %c0_i32_0 : i32, i32
  }
  func.func @transform_2(%arg0: i32) -> (i32, i32) {
    %c0_i32 = arith.constant 0 : i32
    %c0_i32_0 = arith.constant 0 : i32
    %c0_i32_1 = arith.constant 0 : i32
    return %c0_i32, %c0_i32_0 : i32, i32
  }
  func.func @transform_3(%arg0: i32) -> (i32, i32) {
    %c0_i32 = arith.constant 0 : i32
    %c0_i32_0 = arith.constant 0 : i32
    return %arg0, %c0_i32 : i32, i32
  }
}

</mosaic_0001>

<bundles_post_ra>
// kernel: tpu_custom_call.1
= control target key start
LH: loop header
LB: loop body
LE: loop exit
PB: predicated region body
PF: predicated region fallthrough
CT: control target
= control target key end

     0   :  { %6 = vsyncpa [#allocation3], 0  ;;  %s482_s0 = inlined_call_operand.hbm [shape: f32[8,128], index: 0, kind: input, shape index: {}]   ;;  %s483_s1 = inlined_call_operand.hbm [shape: f32[16,128], index: 1, kind: output, shape index: {}]  }
   0x1   :  { %7 = vsyncpa [#allocation4], 0 }
   0x2   :  { %9 = vsyncpa [#allocation4 + $0x1], 0  ;;  %s352_s6 = smov 0   ;;  %s354_s7 = smov 0  }
   0x3   :  { %s356_s8 = smov 0   ;;  %s358_s9 = smov 0  }
   0x4 LB: > { %s373_s10 = sadd.s32 4294967295, %s338_s9   ;;  %s184_s11 = sadd.s32 4294967294, %s338_s9   ;;  %s338_s9 = sphi %s358_s9, %s499_s9   ;;  %s334_s8 = sphi %s356_s8, %s498_s8   ;;  %s330_s7 = sphi %s354_s7, %s497_s7   ;;  %s326_s6 = sphi %s352_s6, %s496_s6  }
   0x5   : > { %s377_s12 = sadd.s32 1, %s338_s9   ;;  %s43_s13 = sadd.s32 1, %s334_s8 }
   0x6   : > { %s40_s14 = ssub.s32 %s338_s9, %s377_s12  ;;  %p53_p0 = scmp.ne.s32.totalorder %s334_s8, %s330_s7 }
   0x7   : > { %p41_p1 = scmp.eq.s32.totalorder %s40_s14, 0  ;;  %p54_p2 = scmp.eq.s32.totalorder %s373_s10, 1 }
   0x8   : > { %p59_p3 = scmp.ne.s32.totalorder %s330_s7, %s326_s6  ;;  %p60_p4 = scmp.eq.s32.totalorder %s184_s11, 1 }
   0x9   : > { %s388_s15 = scalar_select %p41_p1, %s334_s8, %s43_s13  }
   0xa   : > { %p390_p5 = por %p54_p2, %p53_p0  ;;  %p394_p6 = por %p60_p4, %p59_p3 }
   0xb   : > { %p185_p7 = scmp.ge.s32.totalorder %s338_s9, 1  ;;  %p67_p8 = scmp.lt.s32.totalorder %s338_s9, 3 }
   0xc   : > { %s487_s16 = scalar_select %p390_p5, 1, 0 }
   0xd   : > { %s488_s17 = scalar_select %p394_p6, 1, 0 }
   0xe   : > { %p484_p9 = scmp.eq.s32.totalorder %s373_s10, 0  ;;  %p401_p10 = pnand %p185_p7, %p67_p8 }
   0xf   : > { %s340_s19 = smov [#allocation2]   ;;  %s244_s24 = scalar_lea.hbm %s482_s0, 128 }
  0x10   : > { %s489_s18 = scalar_select %p401_p10, 1, 0 }
  0x11   : > { %s80_s20 = sshll.u32 %s340_s19, 4  ;;  %p200_p11 = pneg %p401_p10  ;;  %s81_s20 = int_to_ptr.vmem [resolvable:$true] %s80_s20 }
  0x12   : > { %p245_p13 = scmp.ne.s32.totalorder %s482_s0, %s244_s24  ;;  %p251_p3 = scmp.lt.u32.totalorder %s244_s24, %s482_s0 }
  0x13   : > { %p409_p12 = pnand %p484_p9, %p200_p11 }
  0x15   : > { %p246_p0 = pneg %p409_p12 }
  0x17   : > { %p247_p1 = pnand %p246_p0, %p245_p13 }
  0x19   : > { %p248_p2 = pneg %p247_p1 }
  0x1b   : > { %p253_p4 = pnand %p251_p3, %p248_p2 }
  0x1d   : > { %256 = shalt.err (!%p253_p4)
}
  0x1e   : > { %s257_s29 = scalar_lea.vmem %s81_s20, 128  ;;  %p265_p9 = scmp.lt.s32.totalorder %s81_s20, %s81_s20 }
  0x1f   : > { %p258_p7 = scmp.ne.s32.totalorder %s81_s20, %s257_s29  ;;  %p266_p6 = scmp.lt.s32.totalorder %s257_s29, %s257_s29 }
  0x21   : > { %p260_p8 = pnand %p258_p7, %p246_p0  ;;  %p267_p5 = por %p266_p6, %p265_p9 }
  0x23   : > { %p261_p11 = pneg %p260_p8 }
  0x25   : > { %p268_p10 = pnand %p267_p5, %p261_p11 }
  0x27   : > { %271 = shalt.err (!%p268_p10)
}
  0x28   : > { %203 = dma.hbm_to_vmem [thread:$0]  (!%p409_p12), %s482_s0, 128, %s81_s20, [#allocation3]  }
  0x29   : > { %p491_p13 = scmp.ne.s32.totalorder %s489_s18, 0 }
  0x2a   : > { %p492_p1 = scmp.eq.s32.totalorder (!%p491_p13), %s373_s10, 0 }
  0x2b   : > { %93 = sbr.rel (%p491_p13) target bundleno = 77 (0x4d), region = 24 }
  0x32   : > { %317 = dma.done.wait (%p492_p1), [#allocation3], 128   ;;  %p493_p0 = pmov %p492_p1 }
  0x33   : > { %s105_s3 = sand.u32 1, %s330_s7   ;;  %s191_s13 = sshll.u32 %s373_s10, 7  ;;  %v108_v0 = vld [vmem:[#allocation2] sm:$0xff] }
  0x34   : > { %319 = vsyncadd (%p493_p0), [#allocation3], 4294967168  ;;  %s189_s4 = sshll.u32 %s105_s3, 3  ;;  %v109_v1 = vmul.f32 2.0, %v108_v0  ;;  %s442_s19 = scalar_lea.hbm %s483_s1, %s191_s13 }
  0x35   : > { %s107_s5 = scalar_lea.vmem [#allocation5], %s189_s4  ;;  %s112_s20 = scalar_lea.sflag [#allocation4], %s105_s3 }
  0x36   : > { %s125_s11 = sshll.u32 %s107_s5, 4  ;;  %110 = vst [vmem:[%s107_s5] sm:$0xff] %v109_v1  ;;  %p494_p6 = scmp.ne.s32.totalorder %s487_s16, 0  ;;  %s437_s11 = int_to_ptr.vmem [resolvable:$true] %s125_s11 }
  0x37   : > { %s272_s21 = scalar_lea.vmem %s437_s11, 128  ;;  %s341_s10 = smov [#allocation5]  }
  0x38   : > { %p273_p5 = scmp.ne.s32.totalorder %s437_s11, %s272_s21  ;;  %s276_s22 = sshll.u32 %s341_s10, 4  ;;  %s277_s22 = int_to_ptr.vmem [resolvable:$false] %s276_s22 }
  0x39   : > { %s278_s23 = scalar_lea.vmem %s277_s22, 256  ;;  %p279_p12 = scmp.lt.s32.totalorder %s437_s11, %s277_s22 }
  0x3a   : > { %p274_p9 = pnand %p273_p5, %p494_p6  ;;  %p280_p2 = scmp.lt.s32.totalorder %s278_s23, %s272_s21 }
  0x3c   : > { %p275_p10 = pneg %p274_p9  ;;  %p281_p3 = por %p280_p2, %p279_p12 }
  0x3e   : > { %p282_p4 = pnand %p281_p3, %p275_p10 }
  0x40   : > { %285 = shalt.err (!%p282_p4)
}
  0x41   : > { %s286_s24 = scalar_lea.hbm %s442_s19, 128  ;;  %s290_s27 = scalar_lea.hbm %s483_s1, 256 }
  0x42   : > { %p287_p7 = scmp.ne.s32.totalorder %s442_s19, %s286_s24  ;;  %p291_p13 = scmp.lt.u32.totalorder %s442_s19, %s483_s1 }
  0x43   : > { %p292_p1 = scmp.lt.u32.totalorder %s290_s27, %s286_s24  ;;  %p294_p5 = scmp.lt.u32.totalorder %s286_s24, %s442_s19 }
  0x44   : > { %p288_p8 = pnand %p287_p7, %p494_p6 }
  0x45   : > { %p293_p0 = por %p292_p1, %p291_p13 }
  0x46   : > { %p289_p11 = pneg %p288_p8 }
  0x47   : > { %p295_p9 = por %p294_p5, %p293_p0 }
  0x49   : > { %p296_p10 = pnand %p295_p9, %p289_p11 }
  0x4b   : > { %299 = shalt.err (!%p296_p10)
}
  0x4c   : > { %198 = dma.vmem_to_hbm [thread:$0]  (%p494_p6), %s437_s11, 128, %s442_s19, %s112_s20  }
  0x4d PF: > { %p210_p12 = scmp.ge.s32.totalorder %s338_s9, 2  ;;  %s137_s30 = sand.u32 1, %s326_s6  }
  0x4e   : > { %p495_p2 = scmp.ne.s32.totalorder %s488_s17, 0  ;;  %s138_s2 = scalar_lea.sflag [#allocation4], %s137_s30 }
  0x50   : > { %p205_p3 = pnand %p210_p12, %p495_p2 }
  0x52   : > { %321 = dma.done.wait (!%p205_p3), %s138_s2, 128  }
  0x53   : > { %323 = vsyncadd (!%p205_p3), %s138_s2, 4294967168  ;;  %p12_p4 = scmp.ge.s32.totalorder %s377_s12, 4   ;;  %s496_s6 = smov %s330_s7 }
  0x54   : > { %s497_s7 = smov %s334_s8  ;;  %s498_s8 = smov %s388_s15 }
  0x55   : > { %s499_s9 = smov %s377_s12  ;;  %14 = sbr.rel (!%p12_p4) target bundleno = 4 (0x4), region = 61 }
  0x5c   :  { %143 = vsyncpa [#allocation3], 1 }
  0x5d   :  { %145 = vsyncpa [#allocation3 + $0x1], 1 }
  0x5e   :  { %146 = vsyncpa [#allocation4], 1 }
  0x5f   :  { %148 = vsyncpa [#allocation4 + $0x1], 1 }

// kernel: cross_modal_transformer.7
= control target key start
LH: loop header
LB: loop body
LE: loop exit
PB: predicated region body
PF: predicated region fallthrough
CT: control target
= control target key end

     0   :  { %s1930_s29 = smov 0   ;;  %s1932_s30 = smov 0   ;;  %s2187_s0 = inlined_call_operand.vmem [shape: f32[2,16,128], index: 0, kind: input, shape index: {}, may-alias: {0,14}]   ;;  %s2188_s1 = inlined_call_operand.vmem [shape: f32[2,16,128], index: 1, kind: input, shape index: {}]   ;;  %s2189_s2 = inlined_call_operand.vmem [shape: f32[1,128], index: 2, kind: input, shape index: {}]   ;;  %s2190_s3 = inlined_call_operand.vmem [shape: f32[1,128], index: 3, kind: input, shape index: {}]   ;;  %s2191_s4 = inlined_call_operand.vmem [shape: f32[1,128], index: 4, kind: input, shape index: {}]   ;;  %s2192_s5 = inlined_call_operand.vmem [shape: f32[1,128], index: 5, kind: input, shape index: {}]   ;;  %s2193_s6 = inlined_call_operand.vmem [shape: f32[1,128], index: 6, kind: input, shape index: {}]   ;;  %s2194_s7 = inlined_call_operand.vmem [shape: f32[1,128], index: 7, kind: input, shape index: {}]   ;;  %s2195_s8 = inlined_call_operand.vmem [shape: bf16[128,128], index: 8, kind: input, shape index: {}]   ;;  %s2196_s9 = inlined_call_operand.vmem [shape: f32[1,128], index: 9, kind: input, shape index: {}]   ;;  %s2197_s10 = inlined_call_operand.vmem [shape: bf16[128,256], index: 10, kind: input, shape index: {}]   ;;  %s2198_s11 = inlined_call_operand.vmem [shape: f32[1,256], index: 11, kind: input, shape index: {}]   ;;  %s2199_s12 = inlined_call_operand.vmem [shape: bf16[128,128], index: 12, kind: input, shape index: {}]   ;;  %s2200_s13 = inlined_call_operand.vmem [shape: f32[1,128], index: 13, kind: input, shape index: {}]   ;;  %s2201_s14 = inlined_call_operand.vmem [shape: f32[2,16,128], index: 14, kind: output, shape index: {}, may-alias: {0,14}]  }
   0x1   :  { %s1934_s15 = smov 0  }
   0x2 LB: > { %s36_s16 = sadd.s32 1, %s1843_s30  ;;  %p1549_p0 = scmp.ge.s32.totalorder %s1847_s15, 1  ;;  %s1847_s15 = sphi %s1934_s15, %s24_s15   ;;  %s1843_s30 = sphi %s1932_s30, %s2203_s30   ;;  %s1839_s29 = sphi %s1930_s29, %s2202_s29  }
   0x3   : > { %p38_p1 = scmp.ge.s32.totalorder %s36_s16, 2  ;;  %p441_p2 = scmp.lt.s32.totalorder %s1847_s15, 3 }
   0x5   : > { %s2205_s16 = smov (%p38_p1, %s36_s16), 0  ;;  %p442_p3 = pnand %p1549_p0, %p441_p2 }
   0x6   : > { %p498_p4 = scmp.lt.s32.totalorder (!%p442_p3), %s1839_s29, 1  ;;  %v1761_v11 = vld [vmem:[%s2197_s10 + $0x4] ss:$8 sps:$4 sm:$0xff] (!%p442_p3)   ;;  %v1763_v12 = vld [vmem:[%s2197_s10] ss:$8 sps:$4 sm:$0xff] (!%p442_p3)   ;;  %v1849_v35 = vmov (!%p442_p3), 0  }
   0x7   : > { %445 = sbr.rel (%p442_p3) target bundleno = 2494 (0x9be), region = 76  ;;  %v1764_v13 = vld [vmem:[%s2197_s10 + $0x14] ss:$8 sps:$4 sm:$0xff] (!%p442_p3)   ;;  %839 = vmatprep.subr.bf16.mxu1 (!%p442_p3), %v1761_v11  ;;  %v1556_v20 = vld [vmem:[%s2189_s2] ss:$0 sm:$0xff] (!%p442_p3)  ;;  %871 = vmatprep.mubr.bf16.mxu1 (!%p442_p3), %v1849_v35  ;;  %v1850_v42 = vmov (!%p442_p3), 0.0  }
   0x8   : > { %840 = vmatpush1.bf16.msra.mxu1 (!%p442_p3), %v1763_v12  ;;  %v1557_v22 = vld [vmem:[%s2190_s3] ss:$0 sm:$0xff] (!%p442_p3)  ;;  %v1766_v27 = vld [vmem:[%s2197_s10 + $0x10] ss:$8 sps:$4 sm:$0xff] (!%p442_p3)   ;;  %v1767_v28 = vld [vmem:[%s2197_s10 + $0x24] ss:$8 sps:$4 sm:$0xff] (!%p442_p3)   ;;  %1643 = vmatprep.subr.bf16.mxu0 (!%p442_p3), %v1850_v42 }
   0x9   : > { %841 = vmatprep.subr.bf16.mxu1 (!%p442_p3), %v1764_v13  ;;  %v1769_v29 = vld [vmem:[%s2197_s10 + $0x20] ss:$8 sps:$4 sm:$0xff] (!%p442_p3)   ;;  %v1770_v30 = vld [vmem:[%s2197_s10 + $0x34] ss:$8 sps:$4 sm:$0xff] (!%p442_p3)   ;;  %v1772_v31 = vld [vmem:[%s2197_s10 + $0x30] ss:$8 sps:$4 sm:$0xff] (!%p442_p3)  }
   0xa   : > { %v1773_v32 = vld [vmem:[%s2197_s10 + $0x44] ss:$8 sps:$4 sm:$0xff] (!%p442_p3)   ;;  %v1775_v33 = vld [vmem:[%s2197_s10 + $0x40] ss:$8 sps:$4 sm:$0xff] (!%p442_p3)   ;;  %v1776_v34 = vld [vmem:[%s2197_s10 + $0x54] ss:$8 sps:$4 sm:$0xff] (!%p442_p3)  }
   0xb   : > { %v1778_v36 = vld [vmem:[%s2197_s10 + $0x50] ss:$8 sps:$4 sm:$0xff] (!%p442_p3)   ;;  %v1779_v37 = vld [vmem:[%s2197_s10 + $0x64] ss:$8 sps:$4 sm:$0xff] (!%p442_p3)   ;;  %v1781_v38 = vld [vmem:[%s2197_s10 + $0x60] ss:$8 sps:$4 sm:$0xff] (!%p442_p3)  }
   0xc   : > { %842 = vmatpush1.bf16.msra.mxu1 (!%p442_p3), %v1766_v27  ;;  %v1782_v39 = vld [vmem:[%s2197_s10 + $0x74] ss:$8 sps:$4 sm:$0xff] (!%p442_p3)   ;;  %v1784_v40 = vld [vmem:[%s2197_s10 + $0x70] ss:$8 sps:$4 sm:$0xff] (!%p442_p3)   ;;  %v1785_v41 = vld [vmem:[%s2195_s8] sm:$0xff] (!%p442_p3)   ;;  %vm1851_vm0 = vmmov (!%p442_p3), 0  }
   0xd   : > { %843 = vmatprep.subr.bf16.mxu1 (!%p442_p3), %v1767_v28  ;;  %1644 = vmatpush3.bf16.msra.mxu0 (!%p442_p3), %v1785_v41  ;;  %v1786_v43 = vld [vmem:[%s2195_s8 + $0x8] sm:$0xff] (!%p442_p3)   ;;  %v1558_v56 = vld [vmem:[%s2191_s4] ss:$0 sm:$0xff] (!%p442_p3)  ;;  %v1787_v58 = vld [vmem:[%s2195_s8 + $0x10] sm:$0xff] (!%p442_p3)   ;;  %vm886_vm1 = vcmask (!%p442_p3), 261120   ;;  %vm933_vm2 = vcmask (!%p442_p3), 130048  }
   0xe   : > { %s2207_s29 = smov (!%p498_p4, %s1839_s29), 1  ;;  %1645 = vmatprep.subr.bf16.mxu0 %v1850_v42  ;;  %v1559_v61 = vld [vmem:[%s2192_s5] ss:$0 sm:$0xff]  ;;  %v1788_v63 = vld [vmem:[%s2195_s8 + $0x18] sm:$0xff]   ;;  %1659 = vmatprep.mubr.msk.bf16.mxu0 %vm1851_vm0, %v1850_v42  ;;  %s1852_s28 = smov 96   ;;  %vm1105_vm3 = vcmask 523520  }
   0xf   : > { %s1948_s17 = sshll.u32 %s2207_s29, 4  ;;  %s1853_s29 = smov 32   ;;  %vm1219_vm4 = vcmask 785920   ;;  %vm1333_vm5 = vcmask 1048320  }
  0x10   : > { %s505_s20 = scalar_lea.vmem %s2187_s0, %s1948_s17  ;;  %s510_s23 = scalar_lea.vmem %s2188_s1, %s1948_s17  ;;  %844 = vmatpush1.bf16.msra.mxu1 %v1769_v29 }
  0x11   : > { %v1954_v0 = vld [vmem:[%s505_s20] sm:$0xff]  ;;  %v522_v2 = vld [vmem:[%s510_s23 + $0x8] sm:$0xff]  ;;  %845 = vmatprep.subr.bf16.mxu1 %v1770_v30  ;;  %1646 = vmatpush3.bf16.msra.mxu0 %v1786_v43  ;;  %s1854_s18 = smov 64   ;;  %s518_s27 = scalar_lea.vmem %s2201_s14, %s1948_s17 }
  0x12   : > { %525 = vadd.xlane.f32.xlu0 %v1954_v0  ;;  %v521_v1 = vld [vmem:[%s510_s23] sm:$0xff]  ;;  %1647 = vmatprep.subr.bf16.mxu0 %v1850_v42 }
  0x13   : > { %553 = vadd.xlane.f32.xlu1 %v521_v1 }
  0x14   : > { %846 = vmatpush1.bf16.msra.mxu1 %v1772_v31 }
  0x15   : > { %847 = vmatprep.subr.bf16.mxu1 %v1773_v32  ;;  %1648 = vmatpush3.bf16.msra.mxu0 %v1787_v58 }
  0x16   : > { %1649 = vmatprep.subr.bf16.mxu0 %v1850_v42 }
  0x17   : > { %555 = vadd.xlane.f32.xlu1 %v522_v2 }
  0x18   : > { %848 = vmatpush1.bf16.msra.mxu1 %v1775_v33 }
  0x19   : > { %849 = vmatprep.subr.bf16.mxu1 %v1776_v34  ;;  %1650 = vmatpush3.bf16.msra.mxu0 %v1788_v63 }
  0x1a   : > { %1651 = vmatprep.subr.bf16.mxu0 %v1850_v42 }
  0x1c   : > { %850 = vmatpush1.bf16.msra.mxu1 %v1778_v36  ;;  %v1562_v36 = vld [vmem:[%s2196_s9] ss:$0 sm:$0xff] }
  0x1d   : > { %851 = vmatprep.subr.bf16.mxu1 %v1779_v37 }
  0x20   : > { %852 = vmatpush1.bf16.msra.mxu1 %v1781_v38 }
  0x21   : > { %853 = vmatprep.subr.bf16.mxu1 %v1782_v39 }
  0x24   : > { %854 = vmatpush1.bf16.msra.mxu1 %v1784_v40 }
  0x25   : > { %1663 = vmatprep.subr.bf16.mxu1 %v1850_v42 }
  0x9f   : > { %v526_v3 = vpop.xlane.xlu0 %525 }
  0xa0   : > { %v528_v4 = vmul.f32 0.0078125, %v526_v3  ;;  %v554_v5 = vpop.xlane.xlu1 %553  ;;  %v1789_v3 = vld [vmem:[%s2195_s8 + $0x20] sm:$0xff]  }
  0xa1   : > { %v557_v6 = vmul.f32 0.0078125, %v554_v5  ;;  %1652 = vmatpush3.bf16.msra.mxu0 %v1789_v3  ;;  %v1790_v5 = vld [vmem:[%s2195_s8 + $0x28] sm:$0xff]  }
  0xa2   : > { %v529_v7 = vsub.f32 %v1954_v0, %v528_v4  ;;  %1653 = vmatprep.subr.bf16.mxu0 %v1850_v42 }
  0xa3   : > { %v1962_v8 = vsub.f32 %v521_v1, %v557_v6  ;;  %v1791_v6 = vld [vmem:[%s2195_s8 + $0x30] sm:$0xff]  }
  0xa4   : > { %v530_v9 = vmul.f32 %v529_v7, %v529_v7  ;;  %v556_v17 = vpop.xlane.xlu1 %555 }
  0xa5   : > { %v561_v10 = vmul.f32 %v1962_v8, %v1962_v8  ;;  %v558_v18 = vmul.f32 0.0078125, %v556_v17  ;;  %1654 = vmatpush3.bf16.msra.mxu0 %v1790_v5  ;;  %v1560_v17 = vld [vmem:[%s2193_s6] ss:$0 sm:$0xff] }
  0xa6   : > { %531 = vadd.xlane.f32.xlu0 %v530_v9  ;;  %1655 = vmatprep.subr.bf16.mxu0 %v1850_v42 }
  0xa7   : > { %563 = vadd.xlane.f32.xlu1 %v561_v10  ;;  %v560_v23 = vsub.f32 %v522_v2, %v558_v18  ;;  %v747_v10 = vld [vmem:[%s2198_s11] sm:$0x3] }
  0xa9   : > { %v562_v26 = vmul.f32 %v560_v23, %v560_v23  ;;  %1656 = vmatpush3.bf16.msra.mxu0 %v1791_v6 }
  0xaa   : > { %1657 = vmatprep.subr.bf16.mxu0 %v1850_v42 }
 0x133   : > { %v532_v14 = vpop.xlane.xlu0 %531 }
 0x134   : > { %v533_v15 = vmul.f32 0.0078125, %v532_v14  ;;  %v564_v44 = vpop.xlane.xlu1 %563 }
 0x135   : > { %v567_v45 = vmul.f32 0.0078125, %v564_v44 }
 0x136   : > { %v534_v16 = vadd.f32 1e-05, %v533_v15 }
 0x137   : > { %v569_v46 = vadd.f32 1e-05, %v567_v45 }
 0x138   : > { %1801 = vrsqrt.f32 %v534_v16 }
 0x139   : > { %1803 = vrsqrt.f32 %v569_v46 }
 0x142   : > { %v1802_v19 = vpop.eup %1801 }
 0x143   : > { %v536_v21 = vmul.f32 %v1802_v19, %v529_v7  ;;  %v1804_v54 = vpop.eup %1803  ;;  %v1792_v7 = vld [vmem:[%s2195_s8 + $0x38] sm:$0xff]   ;;  %v1561_v19 = vld [vmem:[%s2194_s7] ss:$0 sm:$0xff] }
 0x144   : > { %v573_v55 = vmul.f32 %v1804_v54, %v1962_v8  ;;  %1658 = vmatpush3.bf16.msra.mxu0 %v1792_v7  ;;  %v749_v8 = vlaneseq }
 0x145   : > { %v543_v24 = vmul.f32 %v1556_v20, %v536_v21  ;;  %1687 = vmatprep.subr.bf16.mxu0 %v1850_v42 }
 0x146   : > { %v581_v60 = vmul.f32 %v1558_v56, %v573_v55  ;;  %v750_v9 = vshrl.u32 %v749_v8, 7 }
 0x147   : > { %v550_v25 = vadd.f32 %v1557_v22, %v543_v24 }
 0x148   : > { %v589_v1 = vadd.f32 %v1559_v61, %v581_v60  ;;  %v755_v11 = vsub.s32 1, %v750_v9 }
 0x149   : > { %593 = vadd.xlane.f32.xlu0 %v550_v25 }
 0x14a   : > { %v756_v12 = vrot.slane %v747_v10, %v755_v11 }
 0x14d   : > { %565 = vadd.xlane.f32.xlu0 %v562_v26 }
 0x1d6   : > { %v594_v47 = vpop.xlane.xlu0 %593 }
 0x1d7   : > { %v595_v48 = vmul.f32 0.0078125, %v594_v47 }
 0x1d9   : > { %v596_v49 = vsub.f32 %v550_v25, %v595_v48 }
 0x1da   : > { %v566_v50 = vpop.xlane.xlu0 %565 }
 0x1db   : > { %v568_v51 = vmul.f32 0.0078125, %v566_v50  ;;  %v597_v52 = vmul.f32 %v596_v49, %v596_v49 }
 0x1dd   : > { %v570_v53 = vadd.f32 1e-05, %v568_v51  ;;  %598 = vadd.xlane.f32.xlu1 %v597_v52 }
 0x1df   : > { %1805 = vrsqrt.f32 %v570_v53 }
 0x1e9   : > { %v1806_v57 = vpop.eup %1805 }
 0x1ea   : > { %v574_v59 = vmul.f32 %v1806_v57, %v560_v23  ;;  %v751_v23 = vsub.s32 0, %v750_v9 }
 0x1ec   : > { %v582_v62 = vmul.f32 %v1558_v56, %v574_v59  ;;  %v752_v24 = vrot.slane %v747_v10, %v751_v23 }
 0x1ee   : > { %v590_v2 = vadd.f32 %v1559_v61, %v582_v62 }
 0x1f0   : > { %v730_v4 = vpack.c.bf16 %v590_v2, %v589_v1 }
 0x1f2   : > { %872 = vmatmul.mubr.bf16.vlgmr.msra.gmra.mrb[0].mxu1 %v730_v4 }
 0x1f3   : > { %1665 = vmatprep.mubr.msk.bf16.mxu1 %vm1851_vm0, %v1850_v42 }
 0x26a   : > { %v599_v13 = vpop.xlane.xlu1 %598 }
 0x26b   : > { %v600_v14 = vmul.f32 0.0078125, %v599_v13 }
 0x26d   : > { %v601_v15 = vadd.f32 1e-05, %v600_v14 }
 0x26f   : > { %1807 = vrsqrt.f32 %v601_v15 }
 0x279   : > { %v1808_v16 = vpop.eup %1807 }
 0x27a   : > { %v603_v18 = vmul.f32 %v1808_v16, %v596_v49 }
 0x27c   : > { %v610_v20 = vmul.f32 %v1560_v17, %v603_v18 }
 0x27e   : > { %v617_v21 = vadd.f32 %v1561_v19, %v610_v20 }
 0x280   : > { %v618_v22 = vpack.c.bf16 %v617_v21, %v617_v21 }
 0x282   : > { %1660 = vmatmul.mubr.bf16.vlgmr.msra.gmra.mrb[0].mxu0 %v618_v22 }
 0x283   : > { %1689 = vmatprep.mubr.msk.bf16.mxu0 %vm1851_vm0, %v1850_v42 }
 0x2c5   : > { %v873_v25 = vpop.f32.mrb[0].mxu1 }
 0x2c6   : > { %v875_v26 = vpop.f32.mrb[1].mxu1  ;;  %v874_v29 = vadd.f32 %v873_v25, %v752_v24 }
 0x2c7   : > { %v876_v27 = vadd.f32 %v875_v26, %v756_v12  ;;  %v877_v28 = vpop.f32.mrb[2].mxu1 }
 0x2c8   : > { %v878_v30 = vadd.f32 %v877_v28, %v752_v24  ;;  %v879_v31 = vpop.f32.mrb[3].mxu1 }
 0x2c9   : > { %v880_v32 = vadd.f32 %v879_v31, %v756_v12 }
 0x2ca   : > { %v884_v33 = vpack.c.bf16 %v878_v30, %v874_v29 }
 0x2cb   : > { %v2076_v34 = vpack.c.bf16 %v880_v32, %v876_v27 }
 0x2cc   : > { %v891_v35 = vsel %vm886_vm1, %v884_v33, 0 }
 0x2cd   : > { %1664 = vmatpush3.bf16.xpose.msra.mxu1 %v891_v35 }
 0x2ce   : > { %1669 = vmatprep.subr.bf16.mxu1 %v1850_v42 }
 0x355   : > { %v724_v37 = vpop.f32.mrb[0].mxu0 }
 0x356   : > { %v725_v38 = vadd.f32 %v1562_v36, %v724_v37  ;;  %v1661_v39 = vpop.f32.mrb[1].mxu0 }
 0x357   : > { %v727_v40 = vpop.f32.mrb[2].mxu0 }
 0x358   : > { %v882_v41 = vmul.f32 0.17677669, %v725_v38  ;;  %v1662_v43 = vpop.f32.mrb[3].mxu0 }
 0x35a   : > { %v883_v44 = vpack.c.bf16 %v882_v41, %v882_v41 }
 0x35c   : > { %1666 = vmatmul.mubr.msk.bf16.vlgmr.msra.gmra.mrb[4].mxu1 %vm886_vm1, %v883_v44 }
 0x35d   : > { %1670 = vmatpush3.bf16.msra.mxu1 %v2076_v34  ;;  %1671 = vmatprep.mubr.msk.bf16.mxu1 %vm1851_vm0, %v1850_v42 }
 0x35e   : > { %1675 = vmatprep.subr.bf16.mxu1 %v1850_v42 }
 0x42f   : > { %v927_v45 = vpop.f32.mrb[4].mxu1 }
 0x430   : > { %v1667_v46 = vpop.f32.mrb[5].mxu1  ;;  %v934_v47 = vsel %vm933_vm2, %v927_v45, -inf }
 0x431   : > { %935 = vmax.xlane.f32.xlu0 %v934_v47  ;;  %v930_v48 = vpop.f32.mrb[6].mxu1 }
 0x432   : > { %v1668_v49 = vpop.f32.mrb[7].mxu1 }
 0x447   : > { %994 = vrot.lane.b32.xlu0 %v884_v33, %s1852_s28 }
 0x44b   : > { %1223 = vrot.lane.b32.xlu0 %v884_v33, %s1853_s29 }
 0x4be   : > { %v936_v50 = vpop.xlane.xlu0 %935 }
 0x4bf   : > { %v937_v51 = vsub.f32 %v927_v45, %v936_v50 }
 0x4c1   : > { %v938_v52 = vmul.f32 1.442695, %v937_v51 }
 0x4c2   : > { %v995_v57 = vpop.permute.xlu0 %994 }
 0x4c3   : > { %1809 = vpow2.f32 %v938_v52  ;;  %v1000_v1 = vsel %vm886_vm1, %v995_v57, 0  ;;  %v1795_v57 = vld [vmem:[%s2199_s12 + $0x10] sm:$0xff]  }
 0x4c6   : > { %v1224_v62 = vpop.permute.xlu0 %1223 }
 0x4c7   : > { %v1229_v3 = vsel %vm886_vm1, %v1224_v62, 0 }
 0x4cd   : > { %v1810_v53 = vpop.eup %1809 }
 0x4ce   : > { %v940_v54 = vsel %vm933_vm2, %v1810_v53, 0.0 }
 0x4cf   : > { %941 = vadd.xlane.f32.xlu1 %v940_v54 }
 0x4e0   : > { %991 = vrot.lane.b32.xlu1 %v883_v44, %s1852_s28 }
 0x4e4   : > { %1109 = vrot.lane.b32.xlu1 %v884_v33, %s1854_s18 }
 0x4e8   : > { %1107 = vrot.lane.b32.xlu1 %v883_v44, %s1854_s18 }
 0x4ec   : > { %1221 = vrot.lane.b32.xlu1 %v883_v44, %s1853_s29 }
 0x55c   : > { %v942_v55 = vpop.xlane.xlu1 %941 }
 0x55d   : > { %1811 = vrcp.f32 %v942_v55  ;;  %v1793_v55 = vld [vmem:[%s2199_s12] sm:$0xff]  }
 0x560   : > { %v992_v56 = vpop.permute.xlu1 %991 }
 0x564   : > { %v1110_v58 = vpop.permute.xlu1 %1109 }
 0x565   : > { %v1115_v59 = vsel %vm886_vm1, %v1110_v58, 0  ;;  %v1796_v58 = vld [vmem:[%s2199_s12 + $0x18] sm:$0xff]  }
 0x566   : > { %1688 = vmatpush3.bf16.xpose.msra.mxu0 %v1115_v59  ;;  %v1797_v59 = vld [vmem:[%s2199_s12 + $0x20] sm:$0xff]  }
 0x567   : > { %v1812_v60 = vpop.eup %1811  ;;  %1699 = vmatprep.subr.bf16.mxu0 %v1850_v42 }
 0x568   : > { %v944_v61 = vmul.f32 %v1812_v60, %v1810_v53  ;;  %v1108_v2 = vpop.permute.xlu1 %1107  ;;  %v1798_v60 = vld [vmem:[%s2199_s12 + $0x28] sm:$0xff]  }
 0x56a   : > { %v945_v63 = vpack.c.bf16 %v944_v61, %v944_v61 }
 0x56c   : > { %1672 = vmatmul.mubr.msk.bf16.vlgmr.msra.gmra.mrb[8].mxu1 %vm933_vm2, %v945_v63  ;;  %v1222_v4 = vpop.permute.xlu1 %1221 }
 0x56d   : > { %1676 = vmatpush3.bf16.xpose.msra.mxu1 %v1000_v1  ;;  %1690 = vmatmul.mubr.msk.bf16.vlgmr.msra.gmra.mrb[4].mxu0 %vm886_vm1, %v1108_v2  ;;  %v1799_v2 = vld [vmem:[%s2199_s12 + $0x30] sm:$0xff]  }
 0x56e   : > { %1700 = vmatpush3.bf16.xpose.msra.mxu0 %v1229_v3  ;;  %1677 = vmatprep.mubr.msk.bf16.mxu1 %vm1851_vm0, %v1850_v42  ;;  %v1800_v3 = vld [vmem:[%s2199_s12 + $0x38] sm:$0xff]  }
 0x56f   : > { %1701 = vmatprep.mubr.msk.bf16.mxu0 %vm1851_vm0, %v1850_v42  ;;  %1681 = vmatprep.subr.bf16.mxu1 %v1850_v42 }
 0x570   : > { %1711 = vmatprep.subr.bf16.mxu0 %v1850_v42 }
 0x574   : > { %1678 = vmatmul.mubr.msk.bf16.vlgmr.msra.gmra.mrb[12].mxu1 %vm886_vm1, %v992_v56  ;;  %v1794_v56 = vld [vmem:[%s2199_s12 + $0x8] sm:$0xff]  }
 0x575   : > { %1702 = vmatmul.mubr.msk.bf16.vlgmr.msra.gmra.mrb[8].mxu0 %vm886_vm1, %v1222_v4  ;;  %1683 = vmatprep.mubr.msk.bf16.mxu1 %vm1851_vm0, %v1850_v42 }
 0x576   : > { %1727 = vmatprep.mubr.msk.bf16.mxu0 %vm1851_vm0, %v1850_v42  ;;  %1712 = vmatpush3.bf16.msra.mxu0 %v1793_v55 }
 0x577   : > { %1713 = vmatprep.subr.bf16.mxu0 %v1850_v42 }
 0x57a   : > { %1714 = vmatpush3.bf16.msra.mxu0 %v1794_v56 }
 0x57b   : > { %1715 = vmatprep.subr.bf16.mxu0 %v1850_v42 }
 0x57e   : > { %1716 = vmatpush3.bf16.msra.mxu0 %v1795_v57 }
 0x57f   : > { %1717 = vmatprep.subr.bf16.mxu0 %v1850_v42 }
 0x582   : > { %1718 = vmatpush3.bf16.msra.mxu0 %v1796_v58 }
 0x583   : > { %1719 = vmatprep.subr.bf16.mxu0 %v1850_v42 }
 0x586   : > { %1720 = vmatpush3.bf16.msra.mxu0 %v1797_v59 }
 0x587   : > { %1721 = vmatprep.subr.bf16.mxu0 %v1850_v42 }
 0x58a   : > { %1722 = vmatpush3.bf16.msra.mxu0 %v1798_v60 }
 0x58b   : > { %1723 = vmatprep.subr.bf16.mxu0 %v1850_v42 }
 0x58e   : > { %1724 = vmatpush3.bf16.msra.mxu0 %v1799_v2 }
 0x58f   : > { %1725 = vmatprep.subr.bf16.mxu0 %v1850_v42 }
 0x592   : > { %1726 = vmatpush3.bf16.msra.mxu0 %v1800_v3 }
 0x63f   : > { %v983_v5 = vpop.f32.mrb[8].mxu1 }
 0x640   : > { %989 = vst.msk [vmem:[#allocation2] sm:$0xff] %vm886_vm1, %v983_v5  ;;  %v1673_v6 = vpop.f32.mrb[9].mxu1  ;;  %v1151_v7 = vpop.f32.mrb[4].mxu0 }
 0x641   : > { %v986_v8 = vpop.f32.mrb[10].mxu1  ;;  %v1691_v9 = vpop.f32.mrb[5].mxu0  ;;  %v1157_v10 = vsel %vm933_vm2, %v1151_v7, -inf }
 0x642   : > { %1158 = vmax.xlane.f32.xlu1 %v1157_v10  ;;  %v1674_v11 = vpop.f32.mrb[11].mxu1  ;;  %v1154_v12 = vpop.f32.mrb[6].mxu0 }
 0x643   : > { %v1692_v13 = vpop.f32.mrb[7].mxu0 }
 0x647   : > { %v1036_v14 = vpop.f32.mrb[12].mxu1 }
 0x648   : > { %v1679_v15 = vpop.f32.mrb[13].mxu1  ;;  %v1265_v16 = vpop.f32.mrb[8].mxu0  ;;  %v1042_v17 = vsel %vm933_vm2, %v1036_v14, -inf }
 0x649   : > { %v1703_v18 = vpop.f32.mrb[9].mxu0  ;;  %1043 = vmax.xlane.f32.xlu0 %v1042_v17  ;;  %v1039_v19 = vpop.f32.mrb[14].mxu1  ;;  %v1271_v23 = vsel %vm933_vm2, %v1265_v16, -inf }
 0x64a   : > { %v1680_v20 = vpop.f32.mrb[15].mxu1  ;;  %v1268_v21 = vpop.f32.mrb[10].mxu0 }
 0x64b   : > { %v1704_v22 = vpop.f32.mrb[11].mxu0 }
 0x64d   : > { %1272 = vmax.xlane.f32.xlu0 %v1271_v23 }
 0x6cf   : > { %v1159_v24 = vpop.xlane.xlu1 %1158 }
 0x6d0   : > { %v1160_v25 = vsub.f32 %v1151_v7, %v1159_v24 }
 0x6d2   : > { %v1161_v26 = vmul.f32 1.442695, %v1160_v25 }
 0x6d4   : > { %1813 = vpow2.f32 %v1161_v26 }
 0x6d6   : > { %v1044_v27 = vpop.xlane.xlu0 %1043 }
 0x6d7   : > { %v1045_v28 = vsub.f32 %v1036_v14, %v1044_v27 }
 0x6d9   : > { %v1046_v29 = vmul.f32 1.442695, %v1045_v28 }
 0x6da   : > { %v1273_v30 = vpop.xlane.xlu0 %1272 }
 0x6db   : > { %1815 = vpow2.f32 %v1046_v29  ;;  %v1274_v31 = vsub.f32 %v1265_v16, %v1273_v30  ;;  %v1595_v16 = vld [vmem:[%s2200_s13] ss:$0 sm:$0xff] }
 0x6dd   : > { %v1275_v32 = vmul.f32 1.442695, %v1274_v31 }
 0x6de   : > { %v1814_v33 = vpop.eup %1813 }
 0x6df   : > { %1817 = vpow2.f32 %v1275_v32  ;;  %v1163_v35 = vsel %vm933_vm2, %v1814_v33, 0.0 }
 0x6e0   : > { %1164 = vadd.xlane.f32.xlu0 %v1163_v35 }
 0x6e5   : > { %v1816_v36 = vpop.eup %1815 }
 0x6e6   : > { %v1048_v37 = vsel %vm933_vm2, %v1816_v36, 0.0 }
 0x6e7   : > { %1049 = vadd.xlane.f32.xlu0 %v1048_v37 }
 0x6e9   : > { %v1818_v38 = vpop.eup %1817 }
 0x6ea   : > { %v1277_v39 = vsel %vm933_vm2, %v1818_v38, 0.0 }
 0x6eb   : > { %1278 = vadd.xlane.f32.xlu1 %v1277_v39 }
 0x6fc   : > { %1169 = vrot.lane.b32.xlu1 %v2076_v34, %s1854_s18 }
 0x6fd   : > { %1055 = vrot.lane.b32.xlu0 %v2076_v34, %s1852_s28 }
 0x700   : > { %1283 = vrot.lane.b32.xlu1 %v2076_v34, %s1853_s29 }
 0x76d   : > { %v1165_v40 = vpop.xlane.xlu0 %1164 }
 0x774   : > { %v1050_v41 = vpop.xlane.xlu0 %1049 }
 0x775   : > { %1819 = vrcp.f32 %v1050_v41 }
 0x776   : > { %1821 = vrcp.f32 %v1165_v40 }
 0x778   : > { %v1056_v43 = vpop.permute.xlu0 %1055  ;;  %v1279_v44 = vpop.xlane.xlu1 %1278 }
 0x779   : > { %1682 = vmatpush3.bf16.msra.mxu1 %v1056_v43  ;;  %1823 = vrcp.f32 %v1279_v44 }
 0x77a   : > { %1693 = vmatprep.subr.bf16.mxu1 %v1850_v42 }
 0x77c   : > { %v1170_v49 = vpop.permute.xlu1 %1169 }
 0x77f   : > { %v1820_v45 = vpop.eup %1819 }
 0x780   : > { %v1052_v46 = vmul.f32 %v1820_v45, %v1816_v36  ;;  %v1822_v48 = vpop.eup %1821  ;;  %v1284_v52 = vpop.permute.xlu1 %1283 }
 0x781   : > { %v1167_v34 = vmul.f32 %v1822_v48, %v1814_v33 }
 0x782   : > { %v1053_v47 = vpack.c.bf16 %v1052_v46, %v1052_v46 }
 0x783   : > { %v1168_v50 = vpack.c.bf16 %v1167_v34, %v1167_v34  ;;  %v1824_v51 = vpop.eup %1823 }
 0x784   : > { %1684 = vmatmul.mubr.msk.bf16.vlgmr.msra.gmra.mrb[16].mxu1 %vm933_vm2, %v1053_v47  ;;  %v1281_v53 = vmul.f32 %v1824_v51, %v1818_v38 }
 0x785   : > { %1694 = vmatpush3.bf16.msra.mxu1 %v1170_v49  ;;  %1695 = vmatprep.mubr.msk.bf16.mxu1 %vm1851_vm0, %v1850_v42 }
 0x786   : > { %1705 = vmatprep.subr.bf16.mxu1 %v1850_v42  ;;  %v1282_v54 = vpack.c.bf16 %v1281_v53, %v1281_v53 }
 0x78c   : > { %1696 = vmatmul.mubr.msk.bf16.vlgmr.msra.gmra.mrb[20].mxu1 %vm933_vm2, %v1168_v50 }
 0x78d   : > { %1706 = vmatpush3.bf16.msra.mxu1 %v1284_v52  ;;  %1707 = vmatprep.mubr.msk.bf16.mxu1 %vm1851_vm0, %v1850_v42 }
 0x794   : > { %1708 = vmatmul.mubr.msk.bf16.vlgmr.msra.gmra.mrb[24].mxu1 %vm933_vm2, %v1282_v54 }
 0x857   : > { %v1095_v61 = vpop.f32.mrb[16].mxu1 }
 0x858   : > { %1102 = vrot.lane.b32.xlu1 %v1095_v61, %s1853_s29  ;;  %v1685_v62 = vpop.f32.mrb[17].mxu1 }
 0x859   : > { %v1098_v63 = vpop.f32.mrb[18].mxu1 }
 0x85a   : > { %v1686_v1 = vpop.f32.mrb[19].mxu1 }
 0x85f   : > { %v1209_v4 = vpop.f32.mrb[20].mxu1 }
 0x860   : > { %1216 = vrot.lane.b32.xlu0 %v1209_v4, %s1854_s18  ;;  %v1697_v5 = vpop.f32.mrb[21].mxu1 }
 0x861   : > { %v1212_v6 = vpop.f32.mrb[22].mxu1 }
 0x862   : > { %v1698_v7 = vpop.f32.mrb[23].mxu1 }
 0x867   : > { %v1323_v8 = vpop.f32.mrb[24].mxu1 }
 0x868   : > { %1330 = vrot.lane.b32.xlu1 %v1323_v8, %s1852_s28  ;;  %v1709_v9 = vpop.f32.mrb[25].mxu1 }
 0x869   : > { %v1326_v10 = vpop.f32.mrb[26].mxu1 }
 0x86a   : > { %v1710_v11 = vpop.f32.mrb[27].mxu1 }
 0x8ca   : > { %v1103_v12 = vpop.permute.xlu1 %1102 }
 0x8cb   : > { %1106 = vst.msk [vmem:[#allocation2] sm:$0xff] %vm1105_vm3, %v1103_v12 }
 0x8d2   : > { %v1217_v13 = vpop.permute.xlu0 %1216 }
 0x8d3   : > { %1220 = vst.msk [vmem:[#allocation2] sm:$0xff] %vm1219_vm4, %v1217_v13 }
 0x8da   : > { %v1331_v42 = vpop.permute.xlu1 %1330 }
 0x8db   : > { %1334 = vst.msk [vmem:[#allocation2] sm:$0xff] %vm1333_vm5, %v1331_v42 }
 0x8e2   : > { %v1335_v14 = vld [vmem:[#allocation2] sm:$0xff] }
 0x8e3   : > { %v1336_v15 = vpack.c.bf16 %v1335_v14, %v1335_v14 }
 0x8e5   : > { %1728 = vmatmul.mubr.bf16.vlgmr.msra.gmra.mrb[12].mxu0 %v1336_v15 }
 0x9b8   : > { %v1442_v17 = vpop.f32.mrb[12].mxu0 }
 0x9b9   : > { %v1443_v18 = vadd.f32 %v1595_v16, %v1442_v17  ;;  %v1729_v19 = vpop.f32.mrb[13].mxu0 }
 0x9ba   : > { %v1445_v20 = vpop.f32.mrb[14].mxu0 }
 0x9bb   : > { %v1448_v21 = vadd.f32 %v1443_v18, %v1954_v0  ;;  %v1730_v22 = vpop.f32.mrb[15].mxu0 }
 0x9bd   : > { %1449 = vst [vmem:[%s518_s27] sm:$0xff] %v1448_v21 }
 0x9be PF: > { %s24_s15 = sadd.s32 1, %s1847_s15   ;;  %s2202_s29 = smov %s1843_s30 }
 0x9bf   : > { %p21_p5 = scmp.ge.s32.totalorder %s24_s15, 4   ;;  %s2203_s30 = smov %s2205_s16 }
 0x9c1   :  { %23 = sbr.rel (!%p21_p5) target bundleno = 2 (0x2), region = 109 }

// kernel: cross_modal_transformer.6
= control target key start
LH: loop header
LB: loop body
LE: loop exit
PB: predicated region body
PF: predicated region fallthrough
CT: control target
= control target key end

     0   :  { %18 = vsyncpa [#allocation4], 0  ;;  %s2722_s0 = inlined_call_operand.vmem [shape: f32[2,16,128], index: 0, kind: input, shape index: {}]   ;;  %s2723_s1 = inlined_call_operand.vmem [shape: f32[1,128], index: 1, kind: input, shape index: {}]   ;;  %s2724_s2 = inlined_call_operand.vmem [shape: f32[1,128], index: 2, kind: input, shape index: {}]   ;;  %s2725_s3 = inlined_call_operand.vmem [shape: bf16[128,384], index: 3, kind: input, shape index: {}]   ;;  %s2726_s4 = inlined_call_operand.vmem [shape: f32[1,384], index: 4, kind: input, shape index: {}]   ;;  %s2727_s5 = inlined_call_operand.vmem [shape: bf16[128,128], index: 5, kind: input, shape index: {}]   ;;  %s2728_s6 = inlined_call_operand.vmem [shape: f32[1,128], index: 6, kind: input, shape index: {}]   ;;  %s2729_s7 = inlined_call_operand.vmem [shape: f32[1,128], index: 7, kind: input, shape index: {}]   ;;  %s2730_s8 = inlined_call_operand.vmem [shape: f32[1,128], index: 8, kind: input, shape index: {}]   ;;  %s2731_s9 = inlined_call_operand.vmem [shape: bf16[128,128], index: 9, kind: input, shape index: {}]   ;;  %s2732_s10 = inlined_call_operand.hbm [shape: f32[1,128], index: 10, kind: input, shape index: {}]   ;;  %s2733_s11 = inlined_call_operand.vmem [shape: bf16[128,128], index: 11, kind: input, shape index: {}]   ;;  %s2734_s12 = inlined_call_operand.hbm [shape: f32[1,128], index: 12, kind: input, shape index: {}]   ;;  %s2735_s13 = inlined_call_operand.vmem [shape: f32[2,16,128], index: 13, kind: output, shape index: {}]  }
   0x1   :  { %19 = vsyncpa [#allocation6], 0  ;;  %s2314_s25 = smov 0  }
   0x2 LB: > { %s2320_s26 = sadd.s32 4294967295, %s2234_s25   ;;  %p1771_p0 = scmp.ge.s32.totalorder %s2234_s25, 1  ;;  %s2234_s25 = sphi %s2314_s25, %s25_s25  }
   0x3   : > { %p334_p1 = scmp.lt.s32.totalorder %s2234_s25, 3  ;;  %p2736_p2 = scmp.eq.s32.totalorder %s2320_s26, 0 }
   0x4   : > { %s2236_s28 = smov [#allocation3]   ;;  %s2237_s30 = smov [#allocation5]  }
   0x5   : > { %p2325_p3 = pnand %p1771_p0, %p334_p1  ;;  %s374_s29 = sshll.u32 %s2236_s28, 4  ;;  %s375_s29 = int_to_ptr.vmem [resolvable:$true] %s374_s29 }
   0x6   : > { %s388_s14 = sshll.u32 %s2237_s30, 4  ;;  %s2164_s18 = scalar_lea.hbm %s2732_s10, 16  ;;  %s2337_s14 = int_to_ptr.vmem [resolvable:$true] %s388_s14 }
   0x7   : > { %s2738_s27 = scalar_select %p2325_p3, 1, 0 }
   0x8   : > { %p2037_p4 = pneg %p2325_p3  ;;  %p2165_p6 = scmp.ne.s32.totalorder %s2732_s10, %s2164_s18 }
   0x9   : > { %p2171_p10 = scmp.lt.u32.totalorder %s2164_s18, %s2732_s10 }
   0xa   : > { %p2333_p5 = pnand %p2736_p2, %p2037_p4 }
   0xc   : > { %p2166_p7 = pneg %p2333_p5 }
   0xe   : > { %p2167_p8 = pnand %p2166_p7, %p2165_p6 }
  0x10   : > { %p2168_p9 = pneg %p2167_p8 }
  0x12   : > { %p2173_p11 = pnand %p2171_p10, %p2168_p9 }
  0x14   : > { %2176 = shalt.err (!%p2173_p11)
}
  0x15   : > { %s2177_s23 = scalar_lea.vmem %s375_s29, 16  ;;  %s2184_s24 = scalar_lea.vmem %s375_s29, 32 }
  0x16   : > { %p2178_p12 = scmp.ne.s32.totalorder %s375_s29, %s2177_s23  ;;  %p2185_p1 = scmp.lt.s32.totalorder %s375_s29, %s375_s29 }
  0x17   : > { %p2186_p4 = scmp.lt.s32.totalorder %s2184_s24, %s2177_s23 }
  0x18   : > { %p2180_p13 = pnand %p2178_p12, %p2166_p7 }
  0x19   : > { %p2187_p2 = por %p2186_p4, %p2185_p1 }
  0x1a   : > { %p2181_p0 = pneg %p2180_p13 }
  0x1c   : > { %p2188_p3 = pnand %p2187_p2, %p2181_p0 }
  0x1e   : > { %2191 = shalt.err (!%p2188_p3)
}
  0x1f   : > { %2040 = dma.hbm_to_vmem [thread:$0]  (!%p2333_p5), %s2732_s10, 16, %s375_s29, [#allocation4]  }
  0x20   : > { %s2192_s18 = scalar_lea.hbm %s2734_s12, 16 }
  0x21   : > { %p2193_p6 = scmp.ne.s32.totalorder %s2734_s12, %s2192_s18  ;;  %p2199_p3 = scmp.lt.u32.totalorder %s2192_s18, %s2734_s12 }
  0x23   : > { %p2195_p8 = pnand %p2193_p6, %p2166_p7 }
  0x25   : > { %p2196_p2 = pneg %p2195_p8 }
  0x27   : > { %p2201_p9 = pnand %p2199_p3, %p2196_p2 }
  0x29   : > { %2204 = shalt.err (!%p2201_p9)
}
  0x2a   : > { %s2205_s29 = scalar_lea.vmem %s2337_s14, 16  ;;  %s2212_s23 = scalar_lea.vmem %s2337_s14, 32 }
  0x2b   : > { %p2206_p10 = scmp.ne.s32.totalorder %s2337_s14, %s2205_s29  ;;  %p2213_p13 = scmp.lt.s32.totalorder %s2337_s14, %s2337_s14 }
  0x2c   : > { %p2214_p0 = scmp.lt.s32.totalorder %s2212_s23, %s2205_s29 }
  0x2d   : > { %p2208_p11 = pnand %p2206_p10, %p2166_p7 }
  0x2e   : > { %p2215_p1 = por %p2214_p0, %p2213_p13 }
  0x2f   : > { %p2209_p12 = pneg %p2208_p11 }
  0x31   : > { %p2216_p4 = pnand %p2215_p1, %p2209_p12 }
  0x33   : > { %2219 = shalt.err (!%p2216_p4)
}
  0x34   : > { %2043 = dma.hbm_to_vmem [thread:$0]  (!%p2333_p5), %s2734_s12, 16, %s2337_s14, [#allocation6]  }
  0x35   : > { %p2740_p6 = scmp.ne.s32.totalorder %s2738_s27, 0 }
  0x36   : > { %p2741_p7 = scmp.eq.s32.totalorder (!%p2740_p6), %s2320_s26, 0 }
  0x37   : > { %409 = sbr.rel (%p2740_p6) target bundleno = 3041 (0xbe1), region = 72 }
  0x3e   : > { %2225 = dma.done.wait (%p2741_p7), [#allocation4], 16   ;;  %p2742_p8 = pmov %p2741_p7 }
  0x3f   : > { %p2743_p2 = pmov %p2741_p7 }
  0x40   : > { %2227 = vsyncadd (%p2742_p8), [#allocation4], 4294967280 }
  0x41   : > { %2229 = dma.done.wait (%p2743_p2), [#allocation6], 16   ;;  %p2744_p3 = pmov %p2743_p2 }
  0x42   : > { %p457_p9 = scmp.lt.s32.totalorder %s2320_s26, 1  ;;  %v2064_v2 = vld [vmem:[%s2725_s3 + $0x4] ss:$12 sps:$4 sm:$0xff]   ;;  %v2066_v3 = vld [vmem:[%s2725_s3] ss:$12 sps:$4 sm:$0xff]   ;;  %v2238_v4 = vmov 0.0   ;;  %v546_v53 = vlaneseq }
  0x43   : > { %2231 = vsyncadd (%p2744_p3), [#allocation6], 4294967280  ;;  %1901 = vmatprep.subr.bf16.mxu1 %v2238_v4  ;;  %v2067_v5 = vld [vmem:[%s2725_s3 + $0x8] ss:$12 sps:$4 sm:$0xff]   ;;  %689 = vmatprep.subr.bf16.mxu0 %v2064_v2  ;;  %v2070_v15 = vld [vmem:[%s2725_s3 + $0x18] ss:$12 sps:$4 sm:$0xff]  }
  0x44   : > { %s2746_s26 = smov (!%p457_p9, %s2320_s26), 1  ;;  %v2068_v6 = vld [vmem:[%s2725_s3 + $0x1c] ss:$12 sps:$4 sm:$0xff]   ;;  %690 = vmatpush1.bf16.msra.mxu0 %v2066_v3  ;;  %1902 = vmatpush3.bf16.msra.mxu1 %v2067_v5  ;;  %v2071_v16 = vld [vmem:[%s2725_s3 + $0x20] ss:$12 sps:$4 sm:$0xff]   ;;  %v2239_v30 = vmov 0  }
  0x45   : > { %s1847_s27 = sshll.u32 %s2746_s26, 4  ;;  %691 = vmatprep.subr.bf16.mxu0 %v2068_v6  ;;  %1903 = vmatprep.subr.bf16.mxu1 %v2238_v4  ;;  %v2072_v17 = vld [vmem:[%s2725_s3 + $0x34] ss:$12 sps:$4 sm:$0xff]   ;;  %v2074_v18 = vld [vmem:[%s2725_s3 + $0x30] ss:$12 sps:$4 sm:$0xff]   ;;  %vm2240_vm0 = vmmov 0  }
  0x46   : > { %s461_s30 = scalar_lea.vmem %s2722_s0, %s1847_s27  ;;  %v2075_v19 = vld [vmem:[%s2725_s3 + $0x38] ss:$12 sps:$4 sm:$0xff]   ;;  %v2078_v21 = vld [vmem:[%s2725_s3 + $0x48] ss:$12 sps:$4 sm:$0xff]   ;;  %v2079_v22 = vld [vmem:[%s2725_s3 + $0x50] ss:$12 sps:$4 sm:$0xff]   ;;  %721 = vmatprep.mubr.bf16.mxu0 %v2239_v30  ;;  %1917 = vmatprep.mubr.msk.bf16.mxu1 %vm2240_vm0, %v2238_v4 }
  0x47   : > { %v2407_v0 = vld [vmem:[%s461_s30] sm:$0xff]  ;;  %v2409_v1 = vld [vmem:[%s461_s30 + $0x8] sm:$0xff]  ;;  %v2090_v31 = vld [vmem:[%s2725_s3 + $0x90] ss:$12 sps:$4 sm:$0xff]   ;;  %v547_v54 = vshrl.u32 %v546_v53, 7  ;;  %vm778_vm1 = vcmask 261120  }
  0x48   : > { %472 = vadd.xlane.f32.xlu0 %v2407_v0  ;;  %692 = vmatpush1.bf16.msra.mxu0 %v2070_v15  ;;  %v2076_v20 = vld [vmem:[%s2725_s3 + $0x4c] ss:$12 sps:$4 sm:$0xff]   ;;  %v2080_v23 = vld [vmem:[%s2725_s3 + $0x64] ss:$12 sps:$4 sm:$0xff]   ;;  %v2083_v25 = vld [vmem:[%s2725_s3 + $0x68] ss:$12 sps:$4 sm:$0xff]  }
  0x49   : > { %1904 = vmatpush3.bf16.msra.mxu1 %v2071_v16  ;;  %693 = vmatprep.subr.bf16.mxu0 %v2072_v17  ;;  %v2082_v24 = vld [vmem:[%s2725_s3 + $0x60] ss:$12 sps:$4 sm:$0xff]   ;;  %v2084_v26 = vld [vmem:[%s2725_s3 + $0x7c] ss:$12 sps:$4 sm:$0xff]   ;;  %v2086_v27 = vld [vmem:[%s2725_s3 + $0x78] ss:$12 sps:$4 sm:$0xff]  }
  0x4a   : > { %1905 = vmatprep.subr.bf16.mxu1 %v2238_v4  ;;  %v2087_v28 = vld [vmem:[%s2725_s3 + $0x80] ss:$12 sps:$4 sm:$0xff]   ;;  %v2091_v32 = vld [vmem:[%s2725_s3 + $0x98] ss:$12 sps:$4 sm:$0xff]   ;;  %v2094_v34 = vld [vmem:[%s2725_s3 + $0xa8] ss:$12 sps:$4 sm:$0xff]  }
  0x4b   : > { %v2088_v29 = vld [vmem:[%s2725_s3 + $0x94] ss:$12 sps:$4 sm:$0xff]   ;;  %v2092_v33 = vld [vmem:[%s2725_s3 + $0xac] ss:$12 sps:$4 sm:$0xff]   ;;  %v2095_v35 = vld [vmem:[%s2725_s3 + $0xb0] ss:$12 sps:$4 sm:$0xff]  }
  0x4c   : > { %474 = vadd.xlane.f32.xlu0 %v2409_v1  ;;  %694 = vmatpush1.bf16.msra.mxu0 %v2074_v18  ;;  %v1782_v44 = vld [vmem:[%s2723_s1] ss:$0 sm:$0xff]  ;;  %v548_v55 = vsub.s32 0, %v547_v54  ;;  %v556_v57 = vsub.s32 2, %v547_v54  ;;  %v552_v58 = vsub.s32 1, %v547_v54  ;;  %vm826_vm2 = vcmask 130048  }
  0x4d   : > { %1906 = vmatpush3.bf16.msra.mxu1 %v2075_v19  ;;  %695 = vmatprep.subr.bf16.mxu0 %v2076_v20  ;;  %v1783_v48 = vld [vmem:[%s2724_s2] ss:$0 sm:$0xff]  ;;  %s2241_s15 = smov 96   ;;  %s2242_s30 = smov 64   ;;  %vm1028_vm3 = vcmask 523520   ;;  %vm1160_vm4 = vcmask 785920  }
  0x4e   : > { %1907 = vmatprep.subr.bf16.mxu1 %v2238_v4  ;;  %v544_v56 = vld [vmem:[%s2726_s4] sm:$0x7]  ;;  %s2243_s16 = smov 32   ;;  %vm1292_vm5 = vcmask 1048320  }
  0x4f   : > { %v549_v59 = vrot.slane %v544_v56, %v548_v55  ;;  %v557_v60 = vrot.slane %v544_v56, %v556_v57  ;;  %v553_v63 = vrot.slane %v544_v56, %v552_v58 }
  0x50   : > { %696 = vmatpush1.bf16.msra.mxu0 %v2078_v21 }
  0x51   : > { %1908 = vmatpush3.bf16.msra.mxu1 %v2079_v22  ;;  %697 = vmatprep.subr.bf16.mxu0 %v2080_v23 }
  0x52   : > { %1909 = vmatprep.subr.bf16.mxu1 %v2238_v4 }
  0x54   : > { %698 = vmatpush1.bf16.msra.mxu0 %v2082_v24 }
  0x55   : > { %1910 = vmatpush3.bf16.msra.mxu1 %v2083_v25  ;;  %699 = vmatprep.subr.bf16.mxu0 %v2084_v26 }
  0x56   : > { %1911 = vmatprep.subr.bf16.mxu1 %v2238_v4 }
  0x58   : > { %700 = vmatpush1.bf16.msra.mxu0 %v2086_v27 }
  0x59   : > { %1912 = vmatpush3.bf16.msra.mxu1 %v2087_v28  ;;  %701 = vmatprep.subr.bf16.mxu0 %v2088_v29 }
  0x5a   : > { %1913 = vmatprep.subr.bf16.mxu1 %v2238_v4 }
  0x5c   : > { %702 = vmatpush1.bf16.msra.mxu0 %v2090_v31 }
  0x5d   : > { %1914 = vmatpush3.bf16.msra.mxu1 %v2091_v32  ;;  %703 = vmatprep.subr.bf16.mxu0 %v2092_v33 }
  0x5e   : > { %1915 = vmatprep.subr.bf16.mxu1 %v2238_v4 }
  0x60   : > { %704 = vmatpush1.bf16.msra.mxu0 %v2094_v34 }
  0x61   : > { %1916 = vmatpush3.bf16.msra.mxu1 %v2095_v35  ;;  %1945 = vmatprep.subr.bf16.mxu0 %v2238_v4 }
  0x62   : > { %1921 = vmatprep.subr.bf16.mxu1 %v2238_v4 }
  0xd5   : > { %v473_v7 = vpop.xlane.xlu0 %472 }
  0xd6   : > { %v477_v8 = vmul.f32 0.0078125, %v473_v7 }
  0xd8   : > { %v2428_v9 = vsub.f32 %v2407_v0, %v477_v8 }
  0xd9   : > { %v475_v10 = vpop.xlane.xlu0 %474 }
  0xda   : > { %v478_v11 = vmul.f32 0.0078125, %v475_v10  ;;  %v481_v12 = vmul.f32 %v2428_v9, %v2428_v9 }
  0xdc   : > { %v2433_v13 = vsub.f32 %v2409_v1, %v478_v11  ;;  %483 = vadd.xlane.f32.xlu1 %v481_v12 }
  0xde   : > { %v482_v14 = vmul.f32 %v2433_v13, %v2433_v13 }
  0xe0   : > { %485 = vadd.xlane.f32.xlu1 %v482_v14 }
 0x169   : > { %v484_v36 = vpop.xlane.xlu1 %483 }
 0x16a   : > { %v487_v37 = vmul.f32 0.0078125, %v484_v36 }
 0x16c   : > { %v489_v38 = vadd.f32 1e-05, %v487_v37 }
 0x16d   : > { %v486_v39 = vpop.xlane.xlu1 %485 }
 0x16e   : > { %2120 = vrsqrt.f32 %v489_v38  ;;  %v488_v40 = vmul.f32 0.0078125, %v486_v39 }
 0x170   : > { %v490_v41 = vadd.f32 1e-05, %v488_v40 }
 0x172   : > { %2122 = vrsqrt.f32 %v490_v41 }
 0x178   : > { %v2121_v42 = vpop.eup %2120 }
 0x179   : > { %v493_v43 = vmul.f32 %v2121_v42, %v2428_v9 }
 0x17b   : > { %v501_v47 = vmul.f32 %v1782_v44, %v493_v43 }
 0x17c   : > { %v2123_v45 = vpop.eup %2122 }
 0x17d   : > { %v494_v46 = vmul.f32 %v2123_v45, %v2433_v13  ;;  %v509_v50 = vadd.f32 %v1783_v48, %v501_v47 }
 0x17f   : > { %v502_v49 = vmul.f32 %v1782_v44, %v494_v46 }
 0x181   : > { %v510_v51 = vadd.f32 %v1783_v48, %v502_v49 }
 0x183   : > { %v511_v52 = vpack.c.bf16 %v510_v51, %v509_v50 }
 0x185   : > { %722 = vmatmul.mubr.bf16.vlgmr.msra.gmra.mrb[0].mxu0 %v511_v52  ;;  %1918 = vmatmul.mubr.bf16.vlgmr.msra.gmra.mrb[0].mxu1 %v511_v52 }
 0x186   : > { %1923 = vmatprep.mubr.msk.bf16.mxu1 %vm2240_vm0, %v2238_v4  ;;  %1947 = vmatprep.mubr.msk.bf16.mxu0 %vm2240_vm0, %v2238_v4 }
 0x258   : > { %v723_v61 = vpop.f32.mrb[0].mxu0  ;;  %v766_v62 = vpop.f32.mrb[0].mxu1 }
 0x259   : > { %v724_v2 = vadd.f32 %v723_v61, %v549_v59  ;;  %v725_v3 = vpop.f32.mrb[1].mxu0  ;;  %v1919_v5 = vpop.f32.mrb[1].mxu1  ;;  %v767_v8 = vadd.f32 %v766_v62, %v557_v60 }
 0x25a   : > { %v727_v6 = vpop.f32.mrb[2].mxu0  ;;  %v769_v7 = vpop.f32.mrb[2].mxu1  ;;  %v726_v13 = vadd.f32 %v725_v3, %v553_v63 }
 0x25b   : > { %v728_v9 = vadd.f32 %v727_v6, %v549_v59  ;;  %v770_v10 = vadd.f32 %v769_v7, %v557_v60  ;;  %v729_v11 = vpop.f32.mrb[3].mxu0  ;;  %v1920_v12 = vpop.f32.mrb[3].mxu1  ;;  %v773_v15 = vmul.f32 0.17677669, %v724_v2 }
 0x25c   : > { %v730_v14 = vadd.f32 %v729_v11, %v553_v63 }
 0x25d   : > { %v774_v16 = vmul.f32 0.17677669, %v728_v9  ;;  %v2522_v17 = vpack.c.bf16 %v770_v10, %v767_v8 }
 0x25e   : > { %v776_v18 = vpack.c.bf16 %v730_v14, %v726_v13 }
 0x25f   : > { %v775_v19 = vpack.c.bf16 %v774_v16, %v773_v15 }
 0x260   : > { %v783_v20 = vsel %vm778_vm1, %v776_v18, 0 }
 0x261   : > { %1922 = vmatpush3.bf16.xpose.msra.mxu1 %v783_v20 }
 0x262   : > { %1927 = vmatprep.subr.bf16.mxu1 %v2238_v4 }
 0x268   : > { %1924 = vmatmul.mubr.msk.bf16.vlgmr.msra.gmra.mrb[4].mxu1 %vm778_vm1, %v775_v19 }
 0x269   : > { %1928 = vmatpush3.bf16.msra.mxu1 %v2522_v17  ;;  %1929 = vmatprep.mubr.msk.bf16.mxu1 %vm2240_vm0, %v2238_v4 }
 0x26a   : > { %1933 = vmatprep.subr.bf16.mxu1 %v2238_v4 }
 0x33b   : > { %v819_v21 = vpop.f32.mrb[4].mxu1 }
 0x33c   : > { %v1925_v22 = vpop.f32.mrb[5].mxu1  ;;  %v827_v23 = vsel %vm826_vm2, %v819_v21, -inf }
 0x33d   : > { %828 = vmax.xlane.f32.xlu0 %v827_v23  ;;  %v822_v24 = vpop.f32.mrb[6].mxu1 }
 0x33e   : > { %v1926_v25 = vpop.f32.mrb[7].mxu1  ;;  %v830_v26 = vsel %vm826_vm2, %v822_v24, -inf }
 0x33f   : > { %831 = vmax.xlane.f32.xlu1 %v830_v26 }
 0x3ca   : > { %v829_v27 = vpop.xlane.xlu0 %828 }
 0x3cb   : > { %v833_v28 = vsub.f32 %v819_v21, %v829_v27 }
 0x3cc   : > { %v832_v29 = vpop.xlane.xlu1 %831 }
 0x3cd   : > { %v835_v30 = vmul.f32 1.442695, %v833_v28  ;;  %v834_v31 = vsub.f32 %v822_v24, %v832_v29 }
 0x3cf   : > { %2124 = vpow2.f32 %v835_v30  ;;  %v837_v32 = vmul.f32 1.442695, %v834_v31 }
 0x3d1   : > { %2126 = vpow2.f32 %v837_v32 }
 0x3d9   : > { %v2125_v33 = vpop.eup %2124 }
 0x3da   : > { %v839_v34 = vsel %vm826_vm2, %v2125_v33, 0.0 }
 0x3db   : > { %v2127_v35 = vpop.eup %2126  ;;  %840 = vadd.xlane.f32.xlu0 %v839_v34 }
 0x3dc   : > { %v842_v36 = vsel %vm826_vm2, %v2127_v35, 0.0 }
 0x3dd   : > { %843 = vadd.xlane.f32.xlu1 %v842_v36 }
 0x3ee   : > { %897 = vrot.lane.b32.xlu1 %v775_v19, %s2241_s15 }
 0x3f1   : > { %900 = vrot.lane.b32.xlu0 %v776_v18, %s2241_s15 }
 0x3f2   : > { %1033 = vrot.lane.b32.xlu1 %v776_v18, %s2242_s30 }
 0x3f5   : > { %1165 = vrot.lane.b32.xlu0 %v776_v18, %s2243_s16 }
 0x3f6   : > { %1031 = vrot.lane.b32.xlu1 %v775_v19, %s2242_s30 }
 0x3fa   : > { %1163 = vrot.lane.b32.xlu1 %v775_v19, %s2243_s16 }
 0x468   : > { %v841_v37 = vpop.xlane.xlu0 %840 }
 0x469   : > { %2128 = vrcp.f32 %v841_v37 }
 0x46a   : > { %v844_v38 = vpop.xlane.xlu1 %843 }
 0x46b   : > { %2130 = vrcp.f32 %v844_v38 }
 0x46c   : > { %v901_v40 = vpop.permute.xlu0 %900 }
 0x46d   : > { %v906_v49 = vsel %vm778_vm1, %v901_v40, 0 }
 0x46e   : > { %v898_v39 = vpop.permute.xlu1 %897 }
 0x470   : > { %v1166_v47 = vpop.permute.xlu0 %1165 }
 0x471   : > { %v1171_v51 = vsel %vm778_vm1, %v1166_v47, 0 }
 0x472   : > { %v1034_v41 = vpop.permute.xlu1 %1033 }
 0x473   : > { %v2129_v42 = vpop.eup %2128  ;;  %v1039_v43 = vsel %vm778_vm1, %v1034_v41, 0 }
 0x474   : > { %1946 = vmatpush3.bf16.xpose.msra.mxu0 %v1039_v43  ;;  %v847_v45 = vmul.f32 %v2129_v42, %v2125_v33 }
 0x475   : > { %v2131_v44 = vpop.eup %2130  ;;  %1957 = vmatprep.subr.bf16.mxu0 %v2238_v4 }
 0x476   : > { %v848_v46 = vmul.f32 %v2131_v44, %v2127_v35  ;;  %v1032_v50 = vpop.permute.xlu1 %1031 }
 0x478   : > { %v849_v48 = vpack.c.bf16 %v848_v46, %v847_v45 }
 0x47a   : > { %1930 = vmatmul.mubr.msk.bf16.vlgmr.msra.gmra.mrb[8].mxu1 %vm826_vm2, %v849_v48  ;;  %v1164_v52 = vpop.permute.xlu1 %1163 }
 0x47b   : > { %1934 = vmatpush3.bf16.xpose.msra.mxu1 %v906_v49  ;;  %1948 = vmatmul.mubr.msk.bf16.vlgmr.msra.gmra.mrb[4].mxu0 %vm778_vm1, %v1032_v50 }
 0x47c   : > { %1958 = vmatpush3.bf16.xpose.msra.mxu0 %v1171_v51  ;;  %1935 = vmatprep.mubr.msk.bf16.mxu1 %vm2240_vm0, %v2238_v4 }
 0x47d   : > { %1959 = vmatprep.mubr.msk.bf16.mxu0 %vm2240_vm0, %v2238_v4  ;;  %1939 = vmatprep.subr.bf16.mxu1 %v2238_v4 }
 0x47e   : > { %1969 = vmatprep.subr.bf16.mxu0 %v2238_v4 }
 0x482   : > { %1936 = vmatmul.mubr.msk.bf16.vlgmr.msra.gmra.mrb[12].mxu1 %vm778_vm1, %v898_v39 }
 0x483   : > { %1960 = vmatmul.mubr.msk.bf16.vlgmr.msra.gmra.mrb[8].mxu0 %vm778_vm1, %v1164_v52  ;;  %1941 = vmatprep.mubr.msk.bf16.mxu1 %vm2240_vm0, %v2238_v4 }
 0x484   : > { %1985 = vmatprep.mubr.msk.bf16.mxu0 %vm2240_vm0, %v2238_v4 }
 0x54d   : > { %v887_v53 = vpop.f32.mrb[8].mxu1 }
 0x54e   : > { %894 = vst.msk [vmem:[#allocation2] sm:$0xff] %vm778_vm1, %v887_v53  ;;  %v1931_v54 = vpop.f32.mrb[9].mxu1  ;;  %v1075_v55 = vpop.f32.mrb[4].mxu0 }
 0x54f   : > { %v890_v56 = vpop.f32.mrb[10].mxu1  ;;  %v1949_v57 = vpop.f32.mrb[5].mxu0  ;;  %v1082_v10 = vsel %vm826_vm2, %v1075_v55, -inf }
 0x550   : > { %895 = vst.msk [vmem:[#allocation2 + $0x8] sm:$0xff] %vm778_vm1, %v890_v56  ;;  %v1932_v58 = vpop.f32.mrb[11].mxu1  ;;  %v1078_v59 = vpop.f32.mrb[6].mxu0 }
 0x551   : > { %v1950_v60 = vpop.f32.mrb[7].mxu0  ;;  %v1085_v12 = vsel %vm826_vm2, %v1078_v59, -inf }
 0x555   : > { %v942_v61 = vpop.f32.mrb[12].mxu1 }
 0x556   : > { %v1937_v62 = vpop.f32.mrb[13].mxu1  ;;  %v1207_v63 = vpop.f32.mrb[8].mxu0  ;;  %v949_v2 = vsel %vm826_vm2, %v942_v61, -inf }
 0x557   : > { %v1961_v3 = vpop.f32.mrb[9].mxu0  ;;  %950 = vmax.xlane.f32.xlu0 %v949_v2  ;;  %v945_v5 = vpop.f32.mrb[14].mxu1  ;;  %v1214_v13 = vsel %vm826_vm2, %v1207_v63, -inf }
 0x558   : > { %v1938_v6 = vpop.f32.mrb[15].mxu1  ;;  %v1210_v7 = vpop.f32.mrb[10].mxu0  ;;  %v952_v8 = vsel %vm826_vm2, %v945_v5, -inf }
 0x559   : > { %v1962_v9 = vpop.f32.mrb[11].mxu0  ;;  %953 = vmax.xlane.f32.xlu1 %v952_v8  ;;  %v1217_v11 = vsel %vm826_vm2, %v1210_v7, -inf  ;;  %v2097_v8 = vld [vmem:[%s2727_s5 + $0x8] sm:$0xff]  }
 0x55a   : > { %v2098_v9 = vld [vmem:[%s2727_s5 + $0x10] sm:$0xff]  }
 0x55b   : > { %1083 = vmax.xlane.f32.xlu0 %v1082_v10  ;;  %v2099_v10 = vld [vmem:[%s2727_s5 + $0x18] sm:$0xff]  }
 0x55d   : > { %1218 = vmax.xlane.f32.xlu1 %v1217_v11  ;;  %v2100_v11 = vld [vmem:[%s2727_s5 + $0x20] sm:$0xff]  }
 0x55f   : > { %1086 = vmax.xlane.f32.xlu0 %v1085_v12 }
 0x563   : > { %1215 = vmax.xlane.f32.xlu0 %v1214_v13 }
 0x5e4   : > { %v951_v14 = vpop.xlane.xlu0 %950 }
 0x5e5   : > { %v955_v24 = vsub.f32 %v942_v61, %v951_v14 }
 0x5e6   : > { %v954_v15 = vpop.xlane.xlu1 %953 }
 0x5e7   : > { %v956_v25 = vsub.f32 %v945_v5, %v954_v15  ;;  %v957_v30 = vmul.f32 1.442695, %v955_v24 }
 0x5e8   : > { %v1084_v16 = vpop.xlane.xlu0 %1083 }
 0x5e9   : > { %v1088_v18 = vsub.f32 %v1075_v55, %v1084_v16  ;;  %v959_v31 = vmul.f32 1.442695, %v956_v25  ;;  %v2101_v16 = vld [vmem:[%s2727_s5 + $0x28] sm:$0xff]  }
 0x5ea   : > { %v1219_v19 = vpop.xlane.xlu1 %1218 }
 0x5eb   : > { %v1090_v20 = vmul.f32 1.442695, %v1088_v18  ;;  %v1221_v21 = vsub.f32 %v1210_v7, %v1219_v19  ;;  %v2096_v7 = vld [vmem:[%s2727_s5] sm:$0xff]   ;;  %v2102_v18 = vld [vmem:[%s2727_s5 + $0x30] sm:$0xff]  }
 0x5ec   : > { %v1087_v22 = vpop.xlane.xlu0 %1086  ;;  %1970 = vmatpush3.bf16.msra.mxu0 %v2096_v7 }
 0x5ed   : > { %2132 = vpow2.f32 %v1090_v20  ;;  %v1089_v23 = vsub.f32 %v1078_v59, %v1087_v22  ;;  %v1224_v26 = vmul.f32 1.442695, %v1221_v21  ;;  %1971 = vmatprep.subr.bf16.mxu0 %v2238_v4  ;;  %v2103_v22 = vld [vmem:[%s2727_s5 + $0x38] sm:$0xff]  }
 0x5ef   : > { %v1092_v27 = vmul.f32 1.442695, %v1089_v23 }
 0x5f0   : > { %v1216_v28 = vpop.xlane.xlu0 %1215  ;;  %1972 = vmatpush3.bf16.msra.mxu0 %v2097_v8  ;;  %v1825_v8 = vld [vmem:[%s2729_s7] ss:$0 sm:$0xff] }
 0x5f1   : > { %2134 = vpow2.f32 %v1092_v27  ;;  %v1220_v29 = vsub.f32 %v1207_v63, %v1216_v28  ;;  %1973 = vmatprep.subr.bf16.mxu0 %v2238_v4 }
 0x5f2   : > { %2136 = vpow2.f32 %v1224_v26 }
 0x5f3   : > { %v1222_v32 = vmul.f32 1.442695, %v1220_v29 }
 0x5f4   : > { %1974 = vmatpush3.bf16.msra.mxu0 %v2098_v9 }
 0x5f5   : > { %2138 = vpow2.f32 %v1222_v32  ;;  %1975 = vmatprep.subr.bf16.mxu0 %v2238_v4 }
 0x5f6   : > { %2140 = vpow2.f32 %v957_v30 }
 0x5f7   : > { %v2133_v33 = vpop.eup %2132  ;;  %2142 = vpow2.f32 %v959_v31 }
 0x5f8   : > { %v1094_v34 = vsel %vm826_vm2, %v2133_v33, 0.0  ;;  %1976 = vmatpush3.bf16.msra.mxu0 %v2099_v10 }
 0x5f9   : > { %1095 = vadd.xlane.f32.xlu0 %v1094_v34  ;;  %1977 = vmatprep.subr.bf16.mxu0 %v2238_v4 }
 0x5fb   : > { %v2135_v35 = vpop.eup %2134 }
 0x5fc   : > { %v1097_v36 = vsel %vm826_vm2, %v2135_v35, 0.0  ;;  %v2137_v37 = vpop.eup %2136  ;;  %1978 = vmatpush3.bf16.msra.mxu0 %v2100_v11 }
 0x5fd   : > { %1098 = vadd.xlane.f32.xlu1 %v1097_v36  ;;  %v1229_v41 = vsel %vm826_vm2, %v2137_v37, 0.0  ;;  %1979 = vmatprep.subr.bf16.mxu0 %v2238_v4 }
 0x5ff   : > { %v2139_v38 = vpop.eup %2138 }
 0x600   : > { %v2141_v39 = vpop.eup %2140  ;;  %v1226_v40 = vsel %vm826_vm2, %v2139_v38, 0.0  ;;  %1980 = vmatpush3.bf16.msra.mxu0 %v2101_v16 }
 0x601   : > { %v2143_v42 = vpop.eup %2142  ;;  %1227 = vadd.xlane.f32.xlu0 %v1226_v40  ;;  %1230 = vadd.xlane.f32.xlu1 %v1229_v41  ;;  %v961_v43 = vsel %vm826_vm2, %v2141_v39, 0.0 }
 0x602   : > { %v964_v44 = vsel %vm826_vm2, %v2143_v42, 0.0  ;;  %1981 = vmatprep.subr.bf16.mxu0 %v2238_v4 }
 0x604   : > { %1982 = vmatpush3.bf16.msra.mxu0 %v2102_v18  ;;  %v2114_v18 = vld [vmem:[%s2733_s11 + $0x10] sm:$0xff]  }
 0x605   : > { %962 = vadd.xlane.f32.xlu0 %v961_v43  ;;  %965 = vadd.xlane.f32.xlu1 %v964_v44 }
 0x606   : > { %1983 = vmatprep.subr.bf16.mxu0 %v2238_v4 }
 0x608   : > { %1984 = vmatpush3.bf16.msra.mxu0 %v2103_v22  ;;  %v2118_v22 = vld [vmem:[%s2733_s11 + $0x30] sm:$0xff]  }
 0x609   : > { %2009 = vmatprep.subr.bf16.mxu0 %v2238_v4 }
 0x616   : > { %1105 = vrot.lane.b32.xlu1 %v2522_v17, %s2242_s30 }
 0x61a   : > { %1237 = vrot.lane.b32.xlu1 %v2522_v17, %s2243_s16 }
 0x61b   : > { %973 = vrot.lane.b32.xlu0 %v2522_v17, %s2241_s15 }
 0x686   : > { %v1096_v45 = vpop.xlane.xlu0 %1095 }
 0x68a   : > { %v1099_v46 = vpop.xlane.xlu1 %1098 }
 0x68e   : > { %v1228_v47 = vpop.xlane.xlu0 %1227  ;;  %v1231_v48 = vpop.xlane.xlu1 %1230 }
 0x692   : > { %v963_v49 = vpop.xlane.xlu0 %962  ;;  %v966_v50 = vpop.xlane.xlu1 %965 }
 0x693   : > { %2144 = vrcp.f32 %v963_v49 }
 0x694   : > { %2146 = vrcp.f32 %v966_v50 }
 0x695   : > { %2148 = vrcp.f32 %v1099_v46  ;;  %v2104_v46 = vld [vmem:[%s2731_s9] sm:$0xff]  }
 0x696   : > { %v974_v51 = vpop.permute.xlu0 %973  ;;  %2150 = vrcp.f32 %v1096_v45  ;;  %v1106_v57 = vpop.permute.xlu1 %1105 }
 0x697   : > { %1940 = vmatpush3.bf16.msra.mxu1 %v974_v51  ;;  %2152 = vrcp.f32 %v1228_v47 }
 0x698   : > { %1951 = vmatprep.subr.bf16.mxu1 %v2238_v4  ;;  %2154 = vrcp.f32 %v1231_v48 }
 0x69a   : > { %v1238_v2 = vpop.permute.xlu1 %1237 }
 0x69d   : > { %v2145_v52 = vpop.eup %2144 }
 0x69e   : > { %v2147_v53 = vpop.eup %2146  ;;  %v969_v54 = vmul.f32 %v2145_v52, %v2141_v39 }
 0x69f   : > { %v970_v55 = vmul.f32 %v2147_v53, %v2143_v42  ;;  %v2149_v56 = vpop.eup %2148  ;;  %v2105_v53 = vld [vmem:[%s2731_s9 + $0x8] sm:$0xff]  }
 0x6a0   : > { %v2151_v58 = vpop.eup %2150  ;;  %v1103_v59 = vmul.f32 %v2149_v56, %v2135_v35  ;;  %v2109_v56 = vld [vmem:[%s2731_s9 + $0x28] sm:$0xff]  }
 0x6a1   : > { %v971_v17 = vpack.c.bf16 %v970_v55, %v969_v54  ;;  %v1102_v60 = vmul.f32 %v2151_v58, %v2133_v33  ;;  %v2153_v61 = vpop.eup %2152  ;;  %v2106_v54 = vld [vmem:[%s2731_s9 + $0x10] sm:$0xff]   ;;  %v2107_v55 = vld [vmem:[%s2731_s9 + $0x18] sm:$0xff]  }
 0x6a2   : > { %v2155_v63 = vpop.eup %2154  ;;  %v1234_v3 = vmul.f32 %v2153_v61, %v2139_v38  ;;  %v2111_v58 = vld [vmem:[%s2731_s9 + $0x38] sm:$0xff]  }
 0x6a3   : > { %1942 = vmatmul.mubr.msk.bf16.vlgmr.msra.gmra.mrb[16].mxu1 %vm826_vm2, %v971_v17  ;;  %v1104_v62 = vpack.c.bf16 %v1103_v59, %v1102_v60  ;;  %v1235_v5 = vmul.f32 %v2155_v63, %v2137_v37  ;;  %v1816_v37 = vld [vmem:[%s2728_s6] ss:$0 sm:$0xff]  ;;  %v2113_v60 = vld [vmem:[%s2733_s11 + $0x8] sm:$0xff]  }
 0x6a4   : > { %1952 = vmatpush3.bf16.msra.mxu1 %v1106_v57  ;;  %1953 = vmatprep.mubr.msk.bf16.mxu1 %vm2240_vm0, %v2238_v4  ;;  %v2108_v17 = vld [vmem:[%s2731_s9 + $0x20] sm:$0xff]   ;;  %v2110_v57 = vld [vmem:[%s2731_s9 + $0x30] sm:$0xff]  }
 0x6a5   : > { %1963 = vmatprep.subr.bf16.mxu1 %v2238_v4  ;;  %v1236_v6 = vpack.c.bf16 %v1235_v5, %v1234_v3  ;;  %v2112_v59 = vld [vmem:[%s2733_s11] sm:$0xff]  }
 0x6ab   : > { %1954 = vmatmul.mubr.msk.bf16.vlgmr.msra.gmra.mrb[20].mxu1 %vm826_vm2, %v1104_v62 }
 0x6ac   : > { %1964 = vmatpush3.bf16.msra.mxu1 %v1238_v2  ;;  %1965 = vmatprep.mubr.msk.bf16.mxu1 %vm2240_vm0, %v2238_v4 }
 0x6ad   : > { %1989 = vmatprep.subr.bf16.mxu1 %v2238_v4 }
 0x6b3   : > { %1966 = vmatmul.mubr.msk.bf16.vlgmr.msra.gmra.mrb[24].mxu1 %vm826_vm2, %v1236_v6 }
 0x6b4   : > { %2005 = vmatprep.mubr.msk.bf16.mxu1 %vm2240_vm0, %v2238_v4  ;;  %1990 = vmatpush3.bf16.msra.mxu1 %v2104_v46 }
 0x6b5   : > { %1991 = vmatprep.subr.bf16.mxu1 %v2238_v4 }
 0x6b8   : > { %1992 = vmatpush3.bf16.msra.mxu1 %v2105_v53 }
 0x6b9   : > { %1993 = vmatprep.subr.bf16.mxu1 %v2238_v4 }
 0x6bc   : > { %1994 = vmatpush3.bf16.msra.mxu1 %v2106_v54 }
 0x6bd   : > { %1995 = vmatprep.subr.bf16.mxu1 %v2238_v4 }
 0x6c0   : > { %1996 = vmatpush3.bf16.msra.mxu1 %v2107_v55 }
 0x6c1   : > { %1997 = vmatprep.subr.bf16.mxu1 %v2238_v4 }
 0x6c4   : > { %1998 = vmatpush3.bf16.msra.mxu1 %v2108_v17 }
 0x6c5   : > { %1999 = vmatprep.subr.bf16.mxu1 %v2238_v4 }
 0x6c8   : > { %2000 = vmatpush3.bf16.msra.mxu1 %v2109_v56 }
 0x6c9   : > { %2001 = vmatprep.subr.bf16.mxu1 %v2238_v4 }
 0x6cc   : > { %2002 = vmatpush3.bf16.msra.mxu1 %v2110_v57 }
 0x6cd   : > { %2003 = vmatprep.subr.bf16.mxu1 %v2238_v4 }
 0x6d0   : > { %2004 = vmatpush3.bf16.msra.mxu1 %v2111_v58 }
 0x776   : > { %v1013_v12 = vpop.f32.mrb[16].mxu1 }
 0x777   : > { %1022 = vrot.lane.b32.xlu1 %v1013_v12, %s2243_s16  ;;  %v1943_v13 = vpop.f32.mrb[17].mxu1  ;;  %v1826_v12 = vld [vmem:[%s2730_s8] ss:$0 sm:$0xff] }
 0x778   : > { %v1016_v14 = vpop.f32.mrb[18].mxu1 }
 0x779   : > { %1024 = vrot.lane.b32.xlu0 %v1016_v14, %s2243_s16  ;;  %v1944_v15 = vpop.f32.mrb[19].mxu1  ;;  %s466_s16 = scalar_lea.vmem %s2735_s13, %s1847_s27 }
 0x77e   : > { %v1145_v19 = vpop.f32.mrb[20].mxu1 }
 0x77f   : > { %1154 = vrot.lane.b32.xlu1 %v1145_v19, %s2242_s30  ;;  %v1955_v20 = vpop.f32.mrb[21].mxu1  ;;  %v2115_v19 = vld [vmem:[%s2733_s11 + $0x18] sm:$0xff]  }
 0x780   : > { %v1148_v21 = vpop.f32.mrb[22].mxu1  ;;  %v2116_v20 = vld [vmem:[%s2733_s11 + $0x20] sm:$0xff]  }
 0x781   : > { %1156 = vrot.lane.b32.xlu0 %v1148_v21, %s2242_s30  ;;  %v1956_v23 = vpop.f32.mrb[23].mxu1  ;;  %v2117_v21 = vld [vmem:[%s2733_s11 + $0x28] sm:$0xff]  }
 0x782   : > { %v2119_v23 = vld [vmem:[%s2733_s11 + $0x38] sm:$0xff]  }
 0x786   : > { %v1277_v24 = vpop.f32.mrb[24].mxu1 }
 0x787   : > { %1286 = vrot.lane.b32.xlu1 %v1277_v24, %s2241_s15  ;;  %v1967_v25 = vpop.f32.mrb[25].mxu1  ;;  %v1827_v24 = vld [vmem:[#allocation3] ss:$0 sm:$0xff] }
 0x788   : > { %v1280_v26 = vpop.f32.mrb[26].mxu1 }
 0x789   : > { %1288 = vrot.lane.b32.xlu0 %v1280_v26, %s2241_s15  ;;  %v1968_v27 = vpop.f32.mrb[27].mxu1 }
 0x7e9   : > { %v1023_v28 = vpop.permute.xlu1 %1022 }
 0x7ea   : > { %1029 = vst.msk [vmem:[#allocation2] sm:$0xff] %vm1028_vm3, %v1023_v28 }
 0x7eb   : > { %v1025_v29 = vpop.permute.xlu0 %1024 }
 0x7ec   : > { %1030 = vst.msk [vmem:[#allocation2 + $0x8] sm:$0xff] %vm1028_vm3, %v1025_v29 }
 0x7f1   : > { %v1155_v30 = vpop.permute.xlu1 %1154 }
 0x7f2   : > { %1161 = vst.msk [vmem:[#allocation2] sm:$0xff] %vm1160_vm4, %v1155_v30 }
 0x7f3   : > { %v1157_v31 = vpop.permute.xlu0 %1156 }
 0x7f4   : > { %1162 = vst.msk [vmem:[#allocation2 + $0x8] sm:$0xff] %vm1160_vm4, %v1157_v31 }
 0x7f9   : > { %v1287_v32 = vpop.permute.xlu1 %1286 }
 0x7fa   : > { %1293 = vst.msk [vmem:[#allocation2] sm:$0xff] %vm1292_vm5, %v1287_v32 }
 0x7fb   : > { %v1289_v33 = vpop.permute.xlu0 %1288 }
 0x7fc   : > { %1294 = vst.msk [vmem:[#allocation2 + $0x8] sm:$0xff] %vm1292_vm5, %v1289_v33 }
 0x801   : > { %v1295_v34 = vld [vmem:[#allocation2] sm:$0xff] }
 0x803   : > { %v1296_v35 = vld [vmem:[#allocation2 + $0x8] sm:$0xff] }
 0x804   : > { %v1297_v36 = vpack.c.bf16 %v1296_v35, %v1295_v34 }
 0x806   : > { %1986 = vmatmul.mubr.bf16.vlgmr.msra.gmra.mrb[12].mxu0 %v1297_v36 }
 0x807   : > { %2025 = vmatprep.mubr.msk.bf16.mxu0 %vm2240_vm0, %v2238_v4  ;;  %2010 = vmatpush3.bf16.msra.mxu0 %v2112_v59 }
 0x808   : > { %2011 = vmatprep.subr.bf16.mxu0 %v2238_v4 }
 0x80b   : > { %2012 = vmatpush3.bf16.msra.mxu0 %v2113_v60 }
 0x80c   : > { %2013 = vmatprep.subr.bf16.mxu0 %v2238_v4 }
 0x80f   : > { %2014 = vmatpush3.bf16.msra.mxu0 %v2114_v18 }
 0x810   : > { %2015 = vmatprep.subr.bf16.mxu0 %v2238_v4 }
 0x813   : > { %2016 = vmatpush3.bf16.msra.mxu0 %v2115_v19 }
 0x814   : > { %2017 = vmatprep.subr.bf16.mxu0 %v2238_v4 }
 0x817   : > { %2018 = vmatpush3.bf16.msra.mxu0 %v2116_v20 }
 0x818   : > { %2019 = vmatprep.subr.bf16.mxu0 %v2238_v4 }
 0x81b   : > { %2020 = vmatpush3.bf16.msra.mxu0 %v2117_v21 }
 0x81c   : > { %2021 = vmatprep.subr.bf16.mxu0 %v2238_v4 }
 0x81f   : > { %2022 = vmatpush3.bf16.msra.mxu0 %v2118_v22 }
 0x820   : > { %2023 = vmatprep.subr.bf16.mxu0 %v2238_v4 }
 0x823   : > { %2024 = vmatpush3.bf16.msra.mxu0 %v2119_v23 }
 0x8d9   : > { %v1403_v38 = vpop.f32.mrb[12].mxu0 }
 0x8da   : > { %v1404_v39 = vadd.f32 %v1816_v37, %v1403_v38  ;;  %v1987_v40 = vpop.f32.mrb[13].mxu0 }
 0x8db   : > { %v1406_v41 = vpop.f32.mrb[14].mxu0 }
 0x8dc   : > { %v2635_v42 = vadd.f32 %v1404_v39, %v2407_v0  ;;  %v1407_v43 = vadd.f32 %v1816_v37, %v1406_v41  ;;  %v1988_v44 = vpop.f32.mrb[15].mxu0  ;;  %v1836_v41 = vld [vmem:[#allocation5] ss:$0 sm:$0xff] }
 0x8de   : > { %v2638_v45 = vadd.f32 %v1407_v43, %v2409_v1  ;;  %1414 = vadd.xlane.f32.xlu1 %v2635_v42 }
 0x8e0   : > { %1416 = vadd.xlane.f32.xlu0 %v2638_v45 }
 0x96b   : > { %v1415_v47 = vpop.xlane.xlu1 %1414 }
 0x96c   : > { %v1418_v48 = vmul.f32 0.0078125, %v1415_v47 }
 0x96d   : > { %v1417_v0 = vpop.xlane.xlu0 %1416 }
 0x96e   : > { %v1420_v49 = vsub.f32 %v2635_v42, %v1418_v48  ;;  %v1419_v50 = vmul.f32 0.0078125, %v1417_v0 }
 0x970   : > { %v1421_v1 = vsub.f32 %v2638_v45, %v1419_v50  ;;  %v1422_v51 = vmul.f32 %v1420_v49, %v1420_v49 }
 0x972   : > { %1424 = vadd.xlane.f32.xlu0 %v1422_v51  ;;  %v1423_v52 = vmul.f32 %v1421_v1, %v1421_v1 }
 0x976   : > { %1426 = vadd.xlane.f32.xlu0 %v1423_v52 }
 0x9ff   : > { %v1425_v61 = vpop.xlane.xlu0 %1424 }
 0xa00   : > { %v1428_v62 = vmul.f32 0.0078125, %v1425_v61 }
 0xa02   : > { %v1430_v63 = vadd.f32 1e-05, %v1428_v62 }
 0xa03   : > { %v1427_v2 = vpop.xlane.xlu0 %1426 }
 0xa04   : > { %2156 = vrsqrt.f32 %v1430_v63  ;;  %v1429_v3 = vmul.f32 0.0078125, %v1427_v2 }
 0xa06   : > { %v1431_v5 = vadd.f32 1e-05, %v1429_v3 }
 0xa08   : > { %2158 = vrsqrt.f32 %v1431_v5 }
 0xa0e   : > { %v2157_v6 = vpop.eup %2156 }
 0xa0f   : > { %v1434_v7 = vmul.f32 %v2157_v6, %v1420_v49 }
 0xa11   : > { %v1442_v11 = vmul.f32 %v1825_v8, %v1434_v7 }
 0xa12   : > { %v2159_v9 = vpop.eup %2158 }
 0xa13   : > { %v1435_v10 = vmul.f32 %v2159_v9, %v1421_v1  ;;  %v1450_v14 = vadd.f32 %v1826_v12, %v1442_v11 }
 0xa15   : > { %v1443_v13 = vmul.f32 %v1825_v8, %v1435_v10 }
 0xa17   : > { %v1451_v15 = vadd.f32 %v1826_v12, %v1443_v13 }
 0xa19   : > { %v1452_v16 = vpack.c.bf16 %v1451_v15, %v1450_v14 }
 0xa1b   : > { %2006 = vmatmul.mubr.bf16.vlgmr.msra.gmra.mrb[28].mxu1 %v1452_v16 }
 0xaee   : > { %v1558_v25 = vpop.f32.mrb[28].mxu1 }
 0xaef   : > { %v1559_v26 = vadd.f32 %v1827_v24, %v1558_v25  ;;  %v2007_v27 = vpop.f32.mrb[29].mxu1 }
 0xaf0   : > { %v1561_v28 = vpop.f32.mrb[30].mxu1 }
 0xaf1   : > { %v1567_v29 = vmul.f32 0.70710677, %v1559_v26  ;;  %v1562_v30 = vadd.f32 %v1827_v24, %v1561_v28  ;;  %v2008_v31 = vpop.f32.mrb[31].mxu1  ;;  %v1565_v35 = vmul.f32 0.5, %v1559_v26 }
 0xaf3   : > { %2160 = verf.f32 %v1567_v29  ;;  %v1568_v32 = vmul.f32 0.70710677, %v1562_v30  ;;  %v1566_v36 = vmul.f32 0.5, %v1562_v30 }
 0xaf5   : > { %2162 = verf.f32 %v1568_v32 }
 0xafd   : > { %v2161_v33 = vpop.eup %2160 }
 0xafe   : > { %v1571_v34 = vadd.f32 1.0, %v2161_v33 }
 0xaff   : > { %v2163_v4 = vpop.eup %2162 }
 0xb00   : > { %v1572_v37 = vadd.f32 1.0, %v2163_v4  ;;  %v1573_v38 = vmul.f32 %v1571_v34, %v1565_v35 }
 0xb02   : > { %v1574_v39 = vmul.f32 %v1572_v37, %v1566_v36 }
 0xb04   : > { %v1575_v40 = vpack.c.bf16 %v1574_v39, %v1573_v38 }
 0xb06   : > { %2026 = vmatmul.mubr.bf16.vlgmr.msra.gmra.mrb[16].mxu0 %v1575_v40 }
 0xbd9   : > { %v1681_v43 = vpop.f32.mrb[16].mxu0 }
 0xbda   : > { %v1682_v44 = vadd.f32 %v1836_v41, %v1681_v43  ;;  %v2027_v46 = vpop.f32.mrb[17].mxu0 }
 0xbdb   : > { %v1684_v47 = vpop.f32.mrb[18].mxu0 }
 0xbdc   : > { %v1688_v48 = vadd.f32 %v1682_v44, %v2635_v42  ;;  %v1685_v0 = vadd.f32 %v1836_v41, %v1684_v47  ;;  %v2028_v49 = vpop.f32.mrb[19].mxu0 }
 0xbde   : > { %1690 = vst [vmem:[%s466_s16] sm:$0xff] %v1688_v48  ;;  %v1689_v50 = vadd.f32 %v1685_v0, %v2638_v45 }
 0xbe0   : > { %1691 = vst [vmem:[%s466_s16 + $0x8] sm:$0xff] %v1689_v50 }
 0xbe1 PF: > { %s25_s25 = sadd.s32 1, %s2234_s25  }
 0xbe2   : > { %p22_p5 = scmp.ge.s32.totalorder %s25_s25, 4  }
 0xbe4   :  { %24 = sbr.rel (!%p22_p5) target bundleno = 2 (0x2), region = 111 }
 0xbeb   :  { %1713 = vsyncpa [#allocation4], 1 }
 0xbec   :  { %1715 = vsyncpa [#allocation4 + $0x1], 1 }
 0xbed   :  { %1716 = vsyncpa [#allocation6], 1 }

// kernel: cross_modal_transformer.5
= control target key start
LH: loop header
LB: loop body
LE: loop exit
PB: predicated region body
PF: predicated region fallthrough
CT: control target
= control target key end

     0   :  { %s2498_s0 = inlined_call_operand.vmem [shape: f32[2,16,128], index: 0, kind: input, shape index: {}, may-alias: {0,14}]   ;;  %s2499_s1 = inlined_call_operand.vmem [shape: f32[2,16,128], index: 1, kind: input, shape index: {}]   ;;  %s2500_s2 = inlined_call_operand.vmem [shape: f32[1,128], index: 2, kind: input, shape index: {}]   ;;  %s2501_s3 = inlined_call_operand.vmem [shape: f32[1,128], index: 3, kind: input, shape index: {}]   ;;  %s2502_s4 = inlined_call_operand.vmem [shape: f32[1,128], index: 4, kind: input, shape index: {}]   ;;  %s2503_s5 = inlined_call_operand.vmem [shape: f32[1,128], index: 5, kind: input, shape index: {}]   ;;  %s2504_s6 = inlined_call_operand.vmem [shape: f32[1,128], index: 6, kind: input, shape index: {}]   ;;  %s2505_s7 = inlined_call_operand.vmem [shape: f32[1,128], index: 7, kind: input, shape index: {}]   ;;  %s2506_s8 = inlined_call_operand.hbm [shape: bf16[128,128], index: 8, kind: input, shape index: {}]   ;;  %s2507_s9 = inlined_call_operand.vmem [shape: f32[1,128], index: 9, kind: input, shape index: {}]   ;;  %s2508_s10 = inlined_call_operand.hbm [shape: bf16[128,256], index: 10, kind: input, shape index: {}]   ;;  %s2509_s11 = inlined_call_operand.vmem [shape: f32[1,256], index: 11, kind: input, shape index: {}]   ;;  %s2510_s12 = inlined_call_operand.hbm [shape: bf16[128,128], index: 12, kind: input, shape index: {}]   ;;  %s2511_s13 = inlined_call_operand.hbm [shape: f32[1,128], index: 13, kind: input, shape index: {}]   ;;  %s2512_s14 = inlined_call_operand.vmem [shape: f32[2,16,128], index: 14, kind: output, shape index: {}, may-alias: {0,14}]  }
   0x1   :  { %2518 = sst [smem:[#allocation16_spill]] %s2504_s6 }
   0x2   :  { %2519 = sst [smem:[#allocation17_spill]] %s2505_s7 }
   0x3   :  { %2520 = sst [smem:[#allocation18_spill]] %s2507_s9 }
   0x4   :  { %2521 = sst [smem:[#allocation19_spill]] %s2508_s10 }
   0x5   :  { %2522 = sst [smem:[#allocation20_spill]] %s2512_s14 }
   0x6   :  { %19 = vsyncpa [#allocation4], 0 }
   0x7   :  { %20 = vsyncpa [#allocation6], 0 }
   0x8   :  { %21 = vsyncpa [#allocation9], 0  ;;  %s2214_s29 = smov 0   ;;  %s2216_s30 = smov 0  }
   0x9   :  { %s2218_s15 = smov 0  }
   0xa LB: > { %2523 = sst [smem:[#allocation13_spill]] %s2119_s30  ;;  %s2125_s16 = smov [#allocation5]   ;;  %s2123_s15 = sphi %s2218_s15, %s27_s15   ;;  %s2119_s30 = sphi %s2216_s30, %s2540_s30   ;;  %s2115_s29 = sphi %s2214_s29, %s2539_s29  }
   0xb   : > { %2524 = sst [smem:[#allocation14_spill]] %s2123_s15  ;;  %s424_s17 = sshll.u32 %s2125_s16, 4  ;;  %s2236_s17 = int_to_ptr.vmem [resolvable:$true] %s424_s17 }
   0xc   : > { %s1644_s18 = sadd.s32 4294967295, %s2123_s15   ;;  %p1646_p0 = scmp.ge.s32.totalorder %s2123_s15, 1 }
   0xd   : > { %p378_p1 = scmp.lt.s32.totalorder %s2123_s15, 3  ;;  %p2232_p2 = scmp.eq.s32.totalorder %s1644_s18, 0 }
   0xe   : > { %s39_s22 = sadd.s32 1, %s2119_s30  ;;  %s2126_s24 = smov [#allocation3]  }
   0xf   : > { %s2525_s19 = scalar_select %p2232_p2, 1, 0 }
  0x10   : > { %p2238_p3 = pnand %p1646_p0, %p378_p1  ;;  %p2251_p6 = scmp.ge.s32.totalorder %s39_s22, 2 }
  0x11   : > { %s408_s25 = sshll.u32 %s2126_s24, 4  ;;  %s2529_s10 = sld [smem:[#allocation19_spill]]  ;;  %s409_s25 = int_to_ptr.vmem [resolvable:$true] %s408_s25 }
  0x12   : > { %s2526_s20 = scalar_select %p2238_p3, 1, 0 }
  0x13   : > { %p1854_p4 = pneg %p2238_p3 }
  0x15   : > { %p2246_p5 = pnand %p2232_p2, %p1854_p4 }
  0x17   : > { %s1977_s28 = scalar_lea.hbm %s2529_s10, 2048  ;;  %p2263_p8 = pneg %p2246_p5 }
  0x18   : > { %p1978_p7 = scmp.ne.s32.totalorder %s2529_s10, %s1977_s28  ;;  %p1984_p11 = scmp.lt.u32.totalorder %s1977_s28, %s2529_s10 }
  0x1a   : > { %p1980_p9 = pnand %p2263_p8, %p1978_p7 }
  0x1c   : > { %p1981_p10 = pneg %p1980_p9 }
  0x1e   : > { %p1986_p12 = pnand %p1984_p11, %p1981_p10 }
  0x20   : > { %1989 = shalt.err (!%p1986_p12)
}
  0x21   : > { %s1990_s24 = scalar_lea.vmem %s2236_s17, 2048  ;;  %p1998_p4 = scmp.lt.s32.totalorder %s2236_s17, %s2236_s17 }
  0x22   : > { %p1991_p13 = scmp.ne.s32.totalorder %s2236_s17, %s1990_s24  ;;  %p1999_p2 = scmp.lt.s32.totalorder %s1990_s24, %s1990_s24 }
  0x24   : > { %p1993_p0 = pnand %p1991_p13, %p2263_p8  ;;  %p2000_p7 = por %p1999_p2, %p1998_p4 }
  0x26   : > { %p1994_p1 = pneg %p1993_p0 }
  0x28   : > { %p2001_p9 = pnand %p2000_p7, %p1994_p1 }
  0x2a   : > { %2004 = shalt.err (!%p2001_p9)
}
  0x2b   : > { %s2127_s26 = smov 128   ;;  %s2128_s14 = smov 8  }
  0x2c   : > { %1860 = dma.hbm_to_vmem [thread:$0]  (!%p2246_p5), %s2529_s10, 2048, %s2236_s17, [#allocation6], %s2127_s26, %s2127_s26, %s2128_s14  }
  0x2d   : > { %s2542_s22 = smov (%p2251_p6, %s39_s22), 0  ;;  %s2005_s18 = scalar_lea.hbm %s2506_s8, 1024 }
  0x2e   : > { %2531 = sst [smem:[#allocation15_spill]] %s2542_s22  ;;  %p2006_p2 = scmp.ne.s32.totalorder %s2506_s8, %s2005_s18 }
  0x2f   : > { %p2012_p12 = scmp.lt.u32.totalorder %s2005_s18, %s2506_s8 }
  0x30   : > { %p2008_p10 = pnand %p2006_p2, %p2263_p8 }
  0x32   : > { %p2009_p11 = pneg %p2008_p10 }
  0x34   : > { %p2014_p13 = pnand %p2012_p12, %p2009_p11 }
  0x36   : > { %2017 = shalt.err (!%p2014_p13)
}
  0x37   : > { %s2018_s17 = scalar_lea.vmem %s409_s25, 1024  ;;  %p2026_p4 = scmp.lt.s32.totalorder %s409_s25, %s409_s25 }
  0x38   : > { %p2019_p6 = scmp.ne.s32.totalorder %s409_s25, %s2018_s17  ;;  %p2027_p7 = scmp.lt.s32.totalorder %s2018_s17, %s2018_s17 }
  0x3a   : > { %p2021_p0 = pnand %p2019_p6, %p2263_p8  ;;  %p2028_p9 = por %p2027_p7, %p2026_p4 }
  0x3c   : > { %p2022_p1 = pneg %p2021_p0 }
  0x3e   : > { %p2029_p3 = pnand %p2028_p9, %p2022_p1 }
  0x40   : > { %2032 = shalt.err (!%p2029_p3)
}
  0x41   : > { %s2129_s9 = smov 64   ;;  %s2130_s23 = smov 4  }
  0x42   : > { %1857 = dma.hbm_to_vmem [thread:$0]  (!%p2246_p5), %s2506_s8, 1024, %s409_s25, [#allocation4], %s2129_s9, %s2129_s9, %s2130_s23  }
  0x43   : > { %s2131_s26 = smov [#allocation7]   ;;  %s2132_s30 = smov [#allocation8]  }
  0x44   : > { %s440_s14 = sshll.u32 %s2131_s26, 4  ;;  %s454_s27 = sshll.u32 %s2132_s30, 4  ;;  %s441_s14 = int_to_ptr.vmem [resolvable:$true] %s440_s14  ;;  %s455_s27 = int_to_ptr.vmem [resolvable:$true] %s454_s27 }
  0x45   : > { %s2033_s18 = scalar_lea.hbm %s2510_s12, 1024 }
  0x46   : > { %p2034_p3 = scmp.ne.s32.totalorder %s2510_s12, %s2033_s18  ;;  %p2040_p11 = scmp.lt.u32.totalorder %s2033_s18, %s2510_s12 }
  0x48   : > { %p2036_p2 = pnand %p2034_p3, %p2263_p8 }
  0x4a   : > { %p2037_p10 = pneg %p2036_p2 }
  0x4c   : > { %p2042_p12 = pnand %p2040_p11, %p2037_p10 }
  0x4e   : > { %2045 = shalt.err (!%p2042_p12)
}
  0x4f   : > { %s2046_s25 = scalar_lea.vmem %s441_s14, 1024  ;;  %p2054_p1 = scmp.lt.s32.totalorder %s441_s14, %s441_s14 }
  0x50   : > { %p2047_p13 = scmp.ne.s32.totalorder %s441_s14, %s2046_s25  ;;  %p2055_p4 = scmp.lt.s32.totalorder %s2046_s25, %s2046_s25 }
  0x52   : > { %p2049_p6 = pnand %p2047_p13, %p2263_p8  ;;  %p2056_p7 = por %p2055_p4, %p2054_p1 }
  0x54   : > { %p2050_p0 = pneg %p2049_p6 }
  0x56   : > { %p2057_p9 = pnand %p2056_p7, %p2050_p0 }
  0x58   : > { %2060 = shalt.err (!%p2057_p9)
}
  0x59   : > { %1863 = dma.hbm_to_vmem [thread:$0]  (!%p2246_p5), %s2510_s12, 1024, %s441_s14, [#allocation6], %s2129_s9, %s2129_s9, %s2130_s23  }
  0x5a   : > { %s2061_s26 = scalar_lea.hbm %s2511_s13, 16 }
  0x5b   : > { %p2062_p3 = scmp.ne.s32.totalorder %s2511_s13, %s2061_s26  ;;  %p2068_p11 = scmp.lt.u32.totalorder %s2061_s26, %s2511_s13 }
  0x5d   : > { %p2064_p2 = pnand %p2062_p3, %p2263_p8 }
  0x5f   : > { %p2065_p10 = pneg %p2064_p2 }
  0x61   : > { %p2070_p12 = pnand %p2068_p11, %p2065_p10 }
  0x63   : > { %2073 = shalt.err (!%p2070_p12)
}
  0x64   : > { %s2074_s24 = scalar_lea.vmem %s455_s27, 16  ;;  %s2081_s9 = scalar_lea.vmem %s455_s27, 32 }
  0x65   : > { %p2075_p13 = scmp.ne.s32.totalorder %s455_s27, %s2074_s24  ;;  %p2082_p1 = scmp.lt.s32.totalorder %s455_s27, %s455_s27 }
  0x66   : > { %p2083_p4 = scmp.lt.s32.totalorder %s2081_s9, %s2074_s24 }
  0x67   : > { %p2077_p6 = pnand %p2075_p13, %p2263_p8 }
  0x68   : > { %p2084_p7 = por %p2083_p4, %p2082_p1 }
  0x69   : > { %p2078_p0 = pneg %p2077_p6 }
  0x6b   : > { %p2085_p9 = pnand %p2084_p7, %p2078_p0 }
  0x6d   : > { %2088 = shalt.err (!%p2085_p9)
}
  0x6e   : > { %1866 = dma.hbm_to_vmem [thread:$0]  (!%p2246_p5), %s2511_s13, 16, %s455_s27, [#allocation9]  }
  0x6f   : > { %p2532_p3 = scmp.ne.s32.totalorder %s2526_s20, 0 }
  0x70   : > { %p2533_p2 = scmp.ne.s32.totalorder (!%p2532_p3), %s2525_s19, 0 }
  0x71   : > { %486 = sbr.rel (%p2532_p3) target bundleno = 2607 (0xa2f), region = 76 }
  0x78   : > { %2102 = dma.done.wait (%p2533_p2), [#allocation4], 1024  }
  0x79   : > { %2104 = vsyncadd (%p2533_p2), [#allocation4], 4294966272 }
  0x7a   : > { %2106 = dma.done.wait (%p2533_p2), [#allocation6], 3072  }
  0x7b   : > { %2108 = vsyncadd (%p2533_p2), [#allocation6], 4294964224 }
  0x7c   : > { %2110 = dma.done.wait (%p2533_p2), [#allocation9], 16  }
  0x7d   : > { %2112 = vsyncadd (%p2533_p2), [#allocation9], 4294967280  ;;  %p555_p5 = scmp.lt.s32.totalorder %s2115_s29, 1  ;;  %v1913_v11 = vld [vmem:[#allocation5 + $0x4] ss:$8 sps:$4 sm:$0xff]   ;;  %v2133_v35 = vmov 0  }
  0x7e   : > { %v1915_v12 = vld [vmem:[#allocation5] ss:$8 sps:$4 sm:$0xff]   ;;  %v1916_v13 = vld [vmem:[#allocation5 + $0x14] ss:$8 sps:$4 sm:$0xff]   ;;  %896 = vmatprep.subr.bf16.mxu1 %v1913_v11  ;;  %v1663_v20 = vld [vmem:[%s2500_s2] ss:$0 sm:$0xff]  ;;  %928 = vmatprep.mubr.bf16.mxu1 %v2133_v35 }
  0x7f   : > { %s2544_s29 = smov (!%p555_p5, %s2115_s29), 1  ;;  %897 = vmatpush1.bf16.msra.mxu1 %v1915_v12  ;;  %v1664_v22 = vld [vmem:[%s2501_s3] ss:$0 sm:$0xff]  ;;  %v1919_v28 = vld [vmem:[#allocation5 + $0x24] ss:$8 sps:$4 sm:$0xff]   ;;  %v2134_v42 = vmov 0.0  }
  0x80   : > { %s2358_s15 = sshll.u32 %s2544_s29, 4  ;;  %898 = vmatprep.subr.bf16.mxu1 %v1916_v13  ;;  %v1918_v27 = vld [vmem:[#allocation5 + $0x10] ss:$8 sps:$4 sm:$0xff]   ;;  %v1921_v29 = vld [vmem:[#allocation5 + $0x20] ss:$8 sps:$4 sm:$0xff]   ;;  %1750 = vmatprep.subr.bf16.mxu0 %v2134_v42  ;;  %vm2135_vm0 = vmmov 0  }
  0x81   : > { %s562_s27 = scalar_lea.vmem %s2498_s0, %s2358_s15  ;;  %s567_s6 = scalar_lea.vmem %s2499_s1, %s2358_s15  ;;  %v1922_v30 = vld [vmem:[#allocation5 + $0x34] ss:$8 sps:$4 sm:$0xff]   ;;  %v1924_v31 = vld [vmem:[#allocation5 + $0x30] ss:$8 sps:$4 sm:$0xff]   ;;  %v1925_v32 = vld [vmem:[#allocation5 + $0x44] ss:$8 sps:$4 sm:$0xff]   ;;  %1766 = vmatprep.mubr.msk.bf16.mxu0 %vm2135_vm0, %v2134_v42 }
  0x82   : > { %v2368_v0 = vld [vmem:[%s562_s27] sm:$0xff]  ;;  %v579_v2 = vld [vmem:[%s567_s6 + $0x8] sm:$0xff]  ;;  %v1938_v43 = vld [vmem:[#allocation3 + $0x8] sm:$0xff]   ;;  %s2534_s23 = sld [smem:[#allocation16_spill]]  ;;  %s2535_s21 = sld [smem:[#allocation17_spill]]  ;;  %vm943_vm1 = vcmask 261120  }
  0x83   : > { %v578_v1 = vld [vmem:[%s567_s6] sm:$0xff]  ;;  %582 = vadd.xlane.f32.xlu0 %v2368_v0  ;;  %899 = vmatpush1.bf16.msra.mxu1 %v1918_v27  ;;  %v1927_v33 = vld [vmem:[#allocation5 + $0x40] ss:$8 sps:$4 sm:$0xff]   ;;  %v1931_v37 = vld [vmem:[#allocation5 + $0x64] ss:$8 sps:$4 sm:$0xff]   ;;  %s2536_s25 = sld [smem:[#allocation18_spill]] }
  0x84   : > { %610 = vadd.xlane.f32.xlu1 %v578_v1  ;;  %900 = vmatprep.subr.bf16.mxu1 %v1919_v28  ;;  %v1928_v34 = vld [vmem:[#allocation5 + $0x54] ss:$8 sps:$4 sm:$0xff]   ;;  %v1930_v36 = vld [vmem:[#allocation5 + $0x50] ss:$8 sps:$4 sm:$0xff]   ;;  %v1933_v38 = vld [vmem:[#allocation5 + $0x60] ss:$8 sps:$4 sm:$0xff]  }
  0x85   : > { %v1934_v39 = vld [vmem:[#allocation5 + $0x74] ss:$8 sps:$4 sm:$0xff]   ;;  %v1936_v40 = vld [vmem:[#allocation5 + $0x70] ss:$8 sps:$4 sm:$0xff]   ;;  %v1937_v41 = vld [vmem:[#allocation3] sm:$0xff]   ;;  %vm990_vm2 = vcmask 130048  }
  0x86   : > { %1751 = vmatpush3.bf16.msra.mxu0 %v1937_v41  ;;  %v1665_v56 = vld [vmem:[%s2502_s4] ss:$0 sm:$0xff]  ;;  %v1939_v58 = vld [vmem:[#allocation3 + $0x10] sm:$0xff]   ;;  %s2136_s6 = smov 96   ;;  %s2137_s29 = smov 32   ;;  %vm1162_vm3 = vcmask 523520  }
  0x87   : > { %901 = vmatpush1.bf16.msra.mxu1 %v1921_v29  ;;  %1752 = vmatprep.subr.bf16.mxu0 %v2134_v42  ;;  %v1666_v61 = vld [vmem:[%s2503_s5] ss:$0 sm:$0xff]  ;;  %s2138_s19 = smov 64   ;;  %vm1276_vm4 = vcmask 785920   ;;  %vm1390_vm5 = vcmask 1048320   ;;  %s2537_s22 = sld [smem:[#allocation20_spill]] }
  0x88   : > { %612 = vadd.xlane.f32.xlu1 %v579_v2  ;;  %902 = vmatprep.subr.bf16.mxu1 %v1922_v30  ;;  %v1940_v63 = vld [vmem:[#allocation3 + $0x18] sm:$0xff]  }
  0x8a   : > { %1753 = vmatpush3.bf16.msra.mxu0 %v1938_v43 }
  0x8b   : > { %903 = vmatpush1.bf16.msra.mxu1 %v1924_v31  ;;  %1754 = vmatprep.subr.bf16.mxu0 %v2134_v42 }
  0x8c   : > { %904 = vmatprep.subr.bf16.mxu1 %v1925_v32 }
  0x8d   : > { %s575_s26 = scalar_lea.vmem %s2537_s22, %s2358_s15 }
  0x8e   : > { %1755 = vmatpush3.bf16.msra.mxu0 %v1939_v58 }
  0x8f   : > { %905 = vmatpush1.bf16.msra.mxu1 %v1927_v33  ;;  %1756 = vmatprep.subr.bf16.mxu0 %v2134_v42 }
  0x90   : > { %906 = vmatprep.subr.bf16.mxu1 %v1928_v34 }
  0x92   : > { %1757 = vmatpush3.bf16.msra.mxu0 %v1940_v63 }
  0x93   : > { %907 = vmatpush1.bf16.msra.mxu1 %v1930_v36  ;;  %1758 = vmatprep.subr.bf16.mxu0 %v2134_v42  ;;  %v1669_v36 = vld [vmem:[%s2536_s25] ss:$0 sm:$0xff] }
  0x94   : > { %908 = vmatprep.subr.bf16.mxu1 %v1931_v37 }
  0x97   : > { %909 = vmatpush1.bf16.msra.mxu1 %v1933_v38 }
  0x98   : > { %910 = vmatprep.subr.bf16.mxu1 %v1934_v39 }
  0x9b   : > { %911 = vmatpush1.bf16.msra.mxu1 %v1936_v40 }
  0x9c   : > { %1770 = vmatprep.subr.bf16.mxu1 %v2134_v42 }
 0x110   : > { %v583_v3 = vpop.xlane.xlu0 %582 }
 0x111   : > { %v611_v4 = vpop.xlane.xlu1 %610  ;;  %v585_v5 = vmul.f32 0.0078125, %v583_v3  ;;  %v1941_v3 = vld [vmem:[#allocation3 + $0x20] sm:$0xff]  }
 0x112   : > { %v614_v6 = vmul.f32 0.0078125, %v611_v4  ;;  %1759 = vmatpush3.bf16.msra.mxu0 %v1941_v3 }
 0x113   : > { %v586_v7 = vsub.f32 %v2368_v0, %v585_v5  ;;  %v1942_v5 = vld [vmem:[#allocation3 + $0x28] sm:$0xff]   ;;  %1760 = vmatprep.subr.bf16.mxu0 %v2134_v42 }
 0x114   : > { %v2372_v8 = vsub.f32 %v578_v1, %v614_v6  ;;  %v1943_v6 = vld [vmem:[#allocation3 + $0x30] sm:$0xff]  }
 0x115   : > { %v587_v9 = vmul.f32 %v586_v7, %v586_v7  ;;  %v613_v17 = vpop.xlane.xlu1 %612 }
 0x116   : > { %v618_v10 = vmul.f32 %v2372_v8, %v2372_v8  ;;  %v615_v18 = vmul.f32 0.0078125, %v613_v17  ;;  %1761 = vmatpush3.bf16.msra.mxu0 %v1942_v5  ;;  %v1667_v17 = vld [vmem:[%s2534_s23] ss:$0 sm:$0xff] }
 0x117   : > { %588 = vadd.xlane.f32.xlu0 %v587_v9  ;;  %1762 = vmatprep.subr.bf16.mxu0 %v2134_v42 }
 0x118   : > { %620 = vadd.xlane.f32.xlu1 %v618_v10  ;;  %v617_v23 = vsub.f32 %v579_v2, %v615_v18  ;;  %v804_v10 = vld [vmem:[%s2509_s11] sm:$0x3] }
 0x11a   : > { %v619_v26 = vmul.f32 %v617_v23, %v617_v23  ;;  %1763 = vmatpush3.bf16.msra.mxu0 %v1943_v6 }
 0x11b   : > { %1764 = vmatprep.subr.bf16.mxu0 %v2134_v42 }
 0x1a4   : > { %v589_v14 = vpop.xlane.xlu0 %588 }
 0x1a5   : > { %v590_v15 = vmul.f32 0.0078125, %v589_v14  ;;  %v621_v44 = vpop.xlane.xlu1 %620 }
 0x1a6   : > { %v624_v45 = vmul.f32 0.0078125, %v621_v44 }
 0x1a7   : > { %v591_v16 = vadd.f32 1e-05, %v590_v15 }
 0x1a8   : > { %v626_v46 = vadd.f32 1e-05, %v624_v45 }
 0x1a9   : > { %1953 = vrsqrt.f32 %v591_v16 }
 0x1aa   : > { %1955 = vrsqrt.f32 %v626_v46 }
 0x1b3   : > { %v1954_v19 = vpop.eup %1953 }
 0x1b4   : > { %v593_v21 = vmul.f32 %v1954_v19, %v586_v7  ;;  %v1956_v54 = vpop.eup %1955  ;;  %v1944_v7 = vld [vmem:[#allocation3 + $0x38] sm:$0xff]  }
 0x1b5   : > { %v630_v55 = vmul.f32 %v1956_v54, %v2372_v8  ;;  %1765 = vmatpush3.bf16.msra.mxu0 %v1944_v7  ;;  %v806_v8 = vlaneseq  ;;  %v1668_v19 = vld [vmem:[%s2535_s21] ss:$0 sm:$0xff] }
 0x1b6   : > { %v600_v24 = vmul.f32 %v1663_v20, %v593_v21  ;;  %1794 = vmatprep.subr.bf16.mxu0 %v2134_v42 }
 0x1b7   : > { %v638_v60 = vmul.f32 %v1665_v56, %v630_v55  ;;  %v807_v9 = vshrl.u32 %v806_v8, 7 }
 0x1b8   : > { %v607_v25 = vadd.f32 %v1664_v22, %v600_v24 }
 0x1b9   : > { %v646_v1 = vadd.f32 %v1666_v61, %v638_v60  ;;  %v812_v11 = vsub.s32 1, %v807_v9 }
 0x1ba   : > { %650 = vadd.xlane.f32.xlu0 %v607_v25 }
 0x1bb   : > { %v813_v12 = vrot.slane %v804_v10, %v812_v11 }
 0x1be   : > { %622 = vadd.xlane.f32.xlu0 %v619_v26 }
 0x247   : > { %v651_v47 = vpop.xlane.xlu0 %650 }
 0x248   : > { %v652_v48 = vmul.f32 0.0078125, %v651_v47 }
 0x24a   : > { %v653_v49 = vsub.f32 %v607_v25, %v652_v48 }
 0x24b   : > { %v623_v50 = vpop.xlane.xlu0 %622 }
 0x24c   : > { %v625_v51 = vmul.f32 0.0078125, %v623_v50  ;;  %v654_v52 = vmul.f32 %v653_v49, %v653_v49 }
 0x24e   : > { %v627_v53 = vadd.f32 1e-05, %v625_v51  ;;  %655 = vadd.xlane.f32.xlu1 %v654_v52 }
 0x250   : > { %1957 = vrsqrt.f32 %v627_v53 }
 0x25a   : > { %v1958_v57 = vpop.eup %1957 }
 0x25b   : > { %v631_v59 = vmul.f32 %v1958_v57, %v617_v23  ;;  %v808_v23 = vsub.s32 0, %v807_v9 }
 0x25d   : > { %v639_v62 = vmul.f32 %v1665_v56, %v631_v59  ;;  %v809_v24 = vrot.slane %v804_v10, %v808_v23 }
 0x25f   : > { %v647_v2 = vadd.f32 %v1666_v61, %v639_v62 }
 0x261   : > { %v787_v4 = vpack.c.bf16 %v647_v2, %v646_v1 }
 0x263   : > { %929 = vmatmul.mubr.bf16.vlgmr.msra.gmra.mrb[0].mxu1 %v787_v4 }
 0x264   : > { %1772 = vmatprep.mubr.msk.bf16.mxu1 %vm2135_vm0, %v2134_v42 }
 0x2db   : > { %v656_v13 = vpop.xlane.xlu1 %655 }
 0x2dc   : > { %v657_v14 = vmul.f32 0.0078125, %v656_v13 }
 0x2de   : > { %v658_v15 = vadd.f32 1e-05, %v657_v14 }
 0x2e0   : > { %1959 = vrsqrt.f32 %v658_v15 }
 0x2ea   : > { %v1960_v16 = vpop.eup %1959 }
 0x2eb   : > { %v660_v18 = vmul.f32 %v1960_v16, %v653_v49 }
 0x2ed   : > { %v667_v20 = vmul.f32 %v1667_v17, %v660_v18 }
 0x2ef   : > { %v674_v21 = vadd.f32 %v1668_v19, %v667_v20 }
 0x2f1   : > { %v675_v22 = vpack.c.bf16 %v674_v21, %v674_v21 }
 0x2f3   : > { %1767 = vmatmul.mubr.bf16.vlgmr.msra.gmra.mrb[0].mxu0 %v675_v22 }
 0x2f4   : > { %1796 = vmatprep.mubr.msk.bf16.mxu0 %vm2135_vm0, %v2134_v42 }
 0x336   : > { %v930_v25 = vpop.f32.mrb[0].mxu1 }
 0x337   : > { %v932_v26 = vpop.f32.mrb[1].mxu1  ;;  %v931_v29 = vadd.f32 %v930_v25, %v809_v24 }
 0x338   : > { %v933_v27 = vadd.f32 %v932_v26, %v813_v12  ;;  %v934_v28 = vpop.f32.mrb[2].mxu1 }
 0x339   : > { %v935_v30 = vadd.f32 %v934_v28, %v809_v24  ;;  %v936_v31 = vpop.f32.mrb[3].mxu1 }
 0x33a   : > { %v937_v32 = vadd.f32 %v936_v31, %v813_v12 }
 0x33b   : > { %v941_v33 = vpack.c.bf16 %v935_v30, %v931_v29 }
 0x33c   : > { %v2414_v34 = vpack.c.bf16 %v937_v32, %v933_v27 }
 0x33d   : > { %v948_v35 = vsel %vm943_vm1, %v941_v33, 0 }
 0x33e   : > { %1771 = vmatpush3.bf16.xpose.msra.mxu1 %v948_v35 }
 0x33f   : > { %1776 = vmatprep.subr.bf16.mxu1 %v2134_v42 }
 0x3c6   : > { %v781_v37 = vpop.f32.mrb[0].mxu0 }
 0x3c7   : > { %v782_v38 = vadd.f32 %v1669_v36, %v781_v37  ;;  %v1768_v39 = vpop.f32.mrb[1].mxu0 }
 0x3c8   : > { %v784_v40 = vpop.f32.mrb[2].mxu0 }
 0x3c9   : > { %v939_v41 = vmul.f32 0.17677669, %v782_v38  ;;  %v1769_v43 = vpop.f32.mrb[3].mxu0 }
 0x3cb   : > { %v940_v44 = vpack.c.bf16 %v939_v41, %v939_v41 }
 0x3cd   : > { %1773 = vmatmul.mubr.msk.bf16.vlgmr.msra.gmra.mrb[4].mxu1 %vm943_vm1, %v940_v44 }
 0x3ce   : > { %1777 = vmatpush3.bf16.msra.mxu1 %v2414_v34  ;;  %1778 = vmatprep.mubr.msk.bf16.mxu1 %vm2135_vm0, %v2134_v42 }
 0x3cf   : > { %1782 = vmatprep.subr.bf16.mxu1 %v2134_v42 }
 0x4a0   : > { %v984_v45 = vpop.f32.mrb[4].mxu1 }
 0x4a1   : > { %v1774_v46 = vpop.f32.mrb[5].mxu1  ;;  %v991_v47 = vsel %vm990_vm2, %v984_v45, -inf }
 0x4a2   : > { %992 = vmax.xlane.f32.xlu0 %v991_v47  ;;  %v987_v48 = vpop.f32.mrb[6].mxu1 }
 0x4a3   : > { %v1775_v49 = vpop.f32.mrb[7].mxu1 }
 0x4b8   : > { %1051 = vrot.lane.b32.xlu0 %v941_v33, %s2136_s6 }
 0x4bc   : > { %1280 = vrot.lane.b32.xlu0 %v941_v33, %s2137_s29 }
 0x52f   : > { %v993_v50 = vpop.xlane.xlu0 %992 }
 0x530   : > { %v994_v51 = vsub.f32 %v984_v45, %v993_v50 }
 0x532   : > { %v995_v52 = vmul.f32 1.442695, %v994_v51 }
 0x533   : > { %v1052_v57 = vpop.permute.xlu0 %1051 }
 0x534   : > { %1961 = vpow2.f32 %v995_v52  ;;  %v1057_v1 = vsel %vm943_vm1, %v1052_v57, 0  ;;  %v1947_v57 = vld [vmem:[#allocation7 + $0x10] sm:$0xff]  }
 0x537   : > { %v1281_v62 = vpop.permute.xlu0 %1280 }
 0x538   : > { %v1286_v3 = vsel %vm943_vm1, %v1281_v62, 0 }
 0x53e   : > { %v1962_v53 = vpop.eup %1961 }
 0x53f   : > { %v997_v54 = vsel %vm990_vm2, %v1962_v53, 0.0 }
 0x540   : > { %998 = vadd.xlane.f32.xlu1 %v997_v54 }
 0x551   : > { %1048 = vrot.lane.b32.xlu1 %v940_v44, %s2136_s6 }
 0x555   : > { %1166 = vrot.lane.b32.xlu1 %v941_v33, %s2138_s19 }
 0x559   : > { %1164 = vrot.lane.b32.xlu1 %v940_v44, %s2138_s19 }
 0x55d   : > { %1278 = vrot.lane.b32.xlu1 %v940_v44, %s2137_s29 }
 0x5cd   : > { %v999_v55 = vpop.xlane.xlu1 %998 }
 0x5ce   : > { %1963 = vrcp.f32 %v999_v55  ;;  %v1945_v55 = vld [vmem:[#allocation7] sm:$0xff]  }
 0x5d1   : > { %v1049_v56 = vpop.permute.xlu1 %1048 }
 0x5d5   : > { %v1167_v58 = vpop.permute.xlu1 %1166 }
 0x5d6   : > { %v1172_v59 = vsel %vm943_vm1, %v1167_v58, 0  ;;  %v1948_v58 = vld [vmem:[#allocation7 + $0x18] sm:$0xff]  }
 0x5d7   : > { %1795 = vmatpush3.bf16.xpose.msra.mxu0 %v1172_v59  ;;  %v1949_v59 = vld [vmem:[#allocation7 + $0x20] sm:$0xff]  }
 0x5d8   : > { %v1964_v60 = vpop.eup %1963  ;;  %1806 = vmatprep.subr.bf16.mxu0 %v2134_v42 }
 0x5d9   : > { %v1001_v61 = vmul.f32 %v1964_v60, %v1962_v53  ;;  %v1165_v2 = vpop.permute.xlu1 %1164  ;;  %v1950_v60 = vld [vmem:[#allocation7 + $0x28] sm:$0xff]  }
 0x5db   : > { %v1002_v63 = vpack.c.bf16 %v1001_v61, %v1001_v61 }
 0x5dd   : > { %1779 = vmatmul.mubr.msk.bf16.vlgmr.msra.gmra.mrb[8].mxu1 %vm990_vm2, %v1002_v63  ;;  %v1279_v4 = vpop.permute.xlu1 %1278 }
 0x5de   : > { %1783 = vmatpush3.bf16.xpose.msra.mxu1 %v1057_v1  ;;  %1797 = vmatmul.mubr.msk.bf16.vlgmr.msra.gmra.mrb[4].mxu0 %vm943_vm1, %v1165_v2  ;;  %v1951_v2 = vld [vmem:[#allocation7 + $0x30] sm:$0xff]  }
 0x5df   : > { %1807 = vmatpush3.bf16.xpose.msra.mxu0 %v1286_v3  ;;  %1784 = vmatprep.mubr.msk.bf16.mxu1 %vm2135_vm0, %v2134_v42  ;;  %v1952_v3 = vld [vmem:[#allocation7 + $0x38] sm:$0xff]  }
 0x5e0   : > { %1808 = vmatprep.mubr.msk.bf16.mxu0 %vm2135_vm0, %v2134_v42  ;;  %1788 = vmatprep.subr.bf16.mxu1 %v2134_v42 }
 0x5e1   : > { %1818 = vmatprep.subr.bf16.mxu0 %v2134_v42 }
 0x5e5   : > { %1785 = vmatmul.mubr.msk.bf16.vlgmr.msra.gmra.mrb[12].mxu1 %vm943_vm1, %v1049_v56  ;;  %v1946_v56 = vld [vmem:[#allocation7 + $0x8] sm:$0xff]  }
 0x5e6   : > { %1809 = vmatmul.mubr.msk.bf16.vlgmr.msra.gmra.mrb[8].mxu0 %vm943_vm1, %v1279_v4  ;;  %1790 = vmatprep.mubr.msk.bf16.mxu1 %vm2135_vm0, %v2134_v42 }
 0x5e7   : > { %1834 = vmatprep.mubr.msk.bf16.mxu0 %vm2135_vm0, %v2134_v42  ;;  %1819 = vmatpush3.bf16.msra.mxu0 %v1945_v55 }
 0x5e8   : > { %1820 = vmatprep.subr.bf16.mxu0 %v2134_v42 }
 0x5eb   : > { %1821 = vmatpush3.bf16.msra.mxu0 %v1946_v56 }
 0x5ec   : > { %1822 = vmatprep.subr.bf16.mxu0 %v2134_v42 }
 0x5ef   : > { %1823 = vmatpush3.bf16.msra.mxu0 %v1947_v57 }
 0x5f0   : > { %1824 = vmatprep.subr.bf16.mxu0 %v2134_v42 }
 0x5f3   : > { %1825 = vmatpush3.bf16.msra.mxu0 %v1948_v58 }
 0x5f4   : > { %1826 = vmatprep.subr.bf16.mxu0 %v2134_v42 }
 0x5f7   : > { %1827 = vmatpush3.bf16.msra.mxu0 %v1949_v59 }
 0x5f8   : > { %1828 = vmatprep.subr.bf16.mxu0 %v2134_v42 }
 0x5fb   : > { %1829 = vmatpush3.bf16.msra.mxu0 %v1950_v60 }
 0x5fc   : > { %1830 = vmatprep.subr.bf16.mxu0 %v2134_v42 }
 0x5ff   : > { %1831 = vmatpush3.bf16.msra.mxu0 %v1951_v2 }
 0x600   : > { %1832 = vmatprep.subr.bf16.mxu0 %v2134_v42 }
 0x603   : > { %1833 = vmatpush3.bf16.msra.mxu0 %v1952_v3 }
 0x6b0   : > { %v1040_v5 = vpop.f32.mrb[8].mxu1 }
 0x6b1   : > { %1046 = vst.msk [vmem:[#allocation2] sm:$0xff] %vm943_vm1, %v1040_v5  ;;  %v1780_v6 = vpop.f32.mrb[9].mxu1  ;;  %v1208_v7 = vpop.f32.mrb[4].mxu0 }
 0x6b2   : > { %v1043_v8 = vpop.f32.mrb[10].mxu1  ;;  %v1798_v9 = vpop.f32.mrb[5].mxu0  ;;  %v1214_v10 = vsel %vm990_vm2, %v1208_v7, -inf }
 0x6b3   : > { %1215 = vmax.xlane.f32.xlu1 %v1214_v10  ;;  %v1781_v11 = vpop.f32.mrb[11].mxu1  ;;  %v1211_v12 = vpop.f32.mrb[6].mxu0 }
 0x6b4   : > { %v1799_v13 = vpop.f32.mrb[7].mxu0 }
 0x6b8   : > { %v1093_v14 = vpop.f32.mrb[12].mxu1 }
 0x6b9   : > { %v1786_v15 = vpop.f32.mrb[13].mxu1  ;;  %v1322_v16 = vpop.f32.mrb[8].mxu0  ;;  %v1099_v17 = vsel %vm990_vm2, %v1093_v14, -inf }
 0x6ba   : > { %v1810_v18 = vpop.f32.mrb[9].mxu0  ;;  %1100 = vmax.xlane.f32.xlu0 %v1099_v17  ;;  %v1096_v19 = vpop.f32.mrb[14].mxu1  ;;  %v1328_v23 = vsel %vm990_vm2, %v1322_v16, -inf }
 0x6bb   : > { %v1787_v20 = vpop.f32.mrb[15].mxu1  ;;  %v1325_v21 = vpop.f32.mrb[10].mxu0 }
 0x6bc   : > { %v1811_v22 = vpop.f32.mrb[11].mxu0 }
 0x6be   : > { %1329 = vmax.xlane.f32.xlu0 %v1328_v23 }
 0x740   : > { %v1216_v24 = vpop.xlane.xlu1 %1215 }
 0x741   : > { %v1217_v25 = vsub.f32 %v1208_v7, %v1216_v24 }
 0x743   : > { %v1218_v26 = vmul.f32 1.442695, %v1217_v25 }
 0x745   : > { %1965 = vpow2.f32 %v1218_v26 }
 0x747   : > { %v1101_v27 = vpop.xlane.xlu0 %1100 }
 0x748   : > { %v1102_v28 = vsub.f32 %v1093_v14, %v1101_v27 }
 0x74a   : > { %v1103_v29 = vmul.f32 1.442695, %v1102_v28 }
 0x74b   : > { %v1330_v30 = vpop.xlane.xlu0 %1329 }
 0x74c   : > { %1967 = vpow2.f32 %v1103_v29  ;;  %v1331_v31 = vsub.f32 %v1322_v16, %v1330_v30  ;;  %v1702_v16 = vld [vmem:[#allocation8] ss:$0 sm:$0xff] }
 0x74e   : > { %v1332_v32 = vmul.f32 1.442695, %v1331_v31 }
 0x74f   : > { %v1966_v33 = vpop.eup %1965 }
 0x750   : > { %1969 = vpow2.f32 %v1332_v32  ;;  %v1220_v35 = vsel %vm990_vm2, %v1966_v33, 0.0 }
 0x751   : > { %1221 = vadd.xlane.f32.xlu0 %v1220_v35 }
 0x756   : > { %v1968_v36 = vpop.eup %1967 }
 0x757   : > { %v1105_v37 = vsel %vm990_vm2, %v1968_v36, 0.0 }
 0x758   : > { %1106 = vadd.xlane.f32.xlu0 %v1105_v37 }
 0x75a   : > { %v1970_v38 = vpop.eup %1969 }
 0x75b   : > { %v1334_v39 = vsel %vm990_vm2, %v1970_v38, 0.0 }
 0x75c   : > { %1335 = vadd.xlane.f32.xlu1 %v1334_v39 }
 0x76d   : > { %1226 = vrot.lane.b32.xlu1 %v2414_v34, %s2138_s19 }
 0x76e   : > { %1112 = vrot.lane.b32.xlu0 %v2414_v34, %s2136_s6 }
 0x771   : > { %1340 = vrot.lane.b32.xlu1 %v2414_v34, %s2137_s29 }
 0x7de   : > { %v1222_v40 = vpop.xlane.xlu0 %1221 }
 0x7e5   : > { %v1107_v41 = vpop.xlane.xlu0 %1106 }
 0x7e6   : > { %1971 = vrcp.f32 %v1107_v41 }
 0x7e7   : > { %1973 = vrcp.f32 %v1222_v40 }
 0x7e9   : > { %v1113_v43 = vpop.permute.xlu0 %1112  ;;  %v1336_v44 = vpop.xlane.xlu1 %1335 }
 0x7ea   : > { %1789 = vmatpush3.bf16.msra.mxu1 %v1113_v43  ;;  %1975 = vrcp.f32 %v1336_v44 }
 0x7eb   : > { %1800 = vmatprep.subr.bf16.mxu1 %v2134_v42 }
 0x7ed   : > { %v1227_v49 = vpop.permute.xlu1 %1226 }
 0x7f0   : > { %v1972_v45 = vpop.eup %1971 }
 0x7f1   : > { %v1109_v46 = vmul.f32 %v1972_v45, %v1968_v36  ;;  %v1974_v48 = vpop.eup %1973  ;;  %v1341_v52 = vpop.permute.xlu1 %1340 }
 0x7f2   : > { %v1224_v34 = vmul.f32 %v1974_v48, %v1966_v33 }
 0x7f3   : > { %v1110_v47 = vpack.c.bf16 %v1109_v46, %v1109_v46 }
 0x7f4   : > { %v1225_v50 = vpack.c.bf16 %v1224_v34, %v1224_v34  ;;  %v1976_v51 = vpop.eup %1975 }
 0x7f5   : > { %1791 = vmatmul.mubr.msk.bf16.vlgmr.msra.gmra.mrb[16].mxu1 %vm990_vm2, %v1110_v47  ;;  %v1338_v53 = vmul.f32 %v1976_v51, %v1970_v38 }
 0x7f6   : > { %1801 = vmatpush3.bf16.msra.mxu1 %v1227_v49  ;;  %1802 = vmatprep.mubr.msk.bf16.mxu1 %vm2135_vm0, %v2134_v42 }
 0x7f7   : > { %1812 = vmatprep.subr.bf16.mxu1 %v2134_v42  ;;  %v1339_v54 = vpack.c.bf16 %v1338_v53, %v1338_v53 }
 0x7fd   : > { %1803 = vmatmul.mubr.msk.bf16.vlgmr.msra.gmra.mrb[20].mxu1 %vm990_vm2, %v1225_v50 }
 0x7fe   : > { %1813 = vmatpush3.bf16.msra.mxu1 %v1341_v52  ;;  %1814 = vmatprep.mubr.msk.bf16.mxu1 %vm2135_vm0, %v2134_v42 }
 0x805   : > { %1815 = vmatmul.mubr.msk.bf16.vlgmr.msra.gmra.mrb[24].mxu1 %vm990_vm2, %v1339_v54 }
 0x8c8   : > { %v1152_v61 = vpop.f32.mrb[16].mxu1 }
 0x8c9   : > { %1159 = vrot.lane.b32.xlu1 %v1152_v61, %s2137_s29  ;;  %v1792_v62 = vpop.f32.mrb[17].mxu1 }
 0x8ca   : > { %v1155_v63 = vpop.f32.mrb[18].mxu1 }
 0x8cb   : > { %v1793_v1 = vpop.f32.mrb[19].mxu1 }
 0x8d0   : > { %v1266_v4 = vpop.f32.mrb[20].mxu1 }
 0x8d1   : > { %1273 = vrot.lane.b32.xlu0 %v1266_v4, %s2138_s19  ;;  %v1804_v5 = vpop.f32.mrb[21].mxu1 }
 0x8d2   : > { %v1269_v6 = vpop.f32.mrb[22].mxu1 }
 0x8d3   : > { %v1805_v7 = vpop.f32.mrb[23].mxu1 }
 0x8d8   : > { %v1380_v8 = vpop.f32.mrb[24].mxu1 }
 0x8d9   : > { %1387 = vrot.lane.b32.xlu1 %v1380_v8, %s2136_s6  ;;  %v1816_v9 = vpop.f32.mrb[25].mxu1 }
 0x8da   : > { %v1383_v10 = vpop.f32.mrb[26].mxu1 }
 0x8db   : > { %v1817_v11 = vpop.f32.mrb[27].mxu1 }
 0x93b   : > { %v1160_v12 = vpop.permute.xlu1 %1159 }
 0x93c   : > { %1163 = vst.msk [vmem:[#allocation2] sm:$0xff] %vm1162_vm3, %v1160_v12 }
 0x943   : > { %v1274_v13 = vpop.permute.xlu0 %1273 }
 0x944   : > { %1277 = vst.msk [vmem:[#allocation2] sm:$0xff] %vm1276_vm4, %v1274_v13 }
 0x94b   : > { %v1388_v42 = vpop.permute.xlu1 %1387 }
 0x94c   : > { %1391 = vst.msk [vmem:[#allocation2] sm:$0xff] %vm1390_vm5, %v1388_v42 }
 0x953   : > { %v1392_v14 = vld [vmem:[#allocation2] sm:$0xff] }
 0x954   : > { %v1393_v15 = vpack.c.bf16 %v1392_v14, %v1392_v14 }
 0x956   : > { %1835 = vmatmul.mubr.bf16.vlgmr.msra.gmra.mrb[12].mxu0 %v1393_v15 }
 0xa29   : > { %v1499_v17 = vpop.f32.mrb[12].mxu0 }
 0xa2a   : > { %v1500_v18 = vadd.f32 %v1702_v16, %v1499_v17  ;;  %v1836_v19 = vpop.f32.mrb[13].mxu0 }
 0xa2b   : > { %v1502_v20 = vpop.f32.mrb[14].mxu0 }
 0xa2c   : > { %v1505_v21 = vadd.f32 %v1500_v18, %v2368_v0  ;;  %v1837_v22 = vpop.f32.mrb[15].mxu0 }
 0xa2e   : > { %1506 = vst [vmem:[%s575_s26] sm:$0xff] %v1505_v21 }
 0xa2f PF: > { %s2538_s30 = sld [smem:[#allocation14_spill]]  ;;  %s2539_s29 = sld [smem:[#allocation13_spill]] }
 0xa35   : > { %s27_s15 = sadd.s32 1, %s2538_s30   ;;  %s2540_s30 = sld [smem:[#allocation15_spill]] }
 0xa36   : > { %p24_p8 = scmp.ge.s32.totalorder %s27_s15, 4  }
 0xa38   :  { %26 = sbr.rel (!%p24_p8) target bundleno = 10 (0xa), region = 126 }
 0xa3f   :  { %1534 = vsyncpa [#allocation4], 1 }
 0xa40   :  { %1536 = vsyncpa [#allocation4 + $0x1], 1 }
 0xa41   :  { %1537 = vsyncpa [#allocation6], 1 }
 0xa42   :  { %1538 = vsyncpa [#allocation9], 1 }

// kernel: cross_modal_transformer.8
= control target key start
LH: loop header
LB: loop body
LE: loop exit
PB: predicated region body
PF: predicated region fallthrough
CT: control target
= control target key end

     0   :  { %s2175_s25 = smov 0   ;;  %s2512_s0 = inlined_call_operand.vmem [shape: f32[2,16,128], index: 0, kind: input, shape index: {}]   ;;  %s2513_s1 = inlined_call_operand.vmem [shape: f32[1,128], index: 1, kind: input, shape index: {}]   ;;  %s2514_s2 = inlined_call_operand.vmem [shape: f32[1,128], index: 2, kind: input, shape index: {}]   ;;  %s2515_s3 = inlined_call_operand.vmem [shape: bf16[128,384], index: 3, kind: input, shape index: {}]   ;;  %s2516_s4 = inlined_call_operand.vmem [shape: f32[1,384], index: 4, kind: input, shape index: {}]   ;;  %s2517_s5 = inlined_call_operand.vmem [shape: bf16[128,128], index: 5, kind: input, shape index: {}]   ;;  %s2518_s6 = inlined_call_operand.vmem [shape: f32[1,128], index: 6, kind: input, shape index: {}]   ;;  %s2519_s7 = inlined_call_operand.vmem [shape: f32[1,128], index: 7, kind: input, shape index: {}]   ;;  %s2520_s8 = inlined_call_operand.vmem [shape: f32[1,128], index: 8, kind: input, shape index: {}]   ;;  %s2521_s9 = inlined_call_operand.vmem [shape: bf16[128,128], index: 9, kind: input, shape index: {}]   ;;  %s2522_s10 = inlined_call_operand.vmem [shape: f32[1,128], index: 10, kind: input, shape index: {}]   ;;  %s2523_s11 = inlined_call_operand.vmem [shape: bf16[128,128], index: 11, kind: input, shape index: {}]   ;;  %s2524_s12 = inlined_call_operand.vmem [shape: f32[1,128], index: 12, kind: input, shape index: {}]   ;;  %s2525_s13 = inlined_call_operand.vmem [shape: f32[2,16,128], index: 13, kind: output, shape index: {}]  }
   0x1 LB: > { %s1721_s26 = sadd.s32 4294967295, %s2097_s25   ;;  %p1725_p0 = scmp.ge.s32.totalorder %s2097_s25, 1  ;;  %s2097_s25 = sphi %s2175_s25, %s23_s25  }
   0x2   : > { %p387_p1 = scmp.lt.s32.totalorder %s2097_s25, 3 }
   0x4   : > { %p388_p2 = pnand %p1725_p0, %p387_p1 }
   0x5   : > { %p431_p3 = scmp.lt.s32.totalorder (!%p388_p2), %s1721_s26, 1  ;;  %v1991_v2 = vld [vmem:[%s2515_s3 + $0x4] ss:$12 sps:$4 sm:$0xff] (!%p388_p2)   ;;  %v1993_v3 = vld [vmem:[%s2515_s3] ss:$12 sps:$4 sm:$0xff] (!%p388_p2)   ;;  %v2099_v4 = vmov (!%p388_p2), 0.0   ;;  %v520_v53 = vlaneseq (!%p388_p2) }
   0x6   : > { %391 = sbr.rel (%p388_p2) target bundleno = 2986 (0xbaa), region = 72  ;;  %1849 = vmatprep.subr.bf16.mxu1 (!%p388_p2), %v2099_v4  ;;  %v1994_v5 = vld [vmem:[%s2515_s3 + $0x8] ss:$12 sps:$4 sm:$0xff] (!%p388_p2)   ;;  %663 = vmatprep.subr.bf16.mxu0 (!%p388_p2), %v1991_v2  ;;  %v1997_v15 = vld [vmem:[%s2515_s3 + $0x18] ss:$12 sps:$4 sm:$0xff] (!%p388_p2)   ;;  %v2100_v30 = vmov (!%p388_p2), 0  }
   0x7   : > { %v1995_v6 = vld [vmem:[%s2515_s3 + $0x1c] ss:$12 sps:$4 sm:$0xff] (!%p388_p2)   ;;  %664 = vmatpush1.bf16.msra.mxu0 (!%p388_p2), %v1993_v3  ;;  %1850 = vmatpush3.bf16.msra.mxu1 (!%p388_p2), %v1994_v5  ;;  %v1998_v16 = vld [vmem:[%s2515_s3 + $0x20] ss:$12 sps:$4 sm:$0xff] (!%p388_p2)   ;;  %v2002_v19 = vld [vmem:[%s2515_s3 + $0x38] ss:$12 sps:$4 sm:$0xff] (!%p388_p2)  }
   0x8   : > { %665 = vmatprep.subr.bf16.mxu0 (!%p388_p2), %v1995_v6  ;;  %1851 = vmatprep.subr.bf16.mxu1 (!%p388_p2), %v2099_v4  ;;  %v1999_v17 = vld [vmem:[%s2515_s3 + $0x34] ss:$12 sps:$4 sm:$0xff] (!%p388_p2)   ;;  %v2001_v18 = vld [vmem:[%s2515_s3 + $0x30] ss:$12 sps:$4 sm:$0xff] (!%p388_p2)   ;;  %v2003_v20 = vld [vmem:[%s2515_s3 + $0x4c] ss:$12 sps:$4 sm:$0xff] (!%p388_p2)  }
   0x9   : > { %v2005_v21 = vld [vmem:[%s2515_s3 + $0x48] ss:$12 sps:$4 sm:$0xff] (!%p388_p2)   ;;  %v2006_v22 = vld [vmem:[%s2515_s3 + $0x50] ss:$12 sps:$4 sm:$0xff] (!%p388_p2)   ;;  %v2009_v24 = vld [vmem:[%s2515_s3 + $0x60] ss:$12 sps:$4 sm:$0xff] (!%p388_p2)   ;;  %695 = vmatprep.mubr.bf16.mxu0 (!%p388_p2), %v2100_v30 }
   0xa   : > { %v2007_v23 = vld [vmem:[%s2515_s3 + $0x64] ss:$12 sps:$4 sm:$0xff] (!%p388_p2)   ;;  %v2010_v25 = vld [vmem:[%s2515_s3 + $0x68] ss:$12 sps:$4 sm:$0xff] (!%p388_p2)   ;;  %v2014_v28 = vld [vmem:[%s2515_s3 + $0x80] ss:$12 sps:$4 sm:$0xff] (!%p388_p2)  }
   0xb   : > { %666 = vmatpush1.bf16.msra.mxu0 (!%p388_p2), %v1997_v15  ;;  %1852 = vmatpush3.bf16.msra.mxu1 (!%p388_p2), %v1998_v16  ;;  %v2011_v26 = vld [vmem:[%s2515_s3 + $0x7c] ss:$12 sps:$4 sm:$0xff] (!%p388_p2)   ;;  %v2013_v27 = vld [vmem:[%s2515_s3 + $0x78] ss:$12 sps:$4 sm:$0xff] (!%p388_p2)   ;;  %v2015_v29 = vld [vmem:[%s2515_s3 + $0x94] ss:$12 sps:$4 sm:$0xff] (!%p388_p2)  }
   0xc   : > { %1853 = vmatprep.subr.bf16.mxu1 (!%p388_p2), %v2099_v4  ;;  %667 = vmatprep.subr.bf16.mxu0 (!%p388_p2), %v1999_v17  ;;  %vm2101_vm0 = vmmov (!%p388_p2), 0   ;;  %v2017_v31 = vld [vmem:[%s2515_s3 + $0x90] ss:$12 sps:$4 sm:$0xff] (!%p388_p2)   ;;  %v2018_v32 = vld [vmem:[%s2515_s3 + $0x98] ss:$12 sps:$4 sm:$0xff] (!%p388_p2)   ;;  %v521_v54 = vshrl.u32 (!%p388_p2), %v520_v53, 7 }
   0xd   : > { %s2527_s26 = smov (!%p431_p3, %s1721_s26), 1  ;;  %1865 = vmatprep.mubr.msk.bf16.mxu1 %vm2101_vm0, %v2099_v4  ;;  %v2019_v33 = vld [vmem:[%s2515_s3 + $0xac] ss:$12 sps:$4 sm:$0xff]   ;;  %v2021_v34 = vld [vmem:[%s2515_s3 + $0xa8] ss:$12 sps:$4 sm:$0xff]   ;;  %vm752_vm1 = vcmask 261120  }
   0xe   : > { %s1795_s27 = sshll.u32 %s2527_s26, 4  ;;  %v2022_v35 = vld [vmem:[%s2515_s3 + $0xb0] ss:$12 sps:$4 sm:$0xff]   ;;  %v1730_v44 = vld [vmem:[%s2513_s1] ss:$0 sm:$0xff]  ;;  %v522_v55 = vsub.s32 0, %v521_v54 }
   0xf   : > { %s435_s30 = scalar_lea.vmem %s2512_s0, %s1795_s27  ;;  %668 = vmatpush1.bf16.msra.mxu0 %v2001_v18  ;;  %1854 = vmatpush3.bf16.msra.mxu1 %v2002_v19  ;;  %v1731_v48 = vld [vmem:[%s2514_s2] ss:$0 sm:$0xff]  ;;  %v530_v57 = vsub.s32 2, %v521_v54  ;;  %v526_v58 = vsub.s32 1, %v521_v54  ;;  %vm800_vm2 = vcmask 130048   ;;  %s2102_s29 = smov 96  }
  0x10   : > { %v2191_v0 = vld [vmem:[%s435_s30] sm:$0xff]  ;;  %v2193_v1 = vld [vmem:[%s435_s30 + $0x8] sm:$0xff]  ;;  %1855 = vmatprep.subr.bf16.mxu1 %v2099_v4  ;;  %669 = vmatprep.subr.bf16.mxu0 %v2003_v20  ;;  %s2103_s30 = smov 64   ;;  %s2104_s14 = smov 32   ;;  %vm1002_vm3 = vcmask 523520   ;;  %vm1134_vm4 = vcmask 785920  }
  0x11   : > { %446 = vadd.xlane.f32.xlu0 %v2191_v0  ;;  %v518_v56 = vld [vmem:[%s2516_s4] sm:$0x7]  ;;  %vm1266_vm5 = vcmask 1048320   ;;  %s440_s19 = scalar_lea.vmem %s2525_s13, %s1795_s27 }
  0x12   : > { %v523_v59 = vrot.slane %v518_v56, %v522_v55  ;;  %v531_v60 = vrot.slane %v518_v56, %v530_v57  ;;  %v527_v63 = vrot.slane %v518_v56, %v526_v58 }
  0x13   : > { %670 = vmatpush1.bf16.msra.mxu0 %v2005_v21  ;;  %1856 = vmatpush3.bf16.msra.mxu1 %v2006_v22 }
  0x14   : > { %1857 = vmatprep.subr.bf16.mxu1 %v2099_v4  ;;  %671 = vmatprep.subr.bf16.mxu0 %v2007_v23 }
  0x15   : > { %448 = vadd.xlane.f32.xlu0 %v2193_v1 }
  0x17   : > { %672 = vmatpush1.bf16.msra.mxu0 %v2009_v24  ;;  %1858 = vmatpush3.bf16.msra.mxu1 %v2010_v25 }
  0x18   : > { %673 = vmatprep.subr.bf16.mxu0 %v2011_v26  ;;  %1859 = vmatprep.subr.bf16.mxu1 %v2099_v4 }
  0x1b   : > { %674 = vmatpush1.bf16.msra.mxu0 %v2013_v27  ;;  %1860 = vmatpush3.bf16.msra.mxu1 %v2014_v28 }
  0x1c   : > { %675 = vmatprep.subr.bf16.mxu0 %v2015_v29  ;;  %1861 = vmatprep.subr.bf16.mxu1 %v2099_v4 }
  0x1f   : > { %676 = vmatpush1.bf16.msra.mxu0 %v2017_v31  ;;  %1862 = vmatpush3.bf16.msra.mxu1 %v2018_v32 }
  0x20   : > { %677 = vmatprep.subr.bf16.mxu0 %v2019_v33  ;;  %1863 = vmatprep.subr.bf16.mxu1 %v2099_v4 }
  0x23   : > { %678 = vmatpush1.bf16.msra.mxu0 %v2021_v34  ;;  %1864 = vmatpush3.bf16.msra.mxu1 %v2022_v35 }
  0x24   : > { %1869 = vmatprep.subr.bf16.mxu1 %v2099_v4  ;;  %1893 = vmatprep.subr.bf16.mxu0 %v2099_v4 }
  0x9e   : > { %v447_v7 = vpop.xlane.xlu0 %446 }
  0x9f   : > { %v451_v8 = vmul.f32 0.0078125, %v447_v7 }
  0xa1   : > { %v2212_v9 = vsub.f32 %v2191_v0, %v451_v8 }
  0xa2   : > { %v449_v10 = vpop.xlane.xlu0 %448 }
  0xa3   : > { %v452_v11 = vmul.f32 0.0078125, %v449_v10  ;;  %v455_v12 = vmul.f32 %v2212_v9, %v2212_v9 }
  0xa5   : > { %v2217_v13 = vsub.f32 %v2193_v1, %v452_v11  ;;  %457 = vadd.xlane.f32.xlu1 %v455_v12 }
  0xa7   : > { %v456_v14 = vmul.f32 %v2217_v13, %v2217_v13 }
  0xa9   : > { %459 = vadd.xlane.f32.xlu1 %v456_v14 }
 0x132   : > { %v458_v36 = vpop.xlane.xlu1 %457 }
 0x133   : > { %v461_v37 = vmul.f32 0.0078125, %v458_v36 }
 0x135   : > { %v463_v38 = vadd.f32 1e-05, %v461_v37 }
 0x136   : > { %v460_v39 = vpop.xlane.xlu1 %459 }
 0x137   : > { %2047 = vrsqrt.f32 %v463_v38  ;;  %v462_v40 = vmul.f32 0.0078125, %v460_v39 }
 0x139   : > { %v464_v41 = vadd.f32 1e-05, %v462_v40 }
 0x13b   : > { %2049 = vrsqrt.f32 %v464_v41 }
 0x141   : > { %v2048_v42 = vpop.eup %2047 }
 0x142   : > { %v467_v43 = vmul.f32 %v2048_v42, %v2212_v9 }
 0x144   : > { %v475_v47 = vmul.f32 %v1730_v44, %v467_v43 }
 0x145   : > { %v2050_v45 = vpop.eup %2049 }
 0x146   : > { %v468_v46 = vmul.f32 %v2050_v45, %v2217_v13  ;;  %v483_v50 = vadd.f32 %v1731_v48, %v475_v47 }
 0x148   : > { %v476_v49 = vmul.f32 %v1730_v44, %v468_v46 }
 0x14a   : > { %v484_v51 = vadd.f32 %v1731_v48, %v476_v49 }
 0x14c   : > { %v485_v52 = vpack.c.bf16 %v484_v51, %v483_v50 }
 0x14e   : > { %696 = vmatmul.mubr.bf16.vlgmr.msra.gmra.mrb[0].mxu0 %v485_v52  ;;  %1866 = vmatmul.mubr.bf16.vlgmr.msra.gmra.mrb[0].mxu1 %v485_v52 }
 0x14f   : > { %1871 = vmatprep.mubr.msk.bf16.mxu1 %vm2101_vm0, %v2099_v4  ;;  %1895 = vmatprep.mubr.msk.bf16.mxu0 %vm2101_vm0, %v2099_v4 }
 0x221   : > { %v697_v61 = vpop.f32.mrb[0].mxu0  ;;  %v740_v62 = vpop.f32.mrb[0].mxu1 }
 0x222   : > { %v698_v2 = vadd.f32 %v697_v61, %v523_v59  ;;  %v699_v3 = vpop.f32.mrb[1].mxu0  ;;  %v1867_v5 = vpop.f32.mrb[1].mxu1  ;;  %v741_v8 = vadd.f32 %v740_v62, %v531_v60 }
 0x223   : > { %v701_v6 = vpop.f32.mrb[2].mxu0  ;;  %v743_v7 = vpop.f32.mrb[2].mxu1  ;;  %v700_v13 = vadd.f32 %v699_v3, %v527_v63 }
 0x224   : > { %v702_v9 = vadd.f32 %v701_v6, %v523_v59  ;;  %v744_v10 = vadd.f32 %v743_v7, %v531_v60  ;;  %v703_v11 = vpop.f32.mrb[3].mxu0  ;;  %v1868_v12 = vpop.f32.mrb[3].mxu1  ;;  %v747_v15 = vmul.f32 0.17677669, %v698_v2 }
 0x225   : > { %v704_v14 = vadd.f32 %v703_v11, %v527_v63 }
 0x226   : > { %v748_v16 = vmul.f32 0.17677669, %v702_v9  ;;  %v2306_v17 = vpack.c.bf16 %v744_v10, %v741_v8 }
 0x227   : > { %v750_v18 = vpack.c.bf16 %v704_v14, %v700_v13 }
 0x228   : > { %v749_v19 = vpack.c.bf16 %v748_v16, %v747_v15 }
 0x229   : > { %v757_v20 = vsel %vm752_vm1, %v750_v18, 0 }
 0x22a   : > { %1870 = vmatpush3.bf16.xpose.msra.mxu1 %v757_v20 }
 0x22b   : > { %1875 = vmatprep.subr.bf16.mxu1 %v2099_v4 }
 0x231   : > { %1872 = vmatmul.mubr.msk.bf16.vlgmr.msra.gmra.mrb[4].mxu1 %vm752_vm1, %v749_v19 }
 0x232   : > { %1876 = vmatpush3.bf16.msra.mxu1 %v2306_v17  ;;  %1877 = vmatprep.mubr.msk.bf16.mxu1 %vm2101_vm0, %v2099_v4 }
 0x233   : > { %1881 = vmatprep.subr.bf16.mxu1 %v2099_v4 }
 0x304   : > { %v793_v21 = vpop.f32.mrb[4].mxu1 }
 0x305   : > { %v1873_v22 = vpop.f32.mrb[5].mxu1  ;;  %v801_v23 = vsel %vm800_vm2, %v793_v21, -inf }
 0x306   : > { %802 = vmax.xlane.f32.xlu0 %v801_v23  ;;  %v796_v24 = vpop.f32.mrb[6].mxu1 }
 0x307   : > { %v1874_v25 = vpop.f32.mrb[7].mxu1  ;;  %v804_v26 = vsel %vm800_vm2, %v796_v24, -inf }
 0x308   : > { %805 = vmax.xlane.f32.xlu1 %v804_v26 }
 0x393   : > { %v803_v27 = vpop.xlane.xlu0 %802 }
 0x394   : > { %v807_v28 = vsub.f32 %v793_v21, %v803_v27 }
 0x395   : > { %v806_v29 = vpop.xlane.xlu1 %805 }
 0x396   : > { %v809_v30 = vmul.f32 1.442695, %v807_v28  ;;  %v808_v31 = vsub.f32 %v796_v24, %v806_v29 }
 0x398   : > { %2051 = vpow2.f32 %v809_v30  ;;  %v811_v32 = vmul.f32 1.442695, %v808_v31 }
 0x39a   : > { %2053 = vpow2.f32 %v811_v32 }
 0x3a2   : > { %v2052_v33 = vpop.eup %2051 }
 0x3a3   : > { %v813_v34 = vsel %vm800_vm2, %v2052_v33, 0.0 }
 0x3a4   : > { %v2054_v35 = vpop.eup %2053  ;;  %814 = vadd.xlane.f32.xlu0 %v813_v34 }
 0x3a5   : > { %v816_v36 = vsel %vm800_vm2, %v2054_v35, 0.0 }
 0x3a6   : > { %817 = vadd.xlane.f32.xlu1 %v816_v36 }
 0x3b7   : > { %871 = vrot.lane.b32.xlu1 %v749_v19, %s2102_s29 }
 0x3ba   : > { %874 = vrot.lane.b32.xlu0 %v750_v18, %s2102_s29 }
 0x3bb   : > { %1007 = vrot.lane.b32.xlu1 %v750_v18, %s2103_s30 }
 0x3be   : > { %1139 = vrot.lane.b32.xlu0 %v750_v18, %s2104_s14 }
 0x3bf   : > { %1005 = vrot.lane.b32.xlu1 %v749_v19, %s2103_s30 }
 0x3c3   : > { %1137 = vrot.lane.b32.xlu1 %v749_v19, %s2104_s14 }
 0x431   : > { %v815_v37 = vpop.xlane.xlu0 %814 }
 0x432   : > { %2055 = vrcp.f32 %v815_v37 }
 0x433   : > { %v818_v38 = vpop.xlane.xlu1 %817 }
 0x434   : > { %2057 = vrcp.f32 %v818_v38 }
 0x435   : > { %v875_v40 = vpop.permute.xlu0 %874 }
 0x436   : > { %v880_v49 = vsel %vm752_vm1, %v875_v40, 0 }
 0x437   : > { %v872_v39 = vpop.permute.xlu1 %871 }
 0x439   : > { %v1140_v47 = vpop.permute.xlu0 %1139 }
 0x43a   : > { %v1145_v51 = vsel %vm752_vm1, %v1140_v47, 0 }
 0x43b   : > { %v1008_v41 = vpop.permute.xlu1 %1007 }
 0x43c   : > { %v2056_v42 = vpop.eup %2055  ;;  %v1013_v43 = vsel %vm752_vm1, %v1008_v41, 0 }
 0x43d   : > { %1894 = vmatpush3.bf16.xpose.msra.mxu0 %v1013_v43  ;;  %v821_v45 = vmul.f32 %v2056_v42, %v2052_v33 }
 0x43e   : > { %v2058_v44 = vpop.eup %2057  ;;  %1905 = vmatprep.subr.bf16.mxu0 %v2099_v4 }
 0x43f   : > { %v822_v46 = vmul.f32 %v2058_v44, %v2054_v35  ;;  %v1006_v50 = vpop.permute.xlu1 %1005 }
 0x441   : > { %v823_v48 = vpack.c.bf16 %v822_v46, %v821_v45 }
 0x443   : > { %1878 = vmatmul.mubr.msk.bf16.vlgmr.msra.gmra.mrb[8].mxu1 %vm800_vm2, %v823_v48  ;;  %v1138_v52 = vpop.permute.xlu1 %1137 }
 0x444   : > { %1882 = vmatpush3.bf16.xpose.msra.mxu1 %v880_v49  ;;  %1896 = vmatmul.mubr.msk.bf16.vlgmr.msra.gmra.mrb[4].mxu0 %vm752_vm1, %v1006_v50 }
 0x445   : > { %1906 = vmatpush3.bf16.xpose.msra.mxu0 %v1145_v51  ;;  %1883 = vmatprep.mubr.msk.bf16.mxu1 %vm2101_vm0, %v2099_v4 }
 0x446   : > { %1907 = vmatprep.mubr.msk.bf16.mxu0 %vm2101_vm0, %v2099_v4  ;;  %1887 = vmatprep.subr.bf16.mxu1 %v2099_v4 }
 0x447   : > { %1917 = vmatprep.subr.bf16.mxu0 %v2099_v4 }
 0x44b   : > { %1884 = vmatmul.mubr.msk.bf16.vlgmr.msra.gmra.mrb[12].mxu1 %vm752_vm1, %v872_v39 }
 0x44c   : > { %1908 = vmatmul.mubr.msk.bf16.vlgmr.msra.gmra.mrb[8].mxu0 %vm752_vm1, %v1138_v52  ;;  %1889 = vmatprep.mubr.msk.bf16.mxu1 %vm2101_vm0, %v2099_v4 }
 0x44d   : > { %1933 = vmatprep.mubr.msk.bf16.mxu0 %vm2101_vm0, %v2099_v4 }
 0x516   : > { %v861_v53 = vpop.f32.mrb[8].mxu1 }
 0x517   : > { %868 = vst.msk [vmem:[#allocation2] sm:$0xff] %vm752_vm1, %v861_v53  ;;  %v1879_v54 = vpop.f32.mrb[9].mxu1  ;;  %v1049_v55 = vpop.f32.mrb[4].mxu0 }
 0x518   : > { %v864_v56 = vpop.f32.mrb[10].mxu1  ;;  %v1897_v57 = vpop.f32.mrb[5].mxu0  ;;  %v1056_v10 = vsel %vm800_vm2, %v1049_v55, -inf }
 0x519   : > { %869 = vst.msk [vmem:[#allocation2 + $0x8] sm:$0xff] %vm752_vm1, %v864_v56  ;;  %v1880_v58 = vpop.f32.mrb[11].mxu1  ;;  %v1052_v59 = vpop.f32.mrb[6].mxu0 }
 0x51a   : > { %v1898_v60 = vpop.f32.mrb[7].mxu0  ;;  %v1059_v12 = vsel %vm800_vm2, %v1052_v59, -inf }
 0x51e   : > { %v916_v61 = vpop.f32.mrb[12].mxu1 }
 0x51f   : > { %v1885_v62 = vpop.f32.mrb[13].mxu1  ;;  %v1181_v63 = vpop.f32.mrb[8].mxu0  ;;  %v923_v2 = vsel %vm800_vm2, %v916_v61, -inf }
 0x520   : > { %v1909_v3 = vpop.f32.mrb[9].mxu0  ;;  %924 = vmax.xlane.f32.xlu0 %v923_v2  ;;  %v919_v5 = vpop.f32.mrb[14].mxu1  ;;  %v1188_v13 = vsel %vm800_vm2, %v1181_v63, -inf }
 0x521   : > { %v1886_v6 = vpop.f32.mrb[15].mxu1  ;;  %v1184_v7 = vpop.f32.mrb[10].mxu0  ;;  %v926_v8 = vsel %vm800_vm2, %v919_v5, -inf }
 0x522   : > { %v1910_v9 = vpop.f32.mrb[11].mxu0  ;;  %927 = vmax.xlane.f32.xlu1 %v926_v8  ;;  %v1191_v11 = vsel %vm800_vm2, %v1184_v7, -inf  ;;  %v2024_v8 = vld [vmem:[%s2517_s5 + $0x8] sm:$0xff]  }
 0x523   : > { %v2025_v9 = vld [vmem:[%s2517_s5 + $0x10] sm:$0xff]  }
 0x524   : > { %1057 = vmax.xlane.f32.xlu0 %v1056_v10  ;;  %v2026_v10 = vld [vmem:[%s2517_s5 + $0x18] sm:$0xff]  }
 0x526   : > { %1192 = vmax.xlane.f32.xlu1 %v1191_v11  ;;  %v2027_v11 = vld [vmem:[%s2517_s5 + $0x20] sm:$0xff]  }
 0x528   : > { %1060 = vmax.xlane.f32.xlu0 %v1059_v12 }
 0x52c   : > { %1189 = vmax.xlane.f32.xlu0 %v1188_v13 }
 0x5ad   : > { %v925_v14 = vpop.xlane.xlu0 %924 }
 0x5ae   : > { %v929_v24 = vsub.f32 %v916_v61, %v925_v14 }
 0x5af   : > { %v928_v15 = vpop.xlane.xlu1 %927 }
 0x5b0   : > { %v930_v25 = vsub.f32 %v919_v5, %v928_v15  ;;  %v931_v30 = vmul.f32 1.442695, %v929_v24 }
 0x5b1   : > { %v1058_v16 = vpop.xlane.xlu0 %1057 }
 0x5b2   : > { %v1062_v18 = vsub.f32 %v1049_v55, %v1058_v16  ;;  %v933_v31 = vmul.f32 1.442695, %v930_v25  ;;  %v2028_v16 = vld [vmem:[%s2517_s5 + $0x28] sm:$0xff]  }
 0x5b3   : > { %v1193_v19 = vpop.xlane.xlu1 %1192 }
 0x5b4   : > { %v1064_v20 = vmul.f32 1.442695, %v1062_v18  ;;  %v1195_v21 = vsub.f32 %v1184_v7, %v1193_v19  ;;  %v2023_v7 = vld [vmem:[%s2517_s5] sm:$0xff]   ;;  %v2029_v18 = vld [vmem:[%s2517_s5 + $0x30] sm:$0xff]  }
 0x5b5   : > { %v1061_v22 = vpop.xlane.xlu0 %1060  ;;  %1918 = vmatpush3.bf16.msra.mxu0 %v2023_v7 }
 0x5b6   : > { %2059 = vpow2.f32 %v1064_v20  ;;  %v1063_v23 = vsub.f32 %v1052_v59, %v1061_v22  ;;  %v1198_v26 = vmul.f32 1.442695, %v1195_v21  ;;  %1919 = vmatprep.subr.bf16.mxu0 %v2099_v4  ;;  %v2030_v22 = vld [vmem:[%s2517_s5 + $0x38] sm:$0xff]  }
 0x5b8   : > { %v1066_v27 = vmul.f32 1.442695, %v1063_v23 }
 0x5b9   : > { %v1190_v28 = vpop.xlane.xlu0 %1189  ;;  %1920 = vmatpush3.bf16.msra.mxu0 %v2024_v8  ;;  %v1773_v8 = vld [vmem:[%s2519_s7] ss:$0 sm:$0xff] }
 0x5ba   : > { %2061 = vpow2.f32 %v1066_v27  ;;  %v1194_v29 = vsub.f32 %v1181_v63, %v1190_v28  ;;  %1921 = vmatprep.subr.bf16.mxu0 %v2099_v4 }
 0x5bb   : > { %2063 = vpow2.f32 %v1198_v26 }
 0x5bc   : > { %v1196_v32 = vmul.f32 1.442695, %v1194_v29 }
 0x5bd   : > { %1922 = vmatpush3.bf16.msra.mxu0 %v2025_v9 }
 0x5be   : > { %2065 = vpow2.f32 %v1196_v32  ;;  %1923 = vmatprep.subr.bf16.mxu0 %v2099_v4 }
 0x5bf   : > { %2067 = vpow2.f32 %v931_v30 }
 0x5c0   : > { %v2060_v33 = vpop.eup %2059  ;;  %2069 = vpow2.f32 %v933_v31 }
 0x5c1   : > { %v1068_v34 = vsel %vm800_vm2, %v2060_v33, 0.0  ;;  %1924 = vmatpush3.bf16.msra.mxu0 %v2026_v10 }
 0x5c2   : > { %1069 = vadd.xlane.f32.xlu0 %v1068_v34  ;;  %1925 = vmatprep.subr.bf16.mxu0 %v2099_v4 }
 0x5c4   : > { %v2062_v35 = vpop.eup %2061 }
 0x5c5   : > { %v1071_v36 = vsel %vm800_vm2, %v2062_v35, 0.0  ;;  %v2064_v37 = vpop.eup %2063  ;;  %1926 = vmatpush3.bf16.msra.mxu0 %v2027_v11 }
 0x5c6   : > { %1072 = vadd.xlane.f32.xlu1 %v1071_v36  ;;  %v1203_v41 = vsel %vm800_vm2, %v2064_v37, 0.0  ;;  %1927 = vmatprep.subr.bf16.mxu0 %v2099_v4 }
 0x5c8   : > { %v2066_v38 = vpop.eup %2065 }
 0x5c9   : > { %v2068_v39 = vpop.eup %2067  ;;  %v1200_v40 = vsel %vm800_vm2, %v2066_v38, 0.0  ;;  %1928 = vmatpush3.bf16.msra.mxu0 %v2028_v16 }
 0x5ca   : > { %v2070_v42 = vpop.eup %2069  ;;  %1201 = vadd.xlane.f32.xlu0 %v1200_v40  ;;  %1204 = vadd.xlane.f32.xlu1 %v1203_v41  ;;  %v935_v43 = vsel %vm800_vm2, %v2068_v39, 0.0 }
 0x5cb   : > { %v938_v44 = vsel %vm800_vm2, %v2070_v42, 0.0  ;;  %1929 = vmatprep.subr.bf16.mxu0 %v2099_v4 }
 0x5cd   : > { %1930 = vmatpush3.bf16.msra.mxu0 %v2029_v18  ;;  %v2041_v18 = vld [vmem:[%s2523_s11 + $0x10] sm:$0xff]  }
 0x5ce   : > { %936 = vadd.xlane.f32.xlu0 %v935_v43  ;;  %939 = vadd.xlane.f32.xlu1 %v938_v44 }
 0x5cf   : > { %1931 = vmatprep.subr.bf16.mxu0 %v2099_v4 }
 0x5d1   : > { %1932 = vmatpush3.bf16.msra.mxu0 %v2030_v22  ;;  %v2045_v22 = vld [vmem:[%s2523_s11 + $0x30] sm:$0xff]  }
 0x5d2   : > { %1957 = vmatprep.subr.bf16.mxu0 %v2099_v4 }
 0x5df   : > { %1079 = vrot.lane.b32.xlu1 %v2306_v17, %s2103_s30 }
 0x5e3   : > { %1211 = vrot.lane.b32.xlu1 %v2306_v17, %s2104_s14 }
 0x5e4   : > { %947 = vrot.lane.b32.xlu0 %v2306_v17, %s2102_s29 }
 0x64f   : > { %v1070_v45 = vpop.xlane.xlu0 %1069 }
 0x653   : > { %v1073_v46 = vpop.xlane.xlu1 %1072 }
 0x657   : > { %v1202_v47 = vpop.xlane.xlu0 %1201  ;;  %v1205_v48 = vpop.xlane.xlu1 %1204 }
 0x65b   : > { %v937_v49 = vpop.xlane.xlu0 %936  ;;  %v940_v50 = vpop.xlane.xlu1 %939 }
 0x65c   : > { %2071 = vrcp.f32 %v937_v49 }
 0x65d   : > { %2073 = vrcp.f32 %v940_v50 }
 0x65e   : > { %2075 = vrcp.f32 %v1073_v46  ;;  %v2031_v46 = vld [vmem:[%s2521_s9] sm:$0xff]  }
 0x65f   : > { %v948_v51 = vpop.permute.xlu0 %947  ;;  %2077 = vrcp.f32 %v1070_v45  ;;  %v1080_v57 = vpop.permute.xlu1 %1079 }
 0x660   : > { %1888 = vmatpush3.bf16.msra.mxu1 %v948_v51  ;;  %2079 = vrcp.f32 %v1202_v47 }
 0x661   : > { %1899 = vmatprep.subr.bf16.mxu1 %v2099_v4  ;;  %2081 = vrcp.f32 %v1205_v48 }
 0x663   : > { %v1212_v2 = vpop.permute.xlu1 %1211 }
 0x666   : > { %v2072_v52 = vpop.eup %2071 }
 0x667   : > { %v2074_v53 = vpop.eup %2073  ;;  %v943_v54 = vmul.f32 %v2072_v52, %v2068_v39 }
 0x668   : > { %v944_v55 = vmul.f32 %v2074_v53, %v2070_v42  ;;  %v2076_v56 = vpop.eup %2075  ;;  %v2032_v53 = vld [vmem:[%s2521_s9 + $0x8] sm:$0xff]  }
 0x669   : > { %v2078_v58 = vpop.eup %2077  ;;  %v1077_v59 = vmul.f32 %v2076_v56, %v2062_v35  ;;  %v2036_v56 = vld [vmem:[%s2521_s9 + $0x28] sm:$0xff]  }
 0x66a   : > { %v945_v17 = vpack.c.bf16 %v944_v55, %v943_v54  ;;  %v1076_v60 = vmul.f32 %v2078_v58, %v2060_v33  ;;  %v2080_v61 = vpop.eup %2079  ;;  %v2033_v54 = vld [vmem:[%s2521_s9 + $0x10] sm:$0xff]   ;;  %v2034_v55 = vld [vmem:[%s2521_s9 + $0x18] sm:$0xff]  }
 0x66b   : > { %v2082_v63 = vpop.eup %2081  ;;  %v1208_v3 = vmul.f32 %v2080_v61, %v2066_v38  ;;  %v2038_v58 = vld [vmem:[%s2521_s9 + $0x38] sm:$0xff]  }
 0x66c   : > { %1890 = vmatmul.mubr.msk.bf16.vlgmr.msra.gmra.mrb[16].mxu1 %vm800_vm2, %v945_v17  ;;  %v1078_v62 = vpack.c.bf16 %v1077_v59, %v1076_v60  ;;  %v1209_v5 = vmul.f32 %v2082_v63, %v2064_v37  ;;  %v1764_v37 = vld [vmem:[%s2518_s6] ss:$0 sm:$0xff]  ;;  %v2040_v60 = vld [vmem:[%s2523_s11 + $0x8] sm:$0xff]  }
 0x66d   : > { %1900 = vmatpush3.bf16.msra.mxu1 %v1080_v57  ;;  %1901 = vmatprep.mubr.msk.bf16.mxu1 %vm2101_vm0, %v2099_v4  ;;  %v2035_v17 = vld [vmem:[%s2521_s9 + $0x20] sm:$0xff]   ;;  %v2037_v57 = vld [vmem:[%s2521_s9 + $0x30] sm:$0xff]  }
 0x66e   : > { %1911 = vmatprep.subr.bf16.mxu1 %v2099_v4  ;;  %v1210_v6 = vpack.c.bf16 %v1209_v5, %v1208_v3  ;;  %v2039_v59 = vld [vmem:[%s2523_s11] sm:$0xff]  }
 0x674   : > { %1902 = vmatmul.mubr.msk.bf16.vlgmr.msra.gmra.mrb[20].mxu1 %vm800_vm2, %v1078_v62 }
 0x675   : > { %1912 = vmatpush3.bf16.msra.mxu1 %v1212_v2  ;;  %1913 = vmatprep.mubr.msk.bf16.mxu1 %vm2101_vm0, %v2099_v4 }
 0x676   : > { %1937 = vmatprep.subr.bf16.mxu1 %v2099_v4 }
 0x67c   : > { %1914 = vmatmul.mubr.msk.bf16.vlgmr.msra.gmra.mrb[24].mxu1 %vm800_vm2, %v1210_v6 }
 0x67d   : > { %1953 = vmatprep.mubr.msk.bf16.mxu1 %vm2101_vm0, %v2099_v4  ;;  %1938 = vmatpush3.bf16.msra.mxu1 %v2031_v46 }
 0x67e   : > { %1939 = vmatprep.subr.bf16.mxu1 %v2099_v4 }
 0x681   : > { %1940 = vmatpush3.bf16.msra.mxu1 %v2032_v53 }
 0x682   : > { %1941 = vmatprep.subr.bf16.mxu1 %v2099_v4 }
 0x685   : > { %1942 = vmatpush3.bf16.msra.mxu1 %v2033_v54 }
 0x686   : > { %1943 = vmatprep.subr.bf16.mxu1 %v2099_v4 }
 0x689   : > { %1944 = vmatpush3.bf16.msra.mxu1 %v2034_v55 }
 0x68a   : > { %1945 = vmatprep.subr.bf16.mxu1 %v2099_v4 }
 0x68d   : > { %1946 = vmatpush3.bf16.msra.mxu1 %v2035_v17 }
 0x68e   : > { %1947 = vmatprep.subr.bf16.mxu1 %v2099_v4 }
 0x691   : > { %1948 = vmatpush3.bf16.msra.mxu1 %v2036_v56 }
 0x692   : > { %1949 = vmatprep.subr.bf16.mxu1 %v2099_v4 }
 0x695   : > { %1950 = vmatpush3.bf16.msra.mxu1 %v2037_v57 }
 0x696   : > { %1951 = vmatprep.subr.bf16.mxu1 %v2099_v4 }
 0x699   : > { %1952 = vmatpush3.bf16.msra.mxu1 %v2038_v58 }
 0x73f   : > { %v987_v12 = vpop.f32.mrb[16].mxu1 }
 0x740   : > { %996 = vrot.lane.b32.xlu1 %v987_v12, %s2104_s14  ;;  %v1891_v13 = vpop.f32.mrb[17].mxu1  ;;  %v1774_v12 = vld [vmem:[%s2520_s8] ss:$0 sm:$0xff] }
 0x741   : > { %v990_v14 = vpop.f32.mrb[18].mxu1 }
 0x742   : > { %998 = vrot.lane.b32.xlu0 %v990_v14, %s2104_s14  ;;  %v1892_v15 = vpop.f32.mrb[19].mxu1 }
 0x747   : > { %v1119_v19 = vpop.f32.mrb[20].mxu1 }
 0x748   : > { %1128 = vrot.lane.b32.xlu1 %v1119_v19, %s2103_s30  ;;  %v1903_v20 = vpop.f32.mrb[21].mxu1  ;;  %v2042_v19 = vld [vmem:[%s2523_s11 + $0x18] sm:$0xff]  }
 0x749   : > { %v1122_v21 = vpop.f32.mrb[22].mxu1  ;;  %v2043_v20 = vld [vmem:[%s2523_s11 + $0x20] sm:$0xff]  }
 0x74a   : > { %1130 = vrot.lane.b32.xlu0 %v1122_v21, %s2103_s30  ;;  %v1904_v23 = vpop.f32.mrb[23].mxu1  ;;  %v2044_v21 = vld [vmem:[%s2523_s11 + $0x28] sm:$0xff]  }
 0x74b   : > { %v2046_v23 = vld [vmem:[%s2523_s11 + $0x38] sm:$0xff]  }
 0x74f   : > { %v1251_v24 = vpop.f32.mrb[24].mxu1 }
 0x750   : > { %1260 = vrot.lane.b32.xlu1 %v1251_v24, %s2102_s29  ;;  %v1915_v25 = vpop.f32.mrb[25].mxu1  ;;  %v1775_v24 = vld [vmem:[%s2522_s10] ss:$0 sm:$0xff] }
 0x751   : > { %v1254_v26 = vpop.f32.mrb[26].mxu1 }
 0x752   : > { %1262 = vrot.lane.b32.xlu0 %v1254_v26, %s2102_s29  ;;  %v1916_v27 = vpop.f32.mrb[27].mxu1 }
 0x7b2   : > { %v997_v28 = vpop.permute.xlu1 %996 }
 0x7b3   : > { %1003 = vst.msk [vmem:[#allocation2] sm:$0xff] %vm1002_vm3, %v997_v28 }
 0x7b4   : > { %v999_v29 = vpop.permute.xlu0 %998 }
 0x7b5   : > { %1004 = vst.msk [vmem:[#allocation2 + $0x8] sm:$0xff] %vm1002_vm3, %v999_v29 }
 0x7ba   : > { %v1129_v30 = vpop.permute.xlu1 %1128 }
 0x7bb   : > { %1135 = vst.msk [vmem:[#allocation2] sm:$0xff] %vm1134_vm4, %v1129_v30 }
 0x7bc   : > { %v1131_v31 = vpop.permute.xlu0 %1130 }
 0x7bd   : > { %1136 = vst.msk [vmem:[#allocation2 + $0x8] sm:$0xff] %vm1134_vm4, %v1131_v31 }
 0x7c2   : > { %v1261_v32 = vpop.permute.xlu1 %1260 }
 0x7c3   : > { %1267 = vst.msk [vmem:[#allocation2] sm:$0xff] %vm1266_vm5, %v1261_v32 }
 0x7c4   : > { %v1263_v33 = vpop.permute.xlu0 %1262 }
 0x7c5   : > { %1268 = vst.msk [vmem:[#allocation2 + $0x8] sm:$0xff] %vm1266_vm5, %v1263_v33 }
 0x7ca   : > { %v1269_v34 = vld [vmem:[#allocation2] sm:$0xff] }
 0x7cc   : > { %v1270_v35 = vld [vmem:[#allocation2 + $0x8] sm:$0xff] }
 0x7cd   : > { %v1271_v36 = vpack.c.bf16 %v1270_v35, %v1269_v34 }
 0x7cf   : > { %1934 = vmatmul.mubr.bf16.vlgmr.msra.gmra.mrb[12].mxu0 %v1271_v36 }
 0x7d0   : > { %1973 = vmatprep.mubr.msk.bf16.mxu0 %vm2101_vm0, %v2099_v4  ;;  %1958 = vmatpush3.bf16.msra.mxu0 %v2039_v59 }
 0x7d1   : > { %1959 = vmatprep.subr.bf16.mxu0 %v2099_v4 }
 0x7d4   : > { %1960 = vmatpush3.bf16.msra.mxu0 %v2040_v60 }
 0x7d5   : > { %1961 = vmatprep.subr.bf16.mxu0 %v2099_v4 }
 0x7d8   : > { %1962 = vmatpush3.bf16.msra.mxu0 %v2041_v18 }
 0x7d9   : > { %1963 = vmatprep.subr.bf16.mxu0 %v2099_v4 }
 0x7dc   : > { %1964 = vmatpush3.bf16.msra.mxu0 %v2042_v19 }
 0x7dd   : > { %1965 = vmatprep.subr.bf16.mxu0 %v2099_v4 }
 0x7e0   : > { %1966 = vmatpush3.bf16.msra.mxu0 %v2043_v20 }
 0x7e1   : > { %1967 = vmatprep.subr.bf16.mxu0 %v2099_v4 }
 0x7e4   : > { %1968 = vmatpush3.bf16.msra.mxu0 %v2044_v21 }
 0x7e5   : > { %1969 = vmatprep.subr.bf16.mxu0 %v2099_v4 }
 0x7e8   : > { %1970 = vmatpush3.bf16.msra.mxu0 %v2045_v22 }
 0x7e9   : > { %1971 = vmatprep.subr.bf16.mxu0 %v2099_v4 }
 0x7ec   : > { %1972 = vmatpush3.bf16.msra.mxu0 %v2046_v23 }
 0x8a2   : > { %v1377_v38 = vpop.f32.mrb[12].mxu0 }
 0x8a3   : > { %v1378_v39 = vadd.f32 %v1764_v37, %v1377_v38  ;;  %v1935_v40 = vpop.f32.mrb[13].mxu0 }
 0x8a4   : > { %v1380_v41 = vpop.f32.mrb[14].mxu0 }
 0x8a5   : > { %v2419_v42 = vadd.f32 %v1378_v39, %v2191_v0  ;;  %v1381_v43 = vadd.f32 %v1764_v37, %v1380_v41  ;;  %v1936_v44 = vpop.f32.mrb[15].mxu0  ;;  %v1784_v41 = vld [vmem:[%s2524_s12] ss:$0 sm:$0xff] }
 0x8a7   : > { %v2422_v45 = vadd.f32 %v1381_v43, %v2193_v1  ;;  %1388 = vadd.xlane.f32.xlu1 %v2419_v42 }
 0x8a9   : > { %1390 = vadd.xlane.f32.xlu0 %v2422_v45 }
 0x934   : > { %v1389_v47 = vpop.xlane.xlu1 %1388 }
 0x935   : > { %v1392_v48 = vmul.f32 0.0078125, %v1389_v47 }
 0x936   : > { %v1391_v0 = vpop.xlane.xlu0 %1390 }
 0x937   : > { %v1394_v49 = vsub.f32 %v2419_v42, %v1392_v48  ;;  %v1393_v50 = vmul.f32 0.0078125, %v1391_v0 }
 0x939   : > { %v1395_v1 = vsub.f32 %v2422_v45, %v1393_v50  ;;  %v1396_v51 = vmul.f32 %v1394_v49, %v1394_v49 }
 0x93b   : > { %1398 = vadd.xlane.f32.xlu0 %v1396_v51  ;;  %v1397_v52 = vmul.f32 %v1395_v1, %v1395_v1 }
 0x93f   : > { %1400 = vadd.xlane.f32.xlu0 %v1397_v52 }
 0x9c8   : > { %v1399_v61 = vpop.xlane.xlu0 %1398 }
 0x9c9   : > { %v1402_v62 = vmul.f32 0.0078125, %v1399_v61 }
 0x9cb   : > { %v1404_v63 = vadd.f32 1e-05, %v1402_v62 }
 0x9cc   : > { %v1401_v2 = vpop.xlane.xlu0 %1400 }
 0x9cd   : > { %2083 = vrsqrt.f32 %v1404_v63  ;;  %v1403_v3 = vmul.f32 0.0078125, %v1401_v2 }
 0x9cf   : > { %v1405_v5 = vadd.f32 1e-05, %v1403_v3 }
 0x9d1   : > { %2085 = vrsqrt.f32 %v1405_v5 }
 0x9d7   : > { %v2084_v6 = vpop.eup %2083 }
 0x9d8   : > { %v1408_v7 = vmul.f32 %v2084_v6, %v1394_v49 }
 0x9da   : > { %v1416_v11 = vmul.f32 %v1773_v8, %v1408_v7 }
 0x9db   : > { %v2086_v9 = vpop.eup %2085 }
 0x9dc   : > { %v1409_v10 = vmul.f32 %v2086_v9, %v1395_v1  ;;  %v1424_v14 = vadd.f32 %v1774_v12, %v1416_v11 }
 0x9de   : > { %v1417_v13 = vmul.f32 %v1773_v8, %v1409_v10 }
 0x9e0   : > { %v1425_v15 = vadd.f32 %v1774_v12, %v1417_v13 }
 0x9e2   : > { %v1426_v16 = vpack.c.bf16 %v1425_v15, %v1424_v14 }
 0x9e4   : > { %1954 = vmatmul.mubr.bf16.vlgmr.msra.gmra.mrb[28].mxu1 %v1426_v16 }
 0xab7   : > { %v1532_v25 = vpop.f32.mrb[28].mxu1 }
 0xab8   : > { %v1533_v26 = vadd.f32 %v1775_v24, %v1532_v25  ;;  %v1955_v27 = vpop.f32.mrb[29].mxu1 }
 0xab9   : > { %v1535_v28 = vpop.f32.mrb[30].mxu1 }
 0xaba   : > { %v1541_v29 = vmul.f32 0.70710677, %v1533_v26  ;;  %v1536_v30 = vadd.f32 %v1775_v24, %v1535_v28  ;;  %v1956_v31 = vpop.f32.mrb[31].mxu1  ;;  %v1539_v35 = vmul.f32 0.5, %v1533_v26 }
 0xabc   : > { %2087 = verf.f32 %v1541_v29  ;;  %v1542_v32 = vmul.f32 0.70710677, %v1536_v30  ;;  %v1540_v36 = vmul.f32 0.5, %v1536_v30 }
 0xabe   : > { %2089 = verf.f32 %v1542_v32 }
 0xac6   : > { %v2088_v4 = vpop.eup %2087 }
 0xac7   : > { %v1545_v33 = vadd.f32 1.0, %v2088_v4 }
 0xac8   : > { %v2090_v34 = vpop.eup %2089 }
 0xac9   : > { %v1546_v37 = vadd.f32 1.0, %v2090_v34  ;;  %v1547_v38 = vmul.f32 %v1545_v33, %v1539_v35 }
 0xacb   : > { %v1548_v39 = vmul.f32 %v1546_v37, %v1540_v36 }
 0xacd   : > { %v1549_v40 = vpack.c.bf16 %v1548_v39, %v1547_v38 }
 0xacf   : > { %1974 = vmatmul.mubr.bf16.vlgmr.msra.gmra.mrb[16].mxu0 %v1549_v40 }
 0xba2   : > { %v1655_v43 = vpop.f32.mrb[16].mxu0 }
 0xba3   : > { %v1656_v44 = vadd.f32 %v1784_v41, %v1655_v43  ;;  %v1975_v46 = vpop.f32.mrb[17].mxu0 }
 0xba4   : > { %v1658_v47 = vpop.f32.mrb[18].mxu0 }
 0xba5   : > { %v1662_v48 = vadd.f32 %v1656_v44, %v2419_v42  ;;  %v1659_v0 = vadd.f32 %v1784_v41, %v1658_v47  ;;  %v1976_v49 = vpop.f32.mrb[19].mxu0 }
 0xba7   : > { %1664 = vst [vmem:[%s440_s19] sm:$0xff] %v1662_v48  ;;  %v1663_v50 = vadd.f32 %v1659_v0, %v2422_v45 }
 0xba9   : > { %1665 = vst [vmem:[%s440_s19 + $0x8] sm:$0xff] %v1663_v50 }
 0xbaa PF: > { %s23_s25 = sadd.s32 1, %s2097_s25  }
 0xbab   : > { %p20_p4 = scmp.ge.s32.totalorder %s23_s25, 4  }
 0xbad   :  { %22 = sbr.rel (!%p20_p4) target bundleno = 1 (0x1), region = 102 }

// kernel: cross_modal_transformer.9
= control target key start
LH: loop header
LB: loop body
LE: loop exit
PB: predicated region body
PF: predicated region fallthrough
CT: control target
= control target key end

     0   :  { %s156_s0 = inlined_call_operand.vmem [shape: f32[16,128], index: 0, kind: input, shape index: {}]   ;;  %s157_s1 = inlined_call_operand.vmem [shape: f32[1,128], index: 1, kind: input, shape index: {}]   ;;  %s158_s2 = inlined_call_operand.vmem [shape: f32[1,128], index: 2, kind: input, shape index: {}]   ;;  %s159_s3 = inlined_call_operand.hbm [shape: f32[16,128], index: 3, kind: output, shape index: {}]  }
   0x1   :  { %v15_v0 = vld [vmem:[%s156_s0] sm:$0xff] }
   0x2   :  { %8 = vsyncpa [#allocation3], 0  ;;  %19 = vadd.xlane.f32.xlu0 %v15_v0  ;;  %v16_v1 = vld [vmem:[%s156_s0 + $0x8] sm:$0xff]  ;;  %v76_v17 = vld [vmem:[%s157_s1] ss:$0 sm:$0xff]  ;;  %s109_s19 = smov [#allocation2]  }
   0x3   :  { %v77_v19 = vld [vmem:[%s158_s2] ss:$0 sm:$0xff]  ;;  %s65_s20 = sshll.u32 %s109_s19, 4  ;;  %s66_s20 = int_to_ptr.vmem [resolvable:$true] %s65_s20 }
   0x4   :  { %s85_s21 = scalar_lea.vmem %s66_s20, 256  ;;  %p90_p1 = scmp.lt.s32.totalorder %s66_s20, %s66_s20 }
   0x5   :  { %p86_p0 = scmp.ne.s32.totalorder %s66_s20, %s85_s21  ;;  %p91_p2 = scmp.lt.s32.totalorder %s85_s21, %s85_s21 }
   0x6   :  { %21 = vadd.xlane.f32.xlu0 %v16_v1 }
   0x7   :  { %p92_p3 = por %p91_p2, %p90_p1 }
   0x9   :  { %p93_p4 = pnand %p92_p3, %p86_p0 }
  0x8f   :  { %v20_v2 = vpop.xlane.xlu0 %19 }
  0x90   :  { %v24_v3 = vmul.f32 0.0078125, %v20_v2 }
  0x92   :  { %v26_v4 = vsub.f32 %v15_v0, %v24_v3 }
  0x93   :  { %v22_v5 = vpop.xlane.xlu0 %21 }
  0x94   :  { %v25_v6 = vmul.f32 0.0078125, %v22_v5  ;;  %v28_v7 = vmul.f32 %v26_v4, %v26_v4 }
  0x96   :  { %v27_v8 = vsub.f32 %v16_v1, %v25_v6  ;;  %30 = vadd.xlane.f32.xlu1 %v28_v7 }
  0x98   :  { %v29_v9 = vmul.f32 %v27_v8, %v27_v8 }
  0x9a   :  { %32 = vadd.xlane.f32.xlu1 %v29_v9 }
 0x123   :  { %v31_v10 = vpop.xlane.xlu1 %30 }
 0x124   :  { %v34_v11 = vmul.f32 0.0078125, %v31_v10 }
 0x126   :  { %v36_v12 = vadd.f32 1e-05, %v34_v11 }
 0x127   :  { %v33_v13 = vpop.xlane.xlu1 %32 }
 0x128   :  { %81 = vrsqrt.f32 %v36_v12  ;;  %v35_v14 = vmul.f32 0.0078125, %v33_v13 }
 0x12a   :  { %v37_v15 = vadd.f32 1e-05, %v35_v14 }
 0x12c   :  { %83 = vrsqrt.f32 %v37_v15 }
 0x132   :  { %v82_v16 = vpop.eup %81 }
 0x133   :  { %v40_v18 = vmul.f32 %v82_v16, %v26_v4 }
 0x135   :  { %v48_v20 = vmul.f32 %v76_v17, %v40_v18 }
 0x136   :  { %v84_v21 = vpop.eup %83 }
 0x137   :  { %v41_v22 = vmul.f32 %v84_v21, %v27_v8  ;;  %v56_v23 = vadd.f32 %v77_v19, %v48_v20 }
 0x139   :  { %v49_v24 = vmul.f32 %v76_v17, %v41_v22  ;;  %58 = vst [vmem:[#allocation2] sm:$0xff] %v56_v23 }
 0x13b   :  { %v57_v25 = vadd.f32 %v77_v19, %v49_v24 }
 0x13d   :  { %59 = vst [vmem:[#allocation2 + $0x8] sm:$0xff] %v57_v25 }
 0x13e   :  { %96 = shalt.err (!%p93_p4)
}
 0x13f   :  { %s97_s22 = scalar_lea.hbm %s159_s3, 256 }
 0x140   :  { %p98_p5 = scmp.ne.s32.totalorder %s159_s3, %s97_s22  ;;  %p101_p6 = scmp.lt.u32.totalorder %s97_s22, %s159_s3 }
 0x142   :  { %p103_p7 = pnand %p101_p6, %p98_p5 }
 0x144   :  { %106 = shalt.err (!%p103_p7)
}
 0x145   :  { %s110_s27 = smov 128   ;;  %s111_s28 = smov 8  }
 0x146   :  { %71 = dma.vmem_to_hbm [thread:$0]  %s66_s20, 256, %s159_s3, [#allocation3], %s110_s27, %s110_s27, %s111_s28  }
 0x147   :  { %107 = dma.done.wait [#allocation3], 256  }
 0x148   :  { %108 = vsyncadd [#allocation3], 4294967040 }
 0x149   :  { %75 = vsyncpa [#allocation3], 1 }

</bundles_post_ra>
